<compile_context>
chip_gen: v7x
topology: tpu7x:2x2x1
jax: 0.10.0
libtpu: 0.0.40
codegen_flags: <defaults>
</compile_context>

<pallas_src>
import functools

import jax
import jax.numpy as jnp
from jax import lax
from jax.experimental import pallas as pl
from jax.experimental.pallas import tpu as pltpu

KH = KW = 5       # conv kernel size (both layers)
COUT = 20         # real output channel count of conv1 / conv2
CIN_PAD = 32      # padding for the intermediate channel axis (conv2's K dim)
COUT_PAD = 128    # lane-dense padding for the kernel-output channel axis


# ----------------------------------------------------------------------------
# Fused kernel: conv1 + ReLU + conv2 + ReLU, per batch element (grid over N)
# ----------------------------------------------------------------------------
def _fused_kernel(x_ref, w1_ref, b1_ref, w2_ref, b2_ref, o_ref,
                  xb_ref, h1_ref, *, H, W, H1, W1, H2, W2):
    # x_ref : (1, H*W, 1)              single-channel input image
    # w1_ref: (KH*KW, CIN_PAD)         conv1 weights, row = kh*KW + kw
    # b1_ref: (1, CIN_PAD)
    # w2_ref: (KH*KW, CIN_PAD, COUT_PAD)  conv2 weights (tap, cin, cout)
    # b2_ref: (1, COUT_PAD)
    # o_ref : (1, H2*W2, COUT_PAD)     lane-dense output block
    # xb_ref: (H, W, CIN_PAD)          scratch: input broadcast across lanes
    # h1_ref: (H1, W1, CIN_PAD)        scratch: conv1 activation (VMEM only)

    # 1) Lane-broadcast the single input channel across the (padded) channel
    #    lanes, once.  (H*W, 1) -> (H*W, CIN_PAD) is a cheap lane broadcast;
    #    the reshape to (H, W, CIN_PAD) is a free re-tiling.
    xb_ref[...] = jnp.broadcast_to(
        x_ref[0], (H * W, CIN_PAD)).reshape(H, W, CIN_PAD)

    # 2) conv1 + ReLU: 25 shifted multiply-accumulates on the VPU (Cin == 1,
    #    so a matmul would be a wasteful rank-1 update).  Accumulator starts
    #    at the (broadcast) bias.
    acc1 = jnp.broadcast_to(b1_ref[...], (H1, W1, CIN_PAD))
    for kh in range(KH):
        for kw in range(KW):
            acc1 = acc1 + (xb_ref[kh:kh + H1, kw:kw + W1, :]
                           * w1_ref[kh * KW + kw, :])
    h1_ref[...] = jnp.maximum(acc1, 0.0)

    # 3) conv2 + ReLU: 25 (H2*W2, CIN_PAD) @ (CIN_PAD, COUT_PAD) MXU matmuls
    #    contracting over the (padded) channel axis, f32 accumulation.
    #    kw-shift hoisted: 5 sublane-offset slices instead of 25; the inner
    #    kh slice is a free major-dim offset.
    acc2 = jnp.broadcast_to(b2_ref[...], (H2 * W2, COUT_PAD))
    for kw in range(KW):
        h1w = h1_ref[:, kw:kw + W2, :]                    # (H1, W2, CIN_PAD)
        for kh in range(KH):
            lhs = h1w[kh:kh + H2].reshape(H2 * W2, CIN_PAD)
            acc2 = acc2 + jnp.dot(lhs, w2_ref[kh * KW + kw],
                                  preferred_element_type=jnp.float32)
    o_ref[0] = jnp.maximum(acc2, 0.0)


def _fused_forward(x_flat, w1p, b1p, w2p, b2p, *, H, W):
    N = x_flat.shape[0]
    H1, W1 = H - KH + 1, W - KW + 1
    H2, W2 = H1 - KH + 1, W1 - KW + 1
    kernel = functools.partial(_fused_kernel, H=H, W=W,
                               H1=H1, W1=W1, H2=H2, W2=W2)
    return pl.pallas_call(
        kernel,
        out_shape=jax.ShapeDtypeStruct((N, H2 * W2, COUT_PAD), jnp.float32),
        grid_spec=pltpu.PrefetchScalarGridSpec(
            num_scalar_prefetch=0,
            grid=(N,),
            in_specs=[
                pl.BlockSpec((1, H * W, 1), lambda n: (n, 0, 0)),
                # weights / biases: grid-invariant -> VMEM-resident
                pl.BlockSpec((KH * KW, CIN_PAD), lambda n: (0, 0)),
                pl.BlockSpec((1, CIN_PAD), lambda n: (0, 0)),
                pl.BlockSpec((KH * KW, CIN_PAD, COUT_PAD), lambda n: (0, 0, 0)),
                pl.BlockSpec((1, COUT_PAD), lambda n: (0, 0)),
            ],
            out_specs=pl.BlockSpec((1, H2 * W2, COUT_PAD), lambda n: (n, 0, 0)),
            scratch_shapes=[
                pltpu.VMEM((H, W, CIN_PAD), jnp.float32),    # broadcast input
                pltpu.VMEM((H1, W1, CIN_PAD), jnp.float32),  # conv1 activation
            ],
        ),
        compiler_params=pltpu.CompilerParams(
            dimension_semantics=("parallel",)),   # 2 TCs on v7x; loop elsewhere
    )(x_flat, w1p, b1p, w2p, b2p)


# ----------------------------------------------------------------------------
# Parameter prep (done ONCE, outside the hot path): reshape + pad channels
# ----------------------------------------------------------------------------
def prepare_params(params):
    w1, b1 = params["w1"], params["b1"]          # (20,1,5,5), (20,)
    w2, b2 = params["w2"], params["b2"]          # (20,20,5,5), (20,)
    cout1 = w1.shape[0]
    cout2, cin2 = w2.shape[0], w2.shape[1]

    # conv1: (Cout,1,KH,KW) -> (KH*KW, Cout) -> zero-pad cols to CIN_PAD
    w1r = w1.transpose(2, 3, 1, 0).reshape(KH * KW, cout1)
    w1p = jnp.zeros((KH * KW, CIN_PAD), jnp.float32).at[:, :cout1].set(w1r)
    b1p = jnp.zeros((1, CIN_PAD), jnp.float32).at[:, :cout1].set(
        b1.reshape(1, cout1))

    # conv2: (Cout,Cin,KH,KW) -> (KH*KW, Cin, Cout) -> pad to (., CIN_PAD, COUT_PAD)
    w2r = w2.transpose(2, 3, 1, 0).reshape(KH * KW, cin2, cout2)
    w2p = jnp.zeros((KH * KW, CIN_PAD, COUT_PAD),
                    jnp.float32).at[:, :cin2, :cout2].set(w2r)
    b2p = jnp.zeros((1, COUT_PAD), jnp.float32).at[:, :cout2].set(
        b2.reshape(1, cout2))

    return {"w1p": w1p, "b1p": b1p, "w2p": w2p, "b2p": b2p}


# ----------------------------------------------------------------------------
# Model: forward(x) = relu(conv2(relu(conv1(x)))), NCHW in / NCHW out
# ----------------------------------------------------------------------------
def init_params(key):
    k1, k2, k3, k4 = jax.random.split(key, 4)

    def u(k, shape, fan_in):
        bound = 1.0 / jnp.sqrt(fan_in)
        return jax.random.uniform(k, shape, jnp.float32, -bound, bound)

    w1 = u(k1, (20, 1, 5, 5), 1 * 5 * 5)
    b1 = u(k2, (20,), 1 * 5 * 5)
    w2 = u(k3, (20, 20, 5, 5), 20 * 5 * 5)
    b2 = u(k4, (20,), 20 * 5 * 5)
    return {"w1": w1, "b1": b1, "w2": w2, "b2": b2}


@jax.jit
def model_forward(prep, x):
    """x: (N, 1, H, W) float32 NCHW -> (N, 20, H-8, W-8) NCHW."""
    N, _, H, W = x.shape
    H2, W2 = H - 2 * (KH - 1), W - 2 * (KW - 1)
    x_flat = x.reshape(N, H * W, 1)              # single channel, column layout
    out = _fused_forward(x_flat, prep["w1p"], prep["b1p"],
                         prep["w2p"], prep["b2p"], H=H, W=W)
    # (N, H2*W2, COUT_PAD) -> slice real channels -> single NCHW transpose
    out = out[:, :, :COUT].reshape(N, H2, W2, COUT).transpose(0, 3, 1, 2)
    return out


def _reference_forward(params, x):
    """Pure-JAX reference using lax.conv for correctness checking."""
    def conv(x, w, b):
        y = lax.conv_general_dilated(
            x, w, window_strides=(1, 1), padding="VALID",
            dimension_numbers=("NCHW", "OIHW", "NCHW"))
        return jnp.maximum(y + b.reshape(1, -1, 1, 1), 0.0)
    return conv(conv(x, params["w1"], params["b1"]),
                params["w2"], params["b2"])


if __name__ == "__main__":
    key = jax.random.PRNGKey(0)
    kp, kx = jax.random.split(key)
    params = init_params(kp)
    prep = prepare_params(params)

    # input: batch=2, in_channels=1 (conv1 expects 1), spatial=16x16
    x = jax.random.normal(kx, (2, 1, 16, 16), dtype=jnp.float32)

    out = model_forward(prep, x)
    out = jax.block_until_ready(out)

    ref = _reference_forward(params, x)
    assert out.shape == (2, 20, 8, 8), out.shape
    assert jnp.allclose(out, ref, atol=1e-4, rtol=1e-4), \
        float(jnp.max(jnp.abs(out - ref)))

    print("KERNEL_OK")
</pallas_src>

<mosaic_0001>
module attributes {stable_mosaic.version = 11 : i64} {
  func.func @_fused_kernel(%arg0: i32, %arg1: memref<1x256x1xf32, #tpu.memory_space<vmem>>, %arg2: memref<25x32xf32, #tpu.memory_space<vmem>>, %arg3: memref<1x32xf32, #tpu.memory_space<vmem>>, %arg4: memref<25x32x128xf32, #tpu.memory_space<vmem>>, %arg5: memref<1x128xf32, #tpu.memory_space<vmem>>, %arg6: memref<1x64x128xf32, #tpu.memory_space<vmem>>, %arg7: memref<16x16x32xf32, #tpu.memory_space<vmem>>, %arg8: memref<12x12x32xf32, #tpu.memory_space<vmem>>) attributes {dimension_semantics = [#tpu.dimension_semantics<parallel>], iteration_bounds = array<i64: 2>, scalar_prefetch = 0 : i64, scratch_operands = 2 : i64, tpu.core_type = #tpu.core_type<tc>, window_params = [{transform_indices = @transform_0, window_bounds = array<i64: 1, 256, 1>}, {pipeline_mode = #tpu.pipeline_mode<synchronous>, transform_indices = @transform_1, window_bounds = array<i64: 25, 32>}, {pipeline_mode = #tpu.pipeline_mode<synchronous>, transform_indices = @transform_2, window_bounds = array<i64: 1, 32>}, {pipeline_mode = #tpu.pipeline_mode<synchronous>, transform_indices = @transform_3, window_bounds = array<i64: 25, 32, 128>}, {pipeline_mode = #tpu.pipeline_mode<synchronous>, transform_indices = @transform_4, window_bounds = array<i64: 1, 128>}, {transform_indices = @transform_5, window_bounds = array<i64: 1, 64, 128>}]} {
    %c0 = arith.constant 0 : index
    %c0_0 = arith.constant 0 : index
    %c0_1 = arith.constant 0 : index
    %0 = vector.load %arg1[%c0, %c0_0, %c0_1] : memref<1x256x1xf32, #tpu.memory_space<vmem>>, vector<1x256x1xf32>
    %1 = vector.shape_cast %0 : vector<1x256x1xf32> to vector<256x1xf32>
    %2 = vector.shape_cast %1 : vector<256x1xf32> to vector<256x1xf32>
    %3 = vector.broadcast %2 : vector<256x1xf32> to vector<256x32xf32>
    %4 = vector.shape_cast %3 : vector<256x32xf32> to vector<16x16x32xf32>
    %c0_2 = arith.constant 0 : index
    %c0_3 = arith.constant 0 : index
    %c0_4 = arith.constant 0 : index
    %5 = vector.load %arg7[%c0_2, %c0_3, %c0_4] : memref<16x16x32xf32, #tpu.memory_space<vmem>>, vector<16x16x32xf32>
    tpu.vector_store %arg7[%c0_2, %c0_3, %c0_4], %4 {strides = array<i32>} : memref<16x16x32xf32, #tpu.memory_space<vmem>>, vector<16x16x32xf32>,
    %c0_5 = arith.constant 0 : index
    %c0_6 = arith.constant 0 : index
    %6 = vector.load %arg3[%c0_5, %c0_6] : memref<1x32xf32, #tpu.memory_space<vmem>>, vector<1x32xf32>
    %7 = vector.shape_cast %6 : vector<1x32xf32> to vector<1x1x32xf32>
    %8 = vector.broadcast %7 : vector<1x1x32xf32> to vector<12x12x32xf32>
    %c0_7 = arith.constant 0 : index
    %c0_8 = arith.constant 0 : index
    %c0_9 = arith.constant 0 : index
    %9 = vector.load %arg7[%c0_7, %c0_8, %c0_9] : memref<16x16x32xf32, #tpu.memory_space<vmem>>, vector<12x12x32xf32>
    %c0_10 = arith.constant 0 : index
    %c0_11 = arith.constant 0 : index
    %10 = vector.load %arg2[%c0_10, %c0_11] : memref<25x32xf32, #tpu.memory_space<vmem>>, vector<1x32xf32>
    %11 = vector.shape_cast %10 : vector<1x32xf32> to vector<32xf32>
    %12 = vector.shape_cast %11 : vector<32xf32> to vector<1x1x32xf32>
    %13 = vector.broadcast %12 : vector<1x1x32xf32> to vector<12x12x32xf32>
    %14 = arith.mulf %9, %13 : vector<12x12x32xf32>
    %15 = arith.addf %8, %14 : vector<12x12x32xf32>
    %c0_12 = arith.constant 0 : index
    %c1 = arith.constant 1 : index
    %c0_13 = arith.constant 0 : index
    %16 = vector.load %arg7[%c0_12, %c1, %c0_13] : memref<16x16x32xf32, #tpu.memory_space<vmem>>, vector<12x12x32xf32>
    %c1_14 = arith.constant 1 : index
    %c0_15 = arith.constant 0 : index
    %17 = vector.load %arg2[%c1_14, %c0_15] : memref<25x32xf32, #tpu.memory_space<vmem>>, vector<1x32xf32>
    %18 = vector.shape_cast %17 : vector<1x32xf32> to vector<32xf32>
    %19 = vector.shape_cast %18 : vector<32xf32> to vector<1x1x32xf32>
    %20 = vector.broadcast %19 : vector<1x1x32xf32> to vector<12x12x32xf32>
    %21 = arith.mulf %16, %20 : vector<12x12x32xf32>
    %22 = arith.addf %15, %21 : vector<12x12x32xf32>
    %c0_16 = arith.constant 0 : index
    %c2 = arith.constant 2 : index
    %c0_17 = arith.constant 0 : index
    %23 = vector.load %arg7[%c0_16, %c2, %c0_17] : memref<16x16x32xf32, #tpu.memory_space<vmem>>, vector<12x12x32xf32>
    %c2_18 = arith.constant 2 : index
    %c0_19 = arith.constant 0 : index
    %24 = vector.load %arg2[%c2_18, %c0_19] : memref<25x32xf32, #tpu.memory_space<vmem>>, vector<1x32xf32>
    %25 = vector.shape_cast %24 : vector<1x32xf32> to vector<32xf32>
    %26 = vector.shape_cast %25 : vector<32xf32> to vector<1x1x32xf32>
    %27 = vector.broadcast %26 : vector<1x1x32xf32> to vector<12x12x32xf32>
    %28 = arith.mulf %23, %27 : vector<12x12x32xf32>
    %29 = arith.addf %22, %28 : vector<12x12x32xf32>
    %c0_20 = arith.constant 0 : index
    %c3 = arith.constant 3 : index
    %c0_21 = arith.constant 0 : index
    %30 = vector.load %arg7[%c0_20, %c3, %c0_21] : memref<16x16x32xf32, #tpu.memory_space<vmem>>, vector<12x12x32xf32>
    %c3_22 = arith.constant 3 : index
    %c0_23 = arith.constant 0 : index
    %31 = vector.load %arg2[%c3_22, %c0_23] : memref<25x32xf32, #tpu.memory_space<vmem>>, vector<1x32xf32>
    %32 = vector.shape_cast %31 : vector<1x32xf32> to vector<32xf32>
    %33 = vector.shape_cast %32 : vector<32xf32> to vector<1x1x32xf32>
    %34 = vector.broadcast %33 : vector<1x1x32xf32> to vector<12x12x32xf32>
    %35 = arith.mulf %30, %34 : vector<12x12x32xf32>
    %36 = arith.addf %29, %35 : vector<12x12x32xf32>
    %c0_24 = arith.constant 0 : index
    %c4 = arith.constant 4 : index
    %c0_25 = arith.constant 0 : index
    %37 = vector.load %arg7[%c0_24, %c4, %c0_25] : memref<16x16x32xf32, #tpu.memory_space<vmem>>, vector<12x12x32xf32>
    %c4_26 = arith.constant 4 : index
    %c0_27 = arith.constant 0 : index
    %38 = vector.load %arg2[%c4_26, %c0_27] : memref<25x32xf32, #tpu.memory_space<vmem>>, vector<1x32xf32>
    %39 = vector.shape_cast %38 : vector<1x32xf32> to vector<32xf32>
    %40 = vector.shape_cast %39 : vector<32xf32> to vector<1x1x32xf32>
    %41 = vector.broadcast %40 : vector<1x1x32xf32> to vector<12x12x32xf32>
    %42 = arith.mulf %37, %41 : vector<12x12x32xf32>
    %43 = arith.addf %36, %42 : vector<12x12x32xf32>
    %c1_28 = arith.constant 1 : index
    %c0_29 = arith.constant 0 : index
    %c0_30 = arith.constant 0 : index
    %44 = vector.load %arg7[%c1_28, %c0_29, %c0_30] : memref<16x16x32xf32, #tpu.memory_space<vmem>>, vector<12x12x32xf32>
    %c5 = arith.constant 5 : index
    %c0_31 = arith.constant 0 : index
    %45 = vector.load %arg2[%c5, %c0_31] : memref<25x32xf32, #tpu.memory_space<vmem>>, vector<1x32xf32>
    %46 = vector.shape_cast %45 : vector<1x32xf32> to vector<32xf32>
    %47 = vector.shape_cast %46 : vector<32xf32> to vector<1x1x32xf32>
    %48 = vector.broadcast %47 : vector<1x1x32xf32> to vector<12x12x32xf32>
    %49 = arith.mulf %44, %48 : vector<12x12x32xf32>
    %50 = arith.addf %43, %49 : vector<12x12x32xf32>
    %c1_32 = arith.constant 1 : index
    %c1_33 = arith.constant 1 : index
    %c0_34 = arith.constant 0 : index
    %51 = vector.load %arg7[%c1_32, %c1_33, %c0_34] : memref<16x16x32xf32, #tpu.memory_space<vmem>>, vector<12x12x32xf32>
    %c6 = arith.constant 6 : index
    %c0_35 = arith.constant 0 : index
    %52 = vector.load %arg2[%c6, %c0_35] : memref<25x32xf32, #tpu.memory_space<vmem>>, vector<1x32xf32>
    %53 = vector.shape_cast %52 : vector<1x32xf32> to vector<32xf32>
    %54 = vector.shape_cast %53 : vector<32xf32> to vector<1x1x32xf32>
    %55 = vector.broadcast %54 : vector<1x1x32xf32> to vector<12x12x32xf32>
    %56 = arith.mulf %51, %55 : vector<12x12x32xf32>
    %57 = arith.addf %50, %56 : vector<12x12x32xf32>
    %c1_36 = arith.constant 1 : index
    %c2_37 = arith.constant 2 : index
    %c0_38 = arith.constant 0 : index
    %58 = vector.load %arg7[%c1_36, %c2_37, %c0_38] : memref<16x16x32xf32, #tpu.memory_space<vmem>>, vector<12x12x32xf32>
    %c7 = arith.constant 7 : index
    %c0_39 = arith.constant 0 : index
    %59 = vector.load %arg2[%c7, %c0_39] : memref<25x32xf32, #tpu.memory_space<vmem>>, vector<1x32xf32>
    %60 = vector.shape_cast %59 : vector<1x32xf32> to vector<32xf32>
    %61 = vector.shape_cast %60 : vector<32xf32> to vector<1x1x32xf32>
    %62 = vector.broadcast %61 : vector<1x1x32xf32> to vector<12x12x32xf32>
    %63 = arith.mulf %58, %62 : vector<12x12x32xf32>
    %64 = arith.addf %57, %63 : vector<12x12x32xf32>
    %c1_40 = arith.constant 1 : index
    %c3_41 = arith.constant 3 : index
    %c0_42 = arith.constant 0 : index
    %65 = vector.load %arg7[%c1_40, %c3_41, %c0_42] : memref<16x16x32xf32, #tpu.memory_space<vmem>>, vector<12x12x32xf32>
    %c8 = arith.constant 8 : index
    %c0_43 = arith.constant 0 : index
    %66 = vector.load %arg2[%c8, %c0_43] : memref<25x32xf32, #tpu.memory_space<vmem>>, vector<1x32xf32>
    %67 = vector.shape_cast %66 : vector<1x32xf32> to vector<32xf32>
    %68 = vector.shape_cast %67 : vector<32xf32> to vector<1x1x32xf32>
    %69 = vector.broadcast %68 : vector<1x1x32xf32> to vector<12x12x32xf32>
    %70 = arith.mulf %65, %69 : vector<12x12x32xf32>
    %71 = arith.addf %64, %70 : vector<12x12x32xf32>
    %c1_44 = arith.constant 1 : index
    %c4_45 = arith.constant 4 : index
    %c0_46 = arith.constant 0 : index
    %72 = vector.load %arg7[%c1_44, %c4_45, %c0_46] : memref<16x16x32xf32, #tpu.memory_space<vmem>>, vector<12x12x32xf32>
    %c9 = arith.constant 9 : index
    %c0_47 = arith.constant 0 : index
    %73 = vector.load %arg2[%c9, %c0_47] : memref<25x32xf32, #tpu.memory_space<vmem>>, vector<1x32xf32>
    %74 = vector.shape_cast %73 : vector<1x32xf32> to vector<32xf32>
    %75 = vector.shape_cast %74 : vector<32xf32> to vector<1x1x32xf32>
    %76 = vector.broadcast %75 : vector<1x1x32xf32> to vector<12x12x32xf32>
    %77 = arith.mulf %72, %76 : vector<12x12x32xf32>
    %78 = arith.addf %71, %77 : vector<12x12x32xf32>
    %c2_48 = arith.constant 2 : index
    %c0_49 = arith.constant 0 : index
    %c0_50 = arith.constant 0 : index
    %79 = vector.load %arg7[%c2_48, %c0_49, %c0_50] : memref<16x16x32xf32, #tpu.memory_space<vmem>>, vector<12x12x32xf32>
    %c10 = arith.constant 10 : index
    %c0_51 = arith.constant 0 : index
    %80 = vector.load %arg2[%c10, %c0_51] : memref<25x32xf32, #tpu.memory_space<vmem>>, vector<1x32xf32>
    %81 = vector.shape_cast %80 : vector<1x32xf32> to vector<32xf32>
    %82 = vector.shape_cast %81 : vector<32xf32> to vector<1x1x32xf32>
    %83 = vector.broadcast %82 : vector<1x1x32xf32> to vector<12x12x32xf32>
    %84 = arith.mulf %79, %83 : vector<12x12x32xf32>
    %85 = arith.addf %78, %84 : vector<12x12x32xf32>
    %c2_52 = arith.constant 2 : index
    %c1_53 = arith.constant 1 : index
    %c0_54 = arith.constant 0 : index
    %86 = vector.load %arg7[%c2_52, %c1_53, %c0_54] : memref<16x16x32xf32, #tpu.memory_space<vmem>>, vector<12x12x32xf32>
    %c11 = arith.constant 11 : index
    %c0_55 = arith.constant 0 : index
    %87 = vector.load %arg2[%c11, %c0_55] : memref<25x32xf32, #tpu.memory_space<vmem>>, vector<1x32xf32>
    %88 = vector.shape_cast %87 : vector<1x32xf32> to vector<32xf32>
    %89 = vector.shape_cast %88 : vector<32xf32> to vector<1x1x32xf32>
    %90 = vector.broadcast %89 : vector<1x1x32xf32> to vector<12x12x32xf32>
    %91 = arith.mulf %86, %90 : vector<12x12x32xf32>
    %92 = arith.addf %85, %91 : vector<12x12x32xf32>
    %c2_56 = arith.constant 2 : index
    %c2_57 = arith.constant 2 : index
    %c0_58 = arith.constant 0 : index
    %93 = vector.load %arg7[%c2_56, %c2_57, %c0_58] : memref<16x16x32xf32, #tpu.memory_space<vmem>>, vector<12x12x32xf32>
    %c12 = arith.constant 12 : index
    %c0_59 = arith.constant 0 : index
    %94 = vector.load %arg2[%c12, %c0_59] : memref<25x32xf32, #tpu.memory_space<vmem>>, vector<1x32xf32>
    %95 = vector.shape_cast %94 : vector<1x32xf32> to vector<32xf32>
    %96 = vector.shape_cast %95 : vector<32xf32> to vector<1x1x32xf32>
    %97 = vector.broadcast %96 : vector<1x1x32xf32> to vector<12x12x32xf32>
    %98 = arith.mulf %93, %97 : vector<12x12x32xf32>
    %99 = arith.addf %92, %98 : vector<12x12x32xf32>
    %c2_60 = arith.constant 2 : index
    %c3_61 = arith.constant 3 : index
    %c0_62 = arith.constant 0 : index
    %100 = vector.load %arg7[%c2_60, %c3_61, %c0_62] : memref<16x16x32xf32, #tpu.memory_space<vmem>>, vector<12x12x32xf32>
    %c13 = arith.constant 13 : index
    %c0_63 = arith.constant 0 : index
    %101 = vector.load %arg2[%c13, %c0_63] : memref<25x32xf32, #tpu.memory_space<vmem>>, vector<1x32xf32>
    %102 = vector.shape_cast %101 : vector<1x32xf32> to vector<32xf32>
    %103 = vector.shape_cast %102 : vector<32xf32> to vector<1x1x32xf32>
    %104 = vector.broadcast %103 : vector<1x1x32xf32> to vector<12x12x32xf32>
    %105 = arith.mulf %100, %104 : vector<12x12x32xf32>
    %106 = arith.addf %99, %105 : vector<12x12x32xf32>
    %c2_64 = arith.constant 2 : index
    %c4_65 = arith.constant 4 : index
    %c0_66 = arith.constant 0 : index
    %107 = vector.load %arg7[%c2_64, %c4_65, %c0_66] : memref<16x16x32xf32, #tpu.memory_space<vmem>>, vector<12x12x32xf32>
    %c14 = arith.constant 14 : index
    %c0_67 = arith.constant 0 : index
    %108 = vector.load %arg2[%c14, %c0_67] : memref<25x32xf32, #tpu.memory_space<vmem>>, vector<1x32xf32>
    %109 = vector.shape_cast %108 : vector<1x32xf32> to vector<32xf32>
    %110 = vector.shape_cast %109 : vector<32xf32> to vector<1x1x32xf32>
    %111 = vector.broadcast %110 : vector<1x1x32xf32> to vector<12x12x32xf32>
    %112 = arith.mulf %107, %111 : vector<12x12x32xf32>
    %113 = arith.addf %106, %112 : vector<12x12x32xf32>
    %c3_68 = arith.constant 3 : index
    %c0_69 = arith.constant 0 : index
    %c0_70 = arith.constant 0 : index
    %114 = vector.load %arg7[%c3_68, %c0_69, %c0_70] : memref<16x16x32xf32, #tpu.memory_space<vmem>>, vector<12x12x32xf32>
    %c15 = arith.constant 15 : index
    %c0_71 = arith.constant 0 : index
    %115 = vector.load %arg2[%c15, %c0_71] : memref<25x32xf32, #tpu.memory_space<vmem>>, vector<1x32xf32>
    %116 = vector.shape_cast %115 : vector<1x32xf32> to vector<32xf32>
    %117 = vector.shape_cast %116 : vector<32xf32> to vector<1x1x32xf32>
    %118 = vector.broadcast %117 : vector<1x1x32xf32> to vector<12x12x32xf32>
    %119 = arith.mulf %114, %118 : vector<12x12x32xf32>
    %120 = arith.addf %113, %119 : vector<12x12x32xf32>
    %c3_72 = arith.constant 3 : index
    %c1_73 = arith.constant 1 : index
    %c0_74 = arith.constant 0 : index
    %121 = vector.load %arg7[%c3_72, %c1_73, %c0_74] : memref<16x16x32xf32, #tpu.memory_space<vmem>>, vector<12x12x32xf32>
    %c16 = arith.constant 16 : index
    %c0_75 = arith.constant 0 : index
    %122 = vector.load %arg2[%c16, %c0_75] : memref<25x32xf32, #tpu.memory_space<vmem>>, vector<1x32xf32>
    %123 = vector.shape_cast %122 : vector<1x32xf32> to vector<32xf32>
    %124 = vector.shape_cast %123 : vector<32xf32> to vector<1x1x32xf32>
    %125 = vector.broadcast %124 : vector<1x1x32xf32> to vector<12x12x32xf32>
    %126 = arith.mulf %121, %125 : vector<12x12x32xf32>
    %127 = arith.addf %120, %126 : vector<12x12x32xf32>
    %c3_76 = arith.constant 3 : index
    %c2_77 = arith.constant 2 : index
    %c0_78 = arith.constant 0 : index
    %128 = vector.load %arg7[%c3_76, %c2_77, %c0_78] : memref<16x16x32xf32, #tpu.memory_space<vmem>>, vector<12x12x32xf32>
    %c17 = arith.constant 17 : index
    %c0_79 = arith.constant 0 : index
    %129 = vector.load %arg2[%c17, %c0_79] : memref<25x32xf32, #tpu.memory_space<vmem>>, vector<1x32xf32>
    %130 = vector.shape_cast %129 : vector<1x32xf32> to vector<32xf32>
    %131 = vector.shape_cast %130 : vector<32xf32> to vector<1x1x32xf32>
    %132 = vector.broadcast %131 : vector<1x1x32xf32> to vector<12x12x32xf32>
    %133 = arith.mulf %128, %132 : vector<12x12x32xf32>
    %134 = arith.addf %127, %133 : vector<12x12x32xf32>
    %c3_80 = arith.constant 3 : index
    %c3_81 = arith.constant 3 : index
    %c0_82 = arith.constant 0 : index
    %135 = vector.load %arg7[%c3_80, %c3_81, %c0_82] : memref<16x16x32xf32, #tpu.memory_space<vmem>>, vector<12x12x32xf32>
    %c18 = arith.constant 18 : index
    %c0_83 = arith.constant 0 : index
    %136 = vector.load %arg2[%c18, %c0_83] : memref<25x32xf32, #tpu.memory_space<vmem>>, vector<1x32xf32>
    %137 = vector.shape_cast %136 : vector<1x32xf32> to vector<32xf32>
    %138 = vector.shape_cast %137 : vector<32xf32> to vector<1x1x32xf32>
    %139 = vector.broadcast %138 : vector<1x1x32xf32> to vector<12x12x32xf32>
    %140 = arith.mulf %135, %139 : vector<12x12x32xf32>
    %141 = arith.addf %134, %140 : vector<12x12x32xf32>
    %c3_84 = arith.constant 3 : index
    %c4_85 = arith.constant 4 : index
    %c0_86 = arith.constant 0 : index
    %142 = vector.load %arg7[%c3_84, %c4_85, %c0_86] : memref<16x16x32xf32, #tpu.memory_space<vmem>>, vector<12x12x32xf32>
    %c19 = arith.constant 19 : index
    %c0_87 = arith.constant 0 : index
    %143 = vector.load %arg2[%c19, %c0_87] : memref<25x32xf32, #tpu.memory_space<vmem>>, vector<1x32xf32>
    %144 = vector.shape_cast %143 : vector<1x32xf32> to vector<32xf32>
    %145 = vector.shape_cast %144 : vector<32xf32> to vector<1x1x32xf32>
    %146 = vector.broadcast %145 : vector<1x1x32xf32> to vector<12x12x32xf32>
    %147 = arith.mulf %142, %146 : vector<12x12x32xf32>
    %148 = arith.addf %141, %147 : vector<12x12x32xf32>
    %c4_88 = arith.constant 4 : index
    %c0_89 = arith.constant 0 : index
    %c0_90 = arith.constant 0 : index
    %149 = vector.load %arg7[%c4_88, %c0_89, %c0_90] : memref<16x16x32xf32, #tpu.memory_space<vmem>>, vector<12x12x32xf32>
    %c20 = arith.constant 20 : index
    %c0_91 = arith.constant 0 : index
    %150 = vector.load %arg2[%c20, %c0_91] : memref<25x32xf32, #tpu.memory_space<vmem>>, vector<1x32xf32>
    %151 = vector.shape_cast %150 : vector<1x32xf32> to vector<32xf32>
    %152 = vector.shape_cast %151 : vector<32xf32> to vector<1x1x32xf32>
    %153 = vector.broadcast %152 : vector<1x1x32xf32> to vector<12x12x32xf32>
    %154 = arith.mulf %149, %153 : vector<12x12x32xf32>
    %155 = arith.addf %148, %154 : vector<12x12x32xf32>
    %c4_92 = arith.constant 4 : index
    %c1_93 = arith.constant 1 : index
    %c0_94 = arith.constant 0 : index
    %156 = vector.load %arg7[%c4_92, %c1_93, %c0_94] : memref<16x16x32xf32, #tpu.memory_space<vmem>>, vector<12x12x32xf32>
    %c21 = arith.constant 21 : index
    %c0_95 = arith.constant 0 : index
    %157 = vector.load %arg2[%c21, %c0_95] : memref<25x32xf32, #tpu.memory_space<vmem>>, vector<1x32xf32>
    %158 = vector.shape_cast %157 : vector<1x32xf32> to vector<32xf32>
    %159 = vector.shape_cast %158 : vector<32xf32> to vector<1x1x32xf32>
    %160 = vector.broadcast %159 : vector<1x1x32xf32> to vector<12x12x32xf32>
    %161 = arith.mulf %156, %160 : vector<12x12x32xf32>
    %162 = arith.addf %155, %161 : vector<12x12x32xf32>
    %c4_96 = arith.constant 4 : index
    %c2_97 = arith.constant 2 : index
    %c0_98 = arith.constant 0 : index
    %163 = vector.load %arg7[%c4_96, %c2_97, %c0_98] : memref<16x16x32xf32, #tpu.memory_space<vmem>>, vector<12x12x32xf32>
    %c22 = arith.constant 22 : index
    %c0_99 = arith.constant 0 : index
    %164 = vector.load %arg2[%c22, %c0_99] : memref<25x32xf32, #tpu.memory_space<vmem>>, vector<1x32xf32>
    %165 = vector.shape_cast %164 : vector<1x32xf32> to vector<32xf32>
    %166 = vector.shape_cast %165 : vector<32xf32> to vector<1x1x32xf32>
    %167 = vector.broadcast %166 : vector<1x1x32xf32> to vector<12x12x32xf32>
    %168 = arith.mulf %163, %167 : vector<12x12x32xf32>
    %169 = arith.addf %162, %168 : vector<12x12x32xf32>
    %c4_100 = arith.constant 4 : index
    %c3_101 = arith.constant 3 : index
    %c0_102 = arith.constant 0 : index
    %170 = vector.load %arg7[%c4_100, %c3_101, %c0_102] : memref<16x16x32xf32, #tpu.memory_space<vmem>>, vector<12x12x32xf32>
    %c23 = arith.constant 23 : index
    %c0_103 = arith.constant 0 : index
    %171 = vector.load %arg2[%c23, %c0_103] : memref<25x32xf32, #tpu.memory_space<vmem>>, vector<1x32xf32>
    %172 = vector.shape_cast %171 : vector<1x32xf32> to vector<32xf32>
    %173 = vector.shape_cast %172 : vector<32xf32> to vector<1x1x32xf32>
    %174 = vector.broadcast %173 : vector<1x1x32xf32> to vector<12x12x32xf32>
    %175 = arith.mulf %170, %174 : vector<12x12x32xf32>
    %176 = arith.addf %169, %175 : vector<12x12x32xf32>
    %c4_104 = arith.constant 4 : index
    %c4_105 = arith.constant 4 : index
    %c0_106 = arith.constant 0 : index
    %177 = vector.load %arg7[%c4_104, %c4_105, %c0_106] : memref<16x16x32xf32, #tpu.memory_space<vmem>>, vector<12x12x32xf32>
    %c24 = arith.constant 24 : index
    %c0_107 = arith.constant 0 : index
    %178 = vector.load %arg2[%c24, %c0_107] : memref<25x32xf32, #tpu.memory_space<vmem>>, vector<1x32xf32>
    %179 = vector.shape_cast %178 : vector<1x32xf32> to vector<32xf32>
    %180 = vector.shape_cast %179 : vector<32xf32> to vector<1x1x32xf32>
    %181 = vector.broadcast %180 : vector<1x1x32xf32> to vector<12x12x32xf32>
    %182 = arith.mulf %177, %181 : vector<12x12x32xf32>
    %183 = arith.addf %176, %182 : vector<12x12x32xf32>
    %cst = arith.constant 0.000000e+00 : f32
    %184 = vector.broadcast %cst : f32 to vector<12x12x32xf32>
    %185 = arith.maximumf %183, %184 : vector<12x12x32xf32>
    %c0_108 = arith.constant 0 : index
    %c0_109 = arith.constant 0 : index
    %c0_110 = arith.constant 0 : index
    %186 = vector.load %arg8[%c0_108, %c0_109, %c0_110] : memref<12x12x32xf32, #tpu.memory_space<vmem>>, vector<12x12x32xf32>
    tpu.vector_store %arg8[%c0_108, %c0_109, %c0_110], %185 {strides = array<i32>} : memref<12x12x32xf32, #tpu.memory_space<vmem>>, vector<12x12x32xf32>,
    %c0_111 = arith.constant 0 : index
    %c0_112 = arith.constant 0 : index
    %187 = vector.load %arg5[%c0_111, %c0_112] : memref<1x128xf32, #tpu.memory_space<vmem>>, vector<1x128xf32>
    %188 = vector.shape_cast %187 : vector<1x128xf32> to vector<1x128xf32>
    %189 = vector.broadcast %188 : vector<1x128xf32> to vector<64x128xf32>
    %c0_113 = arith.constant 0 : index
    %c0_114 = arith.constant 0 : index
    %c0_115 = arith.constant 0 : index
    %190 = vector.load %arg8[%c0_113, %c0_114, %c0_115] : memref<12x12x32xf32, #tpu.memory_space<vmem>>, vector<12x8x32xf32>
    %191 = vector.extract_strided_slice %190 {offsets = [0, 0, 0], sizes = [8, 8, 32], strides = [1, 1, 1]} : vector<12x8x32xf32> to vector<8x8x32xf32>
    %192 = vector.shape_cast %191 : vector<8x8x32xf32> to vector<64x32xf32>
    %c0_116 = arith.constant 0 : index
    %c0_117 = arith.constant 0 : index
    %c0_118 = arith.constant 0 : index
    %193 = vector.load %arg4[%c0_116, %c0_117, %c0_118] : memref<25x32x128xf32, #tpu.memory_space<vmem>>, vector<1x32x128xf32>
    %194 = vector.shape_cast %193 : vector<1x32x128xf32> to vector<32x128xf32>
    %cst_119 = arith.constant dense<0.000000e+00> : vector<64x128xf32>
    %195 = tpu.matmul %192, %194, %cst_119 {dimension_numbers = #tpu.dot_dimension_numbers<[1], [0], [0], [1], [0, 0, 1, 1], [], []>} : vector<64x32xf32>, vector<32x128xf32>, vector<64x128xf32> -> vector<64x128xf32>
    %196 = arith.addf %189, %195 : vector<64x128xf32>
    %197 = vector.extract_strided_slice %190 {offsets = [1, 0, 0], sizes = [8, 8, 32], strides = [1, 1, 1]} : vector<12x8x32xf32> to vector<8x8x32xf32>
    %198 = vector.shape_cast %197 : vector<8x8x32xf32> to vector<64x32xf32>
    %c5_120 = arith.constant 5 : index
    %c0_121 = arith.constant 0 : index
    %c0_122 = arith.constant 0 : index
    %199 = vector.load %arg4[%c5_120, %c0_121, %c0_122] : memref<25x32x128xf32, #tpu.memory_space<vmem>>, vector<1x32x128xf32>
    %200 = vector.shape_cast %199 : vector<1x32x128xf32> to vector<32x128xf32>
    %cst_123 = arith.constant dense<0.000000e+00> : vector<64x128xf32>
    %201 = tpu.matmul %198, %200, %cst_123 {dimension_numbers = #tpu.dot_dimension_numbers<[1], [0], [0], [1], [0, 0, 1, 1], [], []>} : vector<64x32xf32>, vector<32x128xf32>, vector<64x128xf32> -> vector<64x128xf32>
    %202 = arith.addf %196, %201 : vector<64x128xf32>
    %203 = vector.extract_strided_slice %190 {offsets = [2, 0, 0], sizes = [8, 8, 32], strides = [1, 1, 1]} : vector<12x8x32xf32> to vector<8x8x32xf32>
    %204 = vector.shape_cast %203 : vector<8x8x32xf32> to vector<64x32xf32>
    %c10_124 = arith.constant 10 : index
    %c0_125 = arith.constant 0 : index
    %c0_126 = arith.constant 0 : index
    %205 = vector.load %arg4[%c10_124, %c0_125, %c0_126] : memref<25x32x128xf32, #tpu.memory_space<vmem>>, vector<1x32x128xf32>
    %206 = vector.shape_cast %205 : vector<1x32x128xf32> to vector<32x128xf32>
    %cst_127 = arith.constant dense<0.000000e+00> : vector<64x128xf32>
    %207 = tpu.matmul %204, %206, %cst_127 {dimension_numbers = #tpu.dot_dimension_numbers<[1], [0], [0], [1], [0, 0, 1, 1], [], []>} : vector<64x32xf32>, vector<32x128xf32>, vector<64x128xf32> -> vector<64x128xf32>
    %208 = arith.addf %202, %207 : vector<64x128xf32>
    %209 = vector.extract_strided_slice %190 {offsets = [3, 0, 0], sizes = [8, 8, 32], strides = [1, 1, 1]} : vector<12x8x32xf32> to vector<8x8x32xf32>
    %210 = vector.shape_cast %209 : vector<8x8x32xf32> to vector<64x32xf32>
    %c15_128 = arith.constant 15 : index
    %c0_129 = arith.constant 0 : index
    %c0_130 = arith.constant 0 : index
    %211 = vector.load %arg4[%c15_128, %c0_129, %c0_130] : memref<25x32x128xf32, #tpu.memory_space<vmem>>, vector<1x32x128xf32>
    %212 = vector.shape_cast %211 : vector<1x32x128xf32> to vector<32x128xf32>
    %cst_131 = arith.constant dense<0.000000e+00> : vector<64x128xf32>
    %213 = tpu.matmul %210, %212, %cst_131 {dimension_numbers = #tpu.dot_dimension_numbers<[1], [0], [0], [1], [0, 0, 1, 1], [], []>} : vector<64x32xf32>, vector<32x128xf32>, vector<64x128xf32> -> vector<64x128xf32>
    %214 = arith.addf %208, %213 : vector<64x128xf32>
    %215 = vector.extract_strided_slice %190 {offsets = [4, 0, 0], sizes = [8, 8, 32], strides = [1, 1, 1]} : vector<12x8x32xf32> to vector<8x8x32xf32>
    %216 = vector.shape_cast %215 : vector<8x8x32xf32> to vector<64x32xf32>
    %c20_132 = arith.constant 20 : index
    %c0_133 = arith.constant 0 : index
    %c0_134 = arith.constant 0 : index
    %217 = vector.load %arg4[%c20_132, %c0_133, %c0_134] : memref<25x32x128xf32, #tpu.memory_space<vmem>>, vector<1x32x128xf32>
    %218 = vector.shape_cast %217 : vector<1x32x128xf32> to vector<32x128xf32>
    %cst_135 = arith.constant dense<0.000000e+00> : vector<64x128xf32>
    %219 = tpu.matmul %216, %218, %cst_135 {dimension_numbers = #tpu.dot_dimension_numbers<[1], [0], [0], [1], [0, 0, 1, 1], [], []>} : vector<64x32xf32>, vector<32x128xf32>, vector<64x128xf32> -> vector<64x128xf32>
    %220 = arith.addf %214, %219 : vector<64x128xf32>
    %c0_136 = arith.constant 0 : index
    %c1_137 = arith.constant 1 : index
    %c0_138 = arith.constant 0 : index
    %221 = vector.load %arg8[%c0_136, %c1_137, %c0_138] : memref<12x12x32xf32, #tpu.memory_space<vmem>>, vector<12x8x32xf32>
    %222 = vector.extract_strided_slice %221 {offsets = [0, 0, 0], sizes = [8, 8, 32], strides = [1, 1, 1]} : vector<12x8x32xf32> to vector<8x8x32xf32>
    %223 = vector.shape_cast %222 : vector<8x8x32xf32> to vector<64x32xf32>
    %c1_139 = arith.constant 1 : index
    %c0_140 = arith.constant 0 : index
    %c0_141 = arith.constant 0 : index
    %224 = vector.load %arg4[%c1_139, %c0_140, %c0_141] : memref<25x32x128xf32, #tpu.memory_space<vmem>>, vector<1x32x128xf32>
    %225 = vector.shape_cast %224 : vector<1x32x128xf32> to vector<32x128xf32>
    %cst_142 = arith.constant dense<0.000000e+00> : vector<64x128xf32>
    %226 = tpu.matmul %223, %225, %cst_142 {dimension_numbers = #tpu.dot_dimension_numbers<[1], [0], [0], [1], [0, 0, 1, 1], [], []>} : vector<64x32xf32>, vector<32x128xf32>, vector<64x128xf32> -> vector<64x128xf32>
    %227 = arith.addf %220, %226 : vector<64x128xf32>
    %228 = vector.extract_strided_slice %221 {offsets = [1, 0, 0], sizes = [8, 8, 32], strides = [1, 1, 1]} : vector<12x8x32xf32> to vector<8x8x32xf32>
    %229 = vector.shape_cast %228 : vector<8x8x32xf32> to vector<64x32xf32>
    %c6_143 = arith.constant 6 : index
    %c0_144 = arith.constant 0 : index
    %c0_145 = arith.constant 0 : index
    %230 = vector.load %arg4[%c6_143, %c0_144, %c0_145] : memref<25x32x128xf32, #tpu.memory_space<vmem>>, vector<1x32x128xf32>
    %231 = vector.shape_cast %230 : vector<1x32x128xf32> to vector<32x128xf32>
    %cst_146 = arith.constant dense<0.000000e+00> : vector<64x128xf32>
    %232 = tpu.matmul %229, %231, %cst_146 {dimension_numbers = #tpu.dot_dimension_numbers<[1], [0], [0], [1], [0, 0, 1, 1], [], []>} : vector<64x32xf32>, vector<32x128xf32>, vector<64x128xf32> -> vector<64x128xf32>
    %233 = arith.addf %227, %232 : vector<64x128xf32>
    %234 = vector.extract_strided_slice %221 {offsets = [2, 0, 0], sizes = [8, 8, 32], strides = [1, 1, 1]} : vector<12x8x32xf32> to vector<8x8x32xf32>
    %235 = vector.shape_cast %234 : vector<8x8x32xf32> to vector<64x32xf32>
    %c11_147 = arith.constant 11 : index
    %c0_148 = arith.constant 0 : index
    %c0_149 = arith.constant 0 : index
    %236 = vector.load %arg4[%c11_147, %c0_148, %c0_149] : memref<25x32x128xf32, #tpu.memory_space<vmem>>, vector<1x32x128xf32>
    %237 = vector.shape_cast %236 : vector<1x32x128xf32> to vector<32x128xf32>
    %cst_150 = arith.constant dense<0.000000e+00> : vector<64x128xf32>
    %238 = tpu.matmul %235, %237, %cst_150 {dimension_numbers = #tpu.dot_dimension_numbers<[1], [0], [0], [1], [0, 0, 1, 1], [], []>} : vector<64x32xf32>, vector<32x128xf32>, vector<64x128xf32> -> vector<64x128xf32>
    %239 = arith.addf %233, %238 : vector<64x128xf32>
    %240 = vector.extract_strided_slice %221 {offsets = [3, 0, 0], sizes = [8, 8, 32], strides = [1, 1, 1]} : vector<12x8x32xf32> to vector<8x8x32xf32>
    %241 = vector.shape_cast %240 : vector<8x8x32xf32> to vector<64x32xf32>
    %c16_151 = arith.constant 16 : index
    %c0_152 = arith.constant 0 : index
    %c0_153 = arith.constant 0 : index
    %242 = vector.load %arg4[%c16_151, %c0_152, %c0_153] : memref<25x32x128xf32, #tpu.memory_space<vmem>>, vector<1x32x128xf32>
    %243 = vector.shape_cast %242 : vector<1x32x128xf32> to vector<32x128xf32>
    %cst_154 = arith.constant dense<0.000000e+00> : vector<64x128xf32>
    %244 = tpu.matmul %241, %243, %cst_154 {dimension_numbers = #tpu.dot_dimension_numbers<[1], [0], [0], [1], [0, 0, 1, 1], [], []>} : vector<64x32xf32>, vector<32x128xf32>, vector<64x128xf32> -> vector<64x128xf32>
    %245 = arith.addf %239, %244 : vector<64x128xf32>
    %246 = vector.extract_strided_slice %221 {offsets = [4, 0, 0], sizes = [8, 8, 32], strides = [1, 1, 1]} : vector<12x8x32xf32> to vector<8x8x32xf32>
    %247 = vector.shape_cast %246 : vector<8x8x32xf32> to vector<64x32xf32>
    %c21_155 = arith.constant 21 : index
    %c0_156 = arith.constant 0 : index
    %c0_157 = arith.constant 0 : index
    %248 = vector.load %arg4[%c21_155, %c0_156, %c0_157] : memref<25x32x128xf32, #tpu.memory_space<vmem>>, vector<1x32x128xf32>
    %249 = vector.shape_cast %248 : vector<1x32x128xf32> to vector<32x128xf32>
    %cst_158 = arith.constant dense<0.000000e+00> : vector<64x128xf32>
    %250 = tpu.matmul %247, %249, %cst_158 {dimension_numbers = #tpu.dot_dimension_numbers<[1], [0], [0], [1], [0, 0, 1, 1], [], []>} : vector<64x32xf32>, vector<32x128xf32>, vector<64x128xf32> -> vector<64x128xf32>
    %251 = arith.addf %245, %250 : vector<64x128xf32>
    %c0_159 = arith.constant 0 : index
    %c2_160 = arith.constant 2 : index
    %c0_161 = arith.constant 0 : index
    %252 = vector.load %arg8[%c0_159, %c2_160, %c0_161] : memref<12x12x32xf32, #tpu.memory_space<vmem>>, vector<12x8x32xf32>
    %253 = vector.extract_strided_slice %252 {offsets = [0, 0, 0], sizes = [8, 8, 32], strides = [1, 1, 1]} : vector<12x8x32xf32> to vector<8x8x32xf32>
    %254 = vector.shape_cast %253 : vector<8x8x32xf32> to vector<64x32xf32>
    %c2_162 = arith.constant 2 : index
    %c0_163 = arith.constant 0 : index
    %c0_164 = arith.constant 0 : index
    %255 = vector.load %arg4[%c2_162, %c0_163, %c0_164] : memref<25x32x128xf32, #tpu.memory_space<vmem>>, vector<1x32x128xf32>
    %256 = vector.shape_cast %255 : vector<1x32x128xf32> to vector<32x128xf32>
    %cst_165 = arith.constant dense<0.000000e+00> : vector<64x128xf32>
    %257 = tpu.matmul %254, %256, %cst_165 {dimension_numbers = #tpu.dot_dimension_numbers<[1], [0], [0], [1], [0, 0, 1, 1], [], []>} : vector<64x32xf32>, vector<32x128xf32>, vector<64x128xf32> -> vector<64x128xf32>
    %258 = arith.addf %251, %257 : vector<64x128xf32>
    %259 = vector.extract_strided_slice %252 {offsets = [1, 0, 0], sizes = [8, 8, 32], strides = [1, 1, 1]} : vector<12x8x32xf32> to vector<8x8x32xf32>
    %260 = vector.shape_cast %259 : vector<8x8x32xf32> to vector<64x32xf32>
    %c7_166 = arith.constant 7 : index
    %c0_167 = arith.constant 0 : index
    %c0_168 = arith.constant 0 : index
    %261 = vector.load %arg4[%c7_166, %c0_167, %c0_168] : memref<25x32x128xf32, #tpu.memory_space<vmem>>, vector<1x32x128xf32>
    %262 = vector.shape_cast %261 : vector<1x32x128xf32> to vector<32x128xf32>
    %cst_169 = arith.constant dense<0.000000e+00> : vector<64x128xf32>
    %263 = tpu.matmul %260, %262, %cst_169 {dimension_numbers = #tpu.dot_dimension_numbers<[1], [0], [0], [1], [0, 0, 1, 1], [], []>} : vector<64x32xf32>, vector<32x128xf32>, vector<64x128xf32> -> vector<64x128xf32>
    %264 = arith.addf %258, %263 : vector<64x128xf32>
    %265 = vector.extract_strided_slice %252 {offsets = [2, 0, 0], sizes = [8, 8, 32], strides = [1, 1, 1]} : vector<12x8x32xf32> to vector<8x8x32xf32>
    %266 = vector.shape_cast %265 : vector<8x8x32xf32> to vector<64x32xf32>
    %c12_170 = arith.constant 12 : index
    %c0_171 = arith.constant 0 : index
    %c0_172 = arith.constant 0 : index
    %267 = vector.load %arg4[%c12_170, %c0_171, %c0_172] : memref<25x32x128xf32, #tpu.memory_space<vmem>>, vector<1x32x128xf32>
    %268 = vector.shape_cast %267 : vector<1x32x128xf32> to vector<32x128xf32>
    %cst_173 = arith.constant dense<0.000000e+00> : vector<64x128xf32>
    %269 = tpu.matmul %266, %268, %cst_173 {dimension_numbers = #tpu.dot_dimension_numbers<[1], [0], [0], [1], [0, 0, 1, 1], [], []>} : vector<64x32xf32>, vector<32x128xf32>, vector<64x128xf32> -> vector<64x128xf32>
    %270 = arith.addf %264, %269 : vector<64x128xf32>
    %271 = vector.extract_strided_slice %252 {offsets = [3, 0, 0], sizes = [8, 8, 32], strides = [1, 1, 1]} : vector<12x8x32xf32> to vector<8x8x32xf32>
    %272 = vector.shape_cast %271 : vector<8x8x32xf32> to vector<64x32xf32>
    %c17_174 = arith.constant 17 : index
    %c0_175 = arith.constant 0 : index
    %c0_176 = arith.constant 0 : index
    %273 = vector.load %arg4[%c17_174, %c0_175, %c0_176] : memref<25x32x128xf32, #tpu.memory_space<vmem>>, vector<1x32x128xf32>
    %274 = vector.shape_cast %273 : vector<1x32x128xf32> to vector<32x128xf32>
    %cst_177 = arith.constant dense<0.000000e+00> : vector<64x128xf32>
    %275 = tpu.matmul %272, %274, %cst_177 {dimension_numbers = #tpu.dot_dimension_numbers<[1], [0], [0], [1], [0, 0, 1, 1], [], []>} : vector<64x32xf32>, vector<32x128xf32>, vector<64x128xf32> -> vector<64x128xf32>
    %276 = arith.addf %270, %275 : vector<64x128xf32>
    %277 = vector.extract_strided_slice %252 {offsets = [4, 0, 0], sizes = [8, 8, 32], strides = [1, 1, 1]} : vector<12x8x32xf32> to vector<8x8x32xf32>
    %278 = vector.shape_cast %277 : vector<8x8x32xf32> to vector<64x32xf32>
    %c22_178 = arith.constant 22 : index
    %c0_179 = arith.constant 0 : index
    %c0_180 = arith.constant 0 : index
    %279 = vector.load %arg4[%c22_178, %c0_179, %c0_180] : memref<25x32x128xf32, #tpu.memory_space<vmem>>, vector<1x32x128xf32>
    %280 = vector.shape_cast %279 : vector<1x32x128xf32> to vector<32x128xf32>
    %cst_181 = arith.constant dense<0.000000e+00> : vector<64x128xf32>
    %281 = tpu.matmul %278, %280, %cst_181 {dimension_numbers = #tpu.dot_dimension_numbers<[1], [0], [0], [1], [0, 0, 1, 1], [], []>} : vector<64x32xf32>, vector<32x128xf32>, vector<64x128xf32> -> vector<64x128xf32>
    %282 = arith.addf %276, %281 : vector<64x128xf32>
    %c0_182 = arith.constant 0 : index
    %c3_183 = arith.constant 3 : index
    %c0_184 = arith.constant 0 : index
    %283 = vector.load %arg8[%c0_182, %c3_183, %c0_184] : memref<12x12x32xf32, #tpu.memory_space<vmem>>, vector<12x8x32xf32>
    %284 = vector.extract_strided_slice %283 {offsets = [0, 0, 0], sizes = [8, 8, 32], strides = [1, 1, 1]} : vector<12x8x32xf32> to vector<8x8x32xf32>
    %285 = vector.shape_cast %284 : vector<8x8x32xf32> to vector<64x32xf32>
    %c3_185 = arith.constant 3 : index
    %c0_186 = arith.constant 0 : index
    %c0_187 = arith.constant 0 : index
    %286 = vector.load %arg4[%c3_185, %c0_186, %c0_187] : memref<25x32x128xf32, #tpu.memory_space<vmem>>, vector<1x32x128xf32>
    %287 = vector.shape_cast %286 : vector<1x32x128xf32> to vector<32x128xf32>
    %cst_188 = arith.constant dense<0.000000e+00> : vector<64x128xf32>
    %288 = tpu.matmul %285, %287, %cst_188 {dimension_numbers = #tpu.dot_dimension_numbers<[1], [0], [0], [1], [0, 0, 1, 1], [], []>} : vector<64x32xf32>, vector<32x128xf32>, vector<64x128xf32> -> vector<64x128xf32>
    %289 = arith.addf %282, %288 : vector<64x128xf32>
    %290 = vector.extract_strided_slice %283 {offsets = [1, 0, 0], sizes = [8, 8, 32], strides = [1, 1, 1]} : vector<12x8x32xf32> to vector<8x8x32xf32>
    %291 = vector.shape_cast %290 : vector<8x8x32xf32> to vector<64x32xf32>
    %c8_189 = arith.constant 8 : index
    %c0_190 = arith.constant 0 : index
    %c0_191 = arith.constant 0 : index
    %292 = vector.load %arg4[%c8_189, %c0_190, %c0_191] : memref<25x32x128xf32, #tpu.memory_space<vmem>>, vector<1x32x128xf32>
    %293 = vector.shape_cast %292 : vector<1x32x128xf32> to vector<32x128xf32>
    %cst_192 = arith.constant dense<0.000000e+00> : vector<64x128xf32>
    %294 = tpu.matmul %291, %293, %cst_192 {dimension_numbers = #tpu.dot_dimension_numbers<[1], [0], [0], [1], [0, 0, 1, 1], [], []>} : vector<64x32xf32>, vector<32x128xf32>, vector<64x128xf32> -> vector<64x128xf32>
    %295 = arith.addf %289, %294 : vector<64x128xf32>
    %296 = vector.extract_strided_slice %283 {offsets = [2, 0, 0], sizes = [8, 8, 32], strides = [1, 1, 1]} : vector<12x8x32xf32> to vector<8x8x32xf32>
    %297 = vector.shape_cast %296 : vector<8x8x32xf32> to vector<64x32xf32>
    %c13_193 = arith.constant 13 : index
    %c0_194 = arith.constant 0 : index
    %c0_195 = arith.constant 0 : index
    %298 = vector.load %arg4[%c13_193, %c0_194, %c0_195] : memref<25x32x128xf32, #tpu.memory_space<vmem>>, vector<1x32x128xf32>
    %299 = vector.shape_cast %298 : vector<1x32x128xf32> to vector<32x128xf32>
    %cst_196 = arith.constant dense<0.000000e+00> : vector<64x128xf32>
    %300 = tpu.matmul %297, %299, %cst_196 {dimension_numbers = #tpu.dot_dimension_numbers<[1], [0], [0], [1], [0, 0, 1, 1], [], []>} : vector<64x32xf32>, vector<32x128xf32>, vector<64x128xf32> -> vector<64x128xf32>
    %301 = arith.addf %295, %300 : vector<64x128xf32>
    %302 = vector.extract_strided_slice %283 {offsets = [3, 0, 0], sizes = [8, 8, 32], strides = [1, 1, 1]} : vector<12x8x32xf32> to vector<8x8x32xf32>
    %303 = vector.shape_cast %302 : vector<8x8x32xf32> to vector<64x32xf32>
    %c18_197 = arith.constant 18 : index
    %c0_198 = arith.constant 0 : index
    %c0_199 = arith.constant 0 : index
    %304 = vector.load %arg4[%c18_197, %c0_198, %c0_199] : memref<25x32x128xf32, #tpu.memory_space<vmem>>, vector<1x32x128xf32>
    %305 = vector.shape_cast %304 : vector<1x32x128xf32> to vector<32x128xf32>
    %cst_200 = arith.constant dense<0.000000e+00> : vector<64x128xf32>
    %306 = tpu.matmul %303, %305, %cst_200 {dimension_numbers = #tpu.dot_dimension_numbers<[1], [0], [0], [1], [0, 0, 1, 1], [], []>} : vector<64x32xf32>, vector<32x128xf32>, vector<64x128xf32> -> vector<64x128xf32>
    %307 = arith.addf %301, %306 : vector<64x128xf32>
    %308 = vector.extract_strided_slice %283 {offsets = [4, 0, 0], sizes = [8, 8, 32], strides = [1, 1, 1]} : vector<12x8x32xf32> to vector<8x8x32xf32>
    %309 = vector.shape_cast %308 : vector<8x8x32xf32> to vector<64x32xf32>
    %c23_201 = arith.constant 23 : index
    %c0_202 = arith.constant 0 : index
    %c0_203 = arith.constant 0 : index
    %310 = vector.load %arg4[%c23_201, %c0_202, %c0_203] : memref<25x32x128xf32, #tpu.memory_space<vmem>>, vector<1x32x128xf32>
    %311 = vector.shape_cast %310 : vector<1x32x128xf32> to vector<32x128xf32>
    %cst_204 = arith.constant dense<0.000000e+00> : vector<64x128xf32>
    %312 = tpu.matmul %309, %311, %cst_204 {dimension_numbers = #tpu.dot_dimension_numbers<[1], [0], [0], [1], [0, 0, 1, 1], [], []>} : vector<64x32xf32>, vector<32x128xf32>, vector<64x128xf32> -> vector<64x128xf32>
    %313 = arith.addf %307, %312 : vector<64x128xf32>
    %c0_205 = arith.constant 0 : index
    %c4_206 = arith.constant 4 : index
    %c0_207 = arith.constant 0 : index
    %314 = vector.load %arg8[%c0_205, %c4_206, %c0_207] : memref<12x12x32xf32, #tpu.memory_space<vmem>>, vector<12x8x32xf32>
    %315 = vector.extract_strided_slice %314 {offsets = [0, 0, 0], sizes = [8, 8, 32], strides = [1, 1, 1]} : vector<12x8x32xf32> to vector<8x8x32xf32>
    %316 = vector.shape_cast %315 : vector<8x8x32xf32> to vector<64x32xf32>
    %c4_208 = arith.constant 4 : index
    %c0_209 = arith.constant 0 : index
    %c0_210 = arith.constant 0 : index
    %317 = vector.load %arg4[%c4_208, %c0_209, %c0_210] : memref<25x32x128xf32, #tpu.memory_space<vmem>>, vector<1x32x128xf32>
    %318 = vector.shape_cast %317 : vector<1x32x128xf32> to vector<32x128xf32>
    %cst_211 = arith.constant dense<0.000000e+00> : vector<64x128xf32>
    %319 = tpu.matmul %316, %318, %cst_211 {dimension_numbers = #tpu.dot_dimension_numbers<[1], [0], [0], [1], [0, 0, 1, 1], [], []>} : vector<64x32xf32>, vector<32x128xf32>, vector<64x128xf32> -> vector<64x128xf32>
    %320 = arith.addf %313, %319 : vector<64x128xf32>
    %321 = vector.extract_strided_slice %314 {offsets = [1, 0, 0], sizes = [8, 8, 32], strides = [1, 1, 1]} : vector<12x8x32xf32> to vector<8x8x32xf32>
    %322 = vector.shape_cast %321 : vector<8x8x32xf32> to vector<64x32xf32>
    %c9_212 = arith.constant 9 : index
    %c0_213 = arith.constant 0 : index
    %c0_214 = arith.constant 0 : index
    %323 = vector.load %arg4[%c9_212, %c0_213, %c0_214] : memref<25x32x128xf32, #tpu.memory_space<vmem>>, vector<1x32x128xf32>
    %324 = vector.shape_cast %323 : vector<1x32x128xf32> to vector<32x128xf32>
    %cst_215 = arith.constant dense<0.000000e+00> : vector<64x128xf32>
    %325 = tpu.matmul %322, %324, %cst_215 {dimension_numbers = #tpu.dot_dimension_numbers<[1], [0], [0], [1], [0, 0, 1, 1], [], []>} : vector<64x32xf32>, vector<32x128xf32>, vector<64x128xf32> -> vector<64x128xf32>
    %326 = arith.addf %320, %325 : vector<64x128xf32>
    %327 = vector.extract_strided_slice %314 {offsets = [2, 0, 0], sizes = [8, 8, 32], strides = [1, 1, 1]} : vector<12x8x32xf32> to vector<8x8x32xf32>
    %328 = vector.shape_cast %327 : vector<8x8x32xf32> to vector<64x32xf32>
    %c14_216 = arith.constant 14 : index
    %c0_217 = arith.constant 0 : index
    %c0_218 = arith.constant 0 : index
    %329 = vector.load %arg4[%c14_216, %c0_217, %c0_218] : memref<25x32x128xf32, #tpu.memory_space<vmem>>, vector<1x32x128xf32>
    %330 = vector.shape_cast %329 : vector<1x32x128xf32> to vector<32x128xf32>
    %cst_219 = arith.constant dense<0.000000e+00> : vector<64x128xf32>
    %331 = tpu.matmul %328, %330, %cst_219 {dimension_numbers = #tpu.dot_dimension_numbers<[1], [0], [0], [1], [0, 0, 1, 1], [], []>} : vector<64x32xf32>, vector<32x128xf32>, vector<64x128xf32> -> vector<64x128xf32>
    %332 = arith.addf %326, %331 : vector<64x128xf32>
    %333 = vector.extract_strided_slice %314 {offsets = [3, 0, 0], sizes = [8, 8, 32], strides = [1, 1, 1]} : vector<12x8x32xf32> to vector<8x8x32xf32>
    %334 = vector.shape_cast %333 : vector<8x8x32xf32> to vector<64x32xf32>
    %c19_220 = arith.constant 19 : index
    %c0_221 = arith.constant 0 : index
    %c0_222 = arith.constant 0 : index
    %335 = vector.load %arg4[%c19_220, %c0_221, %c0_222] : memref<25x32x128xf32, #tpu.memory_space<vmem>>, vector<1x32x128xf32>
    %336 = vector.shape_cast %335 : vector<1x32x128xf32> to vector<32x128xf32>
    %cst_223 = arith.constant dense<0.000000e+00> : vector<64x128xf32>
    %337 = tpu.matmul %334, %336, %cst_223 {dimension_numbers = #tpu.dot_dimension_numbers<[1], [0], [0], [1], [0, 0, 1, 1], [], []>} : vector<64x32xf32>, vector<32x128xf32>, vector<64x128xf32> -> vector<64x128xf32>
    %338 = arith.addf %332, %337 : vector<64x128xf32>
    %339 = vector.extract_strided_slice %314 {offsets = [4, 0, 0], sizes = [8, 8, 32], strides = [1, 1, 1]} : vector<12x8x32xf32> to vector<8x8x32xf32>
    %340 = vector.shape_cast %339 : vector<8x8x32xf32> to vector<64x32xf32>
    %c24_224 = arith.constant 24 : index
    %c0_225 = arith.constant 0 : index
    %c0_226 = arith.constant 0 : index
    %341 = vector.load %arg4[%c24_224, %c0_225, %c0_226] : memref<25x32x128xf32, #tpu.memory_space<vmem>>, vector<1x32x128xf32>
    %342 = vector.shape_cast %341 : vector<1x32x128xf32> to vector<32x128xf32>
    %cst_227 = arith.constant dense<0.000000e+00> : vector<64x128xf32>
    %343 = tpu.matmul %340, %342, %cst_227 {dimension_numbers = #tpu.dot_dimension_numbers<[1], [0], [0], [1], [0, 0, 1, 1], [], []>} : vector<64x32xf32>, vector<32x128xf32>, vector<64x128xf32> -> vector<64x128xf32>
    %344 = arith.addf %338, %343 : vector<64x128xf32>
    %cst_228 = arith.constant 0.000000e+00 : f32
    %345 = vector.broadcast %cst_228 : f32 to vector<64x128xf32>
    %346 = arith.maximumf %344, %345 : vector<64x128xf32>
    %c0_229 = arith.constant 0 : index
    %c0_230 = arith.constant 0 : index
    %c0_231 = arith.constant 0 : index
    %347 = vector.load %arg6[%c0_229, %c0_230, %c0_231] : memref<1x64x128xf32, #tpu.memory_space<vmem>>, vector<1x64x128xf32>
    %348 = vector.shape_cast %347 : vector<1x64x128xf32> to vector<64x128xf32>
    %349 = vector.shape_cast %346 : vector<64x128xf32> to vector<1x64x128xf32>
    tpu.vector_store %arg6[%c0_229, %c0_230, %c0_231], %349 {strides = array<i32>} : memref<1x64x128xf32, #tpu.memory_space<vmem>>, vector<1x64x128xf32>,
    return
  }
  func.func @transform_0(%arg0: i32) -> (i32, i32, i32) {
    %c0_i32 = arith.constant 0 : i32
    %c0_i32_0 = arith.constant 0 : i32
    %c0_i32_1 = arith.constant 0 : i32
    return %arg0, %c0_i32, %c0_i32_0 : i32, i32, i32
  }
  func.func @transform_1(%arg0: i32) -> (i32, i32) {
    %c0_i32 = arith.constant 0 : i32
    %c0_i32_0 = arith.constant 0 : i32
    %c0_i32_1 = arith.constant 0 : i32
    return %c0_i32, %c0_i32_0 : i32, i32
  }
  func.func @transform_2(%arg0: i32) -> (i32, i32) {
    %c0_i32 = arith.constant 0 : i32
    %c0_i32_0 = arith.constant 0 : i32
    %c0_i32_1 = arith.constant 0 : i32
    return %c0_i32, %c0_i32_0 : i32, i32
  }
  func.func @transform_3(%arg0: i32) -> (i32, i32, i32) {
    %c0_i32 = arith.constant 0 : i32
    %c0_i32_0 = arith.constant 0 : i32
    %c0_i32_1 = arith.constant 0 : i32
    %c0_i32_2 = arith.constant 0 : i32
    return %c0_i32, %c0_i32_0, %c0_i32_1 : i32, i32, i32
  }
  func.func @transform_4(%arg0: i32) -> (i32, i32) {
    %c0_i32 = arith.constant 0 : i32
    %c0_i32_0 = arith.constant 0 : i32
    %c0_i32_1 = arith.constant 0 : i32
    return %c0_i32, %c0_i32_0 : i32, i32
  }
  func.func @transform_5(%arg0: i32) -> (i32, i32, i32) {
    %c0_i32 = arith.constant 0 : i32
    %c0_i32_0 = arith.constant 0 : i32
    %c0_i32_1 = arith.constant 0 : i32
    return %arg0, %c0_i32, %c0_i32_0 : i32, i32, i32
  }
}

</mosaic_0001>

<bundles_post_ra>
// kernel: model_forward.1
= control target key start
LH: loop header
LB: loop body
LE: loop exit
PB: predicated region body
PF: predicated region fallthrough
CT: control target
= control target key end

     0   :  { %10 = vsyncpa [#allocation5], 0  ;;  %s7334_s18 = smov 0   ;;  %s9493_s0 = inlined_call_operand.vmem [shape: f32[2,256,1], index: 0, kind: input, shape index: {}]   ;;  %s9494_s1 = inlined_call_operand.vmem [shape: f32[25,32], index: 1, kind: input, shape index: {}]   ;;  %s9495_s2 = inlined_call_operand.vmem [shape: f32[1,32], index: 2, kind: input, shape index: {}]   ;;  %s9496_s3 = inlined_call_operand.hbm [shape: f32[25,32,128], index: 3, kind: input, shape index: {}]   ;;  %s9497_s4 = inlined_call_operand.vmem [shape: f32[1,128], index: 4, kind: input, shape index: {}]   ;;  %s9498_s5 = inlined_call_operand.vmem [shape: f32[2,64,128], index: 5, kind: output, shape index: {}]  }
   0x1 LB: > { %s7340_s19 = sadd.s32 4294967295, %s7298_s18   ;;  %p5731_p0 = scmp.ge.s32.totalorder %s7298_s18, 1  ;;  %s7298_s18 = sphi %s7334_s18, %s16_s18  }
   0x2   : > { %p157_p1 = scmp.lt.s32.totalorder %s7298_s18, 3  ;;  %s7300_s20 = smov [#allocation4]  }
   0x3   : > { %s175_s21 = sshll.u32 %s7300_s20, 4  ;;  %p9499_p3 = scmp.eq.s32.totalorder %s7340_s19, 0  ;;  %s176_s21 = int_to_ptr.vmem [resolvable:$true] %s175_s21 }
   0x4   : > { %p7344_p2 = pnand %p5731_p0, %p157_p1  ;;  %s7260_s26 = scalar_lea.hbm %s9496_s3, 12800 }
   0x5   : > { %p7261_p6 = scmp.ne.s32.totalorder %s9496_s3, %s7260_s26  ;;  %p7267_p10 = scmp.lt.u32.totalorder %s7260_s26, %s9496_s3 }
   0x6   : > { %s9524_s22 = scalar_select %p7344_p2, 1, 0 }
   0x7   : > { %p7179_p4 = pneg %p7344_p2 }
   0x9   : > { %p7353_p5 = pnand %p9499_p3, %p7179_p4 }
   0xb   : > { %p7262_p7 = pneg %p7353_p5 }
   0xd   : > { %p7263_p8 = pnand %p7262_p7, %p7261_p6 }
   0xf   : > { %p7264_p9 = pneg %p7263_p8 }
  0x11   : > { %p7269_p11 = pnand %p7267_p10, %p7264_p9 }
  0x13   : > { %7272 = shalt.err (!%p7269_p11)
}
  0x14   : > { %s7273_s6 = scalar_lea.vmem %s176_s21, 12800  ;;  %p7281_p1 = scmp.lt.s32.totalorder %s176_s21, %s176_s21 }
  0x15   : > { %p7274_p12 = scmp.ne.s32.totalorder %s176_s21, %s7273_s6  ;;  %p7282_p4 = scmp.lt.s32.totalorder %s7273_s6, %s7273_s6 }
  0x17   : > { %p7276_p13 = pnand %p7274_p12, %p7262_p7  ;;  %p7283_p3 = por %p7282_p4, %p7281_p1 }
  0x19   : > { %p7277_p0 = pneg %p7276_p13 }
  0x1b   : > { %p7284_p2 = pnand %p7283_p3, %p7277_p0 }
  0x1d   : > { %7287 = shalt.err (!%p7284_p2)
}
  0x1e   : > { %s7301_s7 = smov 128   ;;  %s7302_s8 = smov 8  }
  0x1f   : > { %7182 = dma.hbm_to_vmem [thread:$0]  (!%p7353_p5), %s9496_s3, 12800, %s176_s21, [#allocation5], %s7301_s7, %s7301_s7, %s7302_s8  }
  0x20   : > { %p9526_p6 = scmp.ne.s32.totalorder %s9524_s22, 0 }
  0x22   : > { %202 = sbr.rel (%p9526_p6) target bundleno = 940 (0x3ac), region = 40 }
  0x29   : > { %p9527_p8 = scmp.eq.s32.totalorder %s7340_s19, 0 }
  0x2b   : > { %7293 = dma.done.wait (%p9527_p8), [#allocation5], 12800   ;;  %p9528_p7 = pmov %p9527_p8 }
  0x2c   : > { %p230_p2 = scmp.lt.s32.totalorder %s7340_s19, 1  ;;  %v7303_v0 = vmov 0   ;;  %vm432_vm0 = vcmask 261120   ;;  %v7428_v37 = vld [vmem:[%s9494_s1] ss:$0 sm:$0xff]  ;;  %vm2426_vm1 = vcmask 257024  }
  0x2d   : > { %7295 = vsyncadd (%p9528_p7), [#allocation5], 4294954496  ;;  %7198 = vset.pattern.permute.xlu1 %v7303_v0  ;;  %7197 = vset.pattern.permute.xlu0 %v7303_v0  ;;  %v7433_v38 = vld [vmem:[%s9495_s2] ss:$0 sm:$0xff]  ;;  %v7438_v39 = vld [vmem:[%s9494_s1 + $0x1] ss:$0 sm:$0xff] }
  0x2e   : > { %s9639_s19 = smov (!%p230_p2, %s7340_s19), 1  ;;  %v7446_v46 = vld [vmem:[%s9494_s1 + $0x2] ss:$0 sm:$0xff]  ;;  %v7454_v53 = vld [vmem:[%s9494_s1 + $0x3] ss:$0 sm:$0xff] }
  0x2f   : > { %s5969_s11 = sshll.u32 %s9639_s19, 8  ;;  %v7461_v60 = vld [vmem:[%s9494_s1 + $0x4] ss:$0 sm:$0xff]  ;;  %s5970_s12 = sshll.u32 %s9639_s19, 6 }
  0x30   : > { %s7387_s14 = scalar_lea.vmem %s9493_s0, %s5969_s11  ;;  %s9480_s15 = scalar_lea.vmem %s9498_s5, %s5970_s12 }
  0x31   : > { %v241_v1 = vld [vmem:[%s7387_s14 + $0x8] sm:$0xff]  ;;  %v240_v2 = vld [vmem:[%s7387_s14] sm:$0xff]  ;;  %v242_v4 = vld [vmem:[%s7387_s14 + $0x10] sm:$0xff] }
  0x32   : > { %279 = vperm.xlu1 %7198, %v241_v1   ;;  %274 = vperm.xlu0 %7197, %v240_v2   ;;  %v244_v3 = vld [vmem:[%s7387_s14 + $0x20] sm:$0xff]  ;;  %v243_v5 = vld [vmem:[%s7387_s14 + $0x18] sm:$0xff]  ;;  %v245_v6 = vld [vmem:[%s7387_s14 + $0x28] sm:$0xff] }
  0x33   : > { %v247_v7 = vld [vmem:[%s7387_s14 + $0x38] sm:$0xff]  ;;  %v246_v8 = vld [vmem:[%s7387_s14 + $0x30] sm:$0xff]  ;;  %v249_v9 = vld [vmem:[%s7387_s14 + $0x48] sm:$0xff] }
  0x34   : > { %v248_v10 = vld [vmem:[%s7387_s14 + $0x40] sm:$0xff]  ;;  %v251_v11 = vld [vmem:[%s7387_s14 + $0x58] sm:$0xff]  ;;  %v250_v12 = vld [vmem:[%s7387_s14 + $0x50] sm:$0xff] }
  0x35   : > { %v254_v13 = vld [vmem:[%s7387_s14 + $0x70] sm:$0xff]  ;;  %v252_v14 = vld [vmem:[%s7387_s14 + $0x60] sm:$0xff]  ;;  %v255_v15 = vld [vmem:[%s7387_s14 + $0x78] sm:$0xff] }
  0x36   : > { %294 = vperm.xlu1 %7198, %v244_v3   ;;  %284 = vperm.xlu0 %7197, %v242_v4   ;;  %v253_v16 = vld [vmem:[%s7387_s14 + $0x68] sm:$0xff]  ;;  %v256_v18 = vld [vmem:[%s7387_s14 + $0x80] sm:$0xff]  ;;  %v259_v19 = vld [vmem:[%s7387_s14 + $0x98] sm:$0xff] }
  0x37   : > { %v257_v17 = vld [vmem:[%s7387_s14 + $0x88] sm:$0xff]  ;;  %v258_v20 = vld [vmem:[%s7387_s14 + $0x90] sm:$0xff]  ;;  %v260_v22 = vld [vmem:[%s7387_s14 + $0xa0] sm:$0xff] }
  0x38   : > { %v261_v21 = vld [vmem:[%s7387_s14 + $0xa8] sm:$0xff]  ;;  %v263_v23 = vld [vmem:[%s7387_s14 + $0xb8] sm:$0xff]  ;;  %v262_v24 = vld [vmem:[%s7387_s14 + $0xb0] sm:$0xff] }
  0x39   : > { %v265_v25 = vld [vmem:[%s7387_s14 + $0xc8] sm:$0xff]  ;;  %v264_v26 = vld [vmem:[%s7387_s14 + $0xc0] sm:$0xff]  ;;  %v267_v27 = vld [vmem:[%s7387_s14 + $0xd8] sm:$0xff] }
  0x3a   : > { %289 = vperm.xlu1 %7198, %v243_v5   ;;  %299 = vperm.xlu0 %7197, %v245_v6   ;;  %v266_v28 = vld [vmem:[%s7387_s14 + $0xd0] sm:$0xff]  ;;  %v269_v29 = vld [vmem:[%s7387_s14 + $0xe8] sm:$0xff]  ;;  %v268_v30 = vld [vmem:[%s7387_s14 + $0xe0] sm:$0xff] }
  0x3b   : > { %v271_v31 = vld [vmem:[%s7387_s14 + $0xf8] sm:$0xff]  ;;  %v270_v32 = vld [vmem:[%s7387_s14 + $0xf0] sm:$0xff] }
  0x3e   : > { %309 = vperm.xlu1 %7198, %v247_v7   ;;  %304 = vperm.xlu0 %7197, %v246_v8  }
  0x42   : > { %319 = vperm.xlu1 %7198, %v249_v9   ;;  %314 = vperm.xlu0 %7197, %v248_v10  }
  0x46   : > { %329 = vperm.xlu1 %7198, %v251_v11   ;;  %324 = vperm.xlu0 %7197, %v250_v12  }
  0x4a   : > { %344 = vperm.xlu1 %7198, %v254_v13   ;;  %334 = vperm.xlu0 %7197, %v252_v14  }
  0x4e   : > { %349 = vperm.xlu1 %7198, %v255_v15   ;;  %339 = vperm.xlu0 %7197, %v253_v16   ;;  %v7474_v16 = vld [vmem:[%s9494_s1 + $0x5] ss:$0 sm:$0xff] }
  0x52   : > { %359 = vperm.xlu1 %7198, %v257_v17   ;;  %354 = vperm.xlu0 %7197, %v256_v18  }
  0x56   : > { %369 = vperm.xlu1 %7198, %v259_v19   ;;  %364 = vperm.xlu0 %7197, %v258_v20  }
  0x5a   : > { %379 = vperm.xlu1 %7198, %v261_v21   ;;  %374 = vperm.xlu0 %7197, %v260_v22  }
  0x5e   : > { %389 = vperm.xlu1 %7198, %v263_v23   ;;  %384 = vperm.xlu0 %7197, %v262_v24  }
  0x62   : > { %399 = vperm.xlu1 %7198, %v265_v25   ;;  %394 = vperm.xlu0 %7197, %v264_v26  }
  0x66   : > { %409 = vperm.xlu1 %7198, %v267_v27   ;;  %404 = vperm.xlu0 %7197, %v266_v28   ;;  %v7488_v28 = vld [vmem:[%s9494_s1 + $0x6] ss:$0 sm:$0xff] }
  0x6a   : > { %419 = vperm.xlu1 %7198, %v269_v29   ;;  %414 = vperm.xlu0 %7197, %v268_v30  }
  0x6e   : > { %429 = vperm.xlu1 %7198, %v271_v31   ;;  %424 = vperm.xlu0 %7197, %v270_v32  }
  0xb1   : > { %v280_v33 = vpop.permute.xlu1 %279  ;;  %v275_v34 = vpop.permute.xlu0 %274 }
  0xb2   : > { %434 = vst.msk [vmem:[#allocation2 + $0x8] sm:$0xff] %vm432_vm0, %v280_v33  ;;  %433 = vst.msk [vmem:[#allocation2] sm:$0xff] %vm432_vm0, %v275_v34 }
  0xb5   : > { %v295_v35 = vpop.permute.xlu1 %294  ;;  %v285_v36 = vpop.permute.xlu0 %284 }
  0xb6   : > { %437 = vst.msk [vmem:[#allocation2 + $0x20] sm:$0xff] %vm432_vm0, %v295_v35  ;;  %435 = vst.msk [vmem:[#allocation2 + $0x10] sm:$0xff] %vm432_vm0, %v285_v36 }
  0xb9   : > { %v473_v40 = vld [vmem:[#allocation2 + $0x8] sm:$0xf]  ;;  %v290_v42 = vpop.permute.xlu1 %289  ;;  %v300_v43 = vpop.permute.xlu0 %299  ;;  %v472_v45 = vld [vmem:[#allocation2] sm:$0xff]  ;;  %v781_v63 = vld [vmem:[#allocation2 + $0xc] sm:$0xf] }
  0xba   : > { %v550_v41 = vld [vmem:[#allocation2 + $0x9] sm:$0xf]  ;;  %v502_v44 = vmul.f32 %v7428_v37, %v473_v40  ;;  %436 = vst.msk [vmem:[#allocation2 + $0x18] sm:$0xff] %vm432_vm0, %v290_v42  ;;  %438 = vst.msk [vmem:[#allocation2 + $0x28] sm:$0xff] %vm432_vm0, %v300_v43  ;;  %v501_v48 = vmul.f32 %v7428_v37, %v472_v45  ;;  %v549_v49 = vld [vmem:[#allocation2 + $0x1] sm:$0xff]  ;;  %v810_v7 = vmul.f32 %v7461_v60, %v781_v63 }
  0xbb   : > { %v627_v47 = vld [vmem:[#allocation2 + $0xa] sm:$0xf]  ;;  %v579_v51 = vmul.f32 %v7438_v39, %v550_v41  ;;  %v626_v52 = vld [vmem:[#allocation2 + $0x2] sm:$0xff]  ;;  %v578_v56 = vmul.f32 %v7438_v39, %v549_v49 }
  0xbc   : > { %v526_v50 = vadd.f32 %v7433_v38, %v502_v44  ;;  %v704_v54 = vld [vmem:[#allocation2 + $0xb] sm:$0xf]  ;;  %v525_v55 = vadd.f32 %v7433_v38, %v501_v48  ;;  %v656_v62 = vmul.f32 %v7446_v46, %v627_v47  ;;  %v703_v0 = vld [vmem:[#allocation2 + $0x3] sm:$0xff]  ;;  %v655_v2 = vmul.f32 %v7446_v46, %v626_v52 }
  0xbd   : > { %v474_v57 = vld [vmem:[#allocation2 + $0x10] sm:$0xff]  ;;  %v310_v58 = vpop.permute.xlu1 %309  ;;  %v305_v59 = vpop.permute.xlu0 %304  ;;  %v733_v5 = vmul.f32 %v7454_v53, %v704_v54  ;;  %v780_v6 = vld [vmem:[#allocation2 + $0x4] sm:$0xff]  ;;  %v732_v9 = vmul.f32 %v7454_v53, %v703_v0 }
  0xbe   : > { %v603_v61 = vadd.f32 %v579_v51, %v526_v50  ;;  %440 = vst.msk [vmem:[#allocation2 + $0x38] sm:$0xff] %vm432_vm0, %v310_v58  ;;  %439 = vst.msk [vmem:[#allocation2 + $0x30] sm:$0xff] %vm432_vm0, %v305_v59  ;;  %v602_v1 = vadd.f32 %v578_v56, %v525_v55  ;;  %v503_v3 = vmul.f32 %v7428_v37, %v474_v57  ;;  %v7476_v17 = vld [vmem:[#allocation2 + $0x20] sm:$0xff]  ;;  %v7512_v58 = vld [vmem:[%s9494_s1 + $0x8] ss:$0 sm:$0xff] }
  0xbf   : > { %v809_v23 = vmul.f32 %v7461_v60, %v780_v6  ;;  %v505_v35 = vmul.f32 %v7428_v37, %v7476_v17  ;;  %v887_v36 = vmul.f32 %v7474_v16, %v474_v57  ;;  %v7498_v40 = vld [vmem:[%s9494_s1 + $0x7] ss:$0 sm:$0xff] }
  0xc0   : > { %v680_v4 = vadd.f32 %v656_v62, %v603_v61  ;;  %v679_v8 = vadd.f32 %v655_v2, %v602_v1  ;;  %v527_v18 = vadd.f32 %v7433_v38, %v503_v3 }
  0xc1   : > { %v475_v10 = vld [vmem:[#allocation2 + $0x18] sm:$0xf]  ;;  %v320_v13 = vpop.permute.xlu1 %319  ;;  %v315_v14 = vpop.permute.xlu0 %314  ;;  %v7507_v57 = vld [vmem:[#allocation2 + $0x21] sm:$0xff] }
  0xc2   : > { %v551_v11 = vld [vmem:[#allocation2 + $0x11] sm:$0xff]  ;;  %v552_v12 = vld [vmem:[#allocation2 + $0x19] sm:$0xf]  ;;  %v757_v15 = vadd.f32 %v733_v5, %v680_v4  ;;  %v504_v19 = vmul.f32 %v7428_v37, %v475_v10  ;;  %442 = vst.msk [vmem:[#allocation2 + $0x48] sm:$0xff] %vm432_vm0, %v320_v13  ;;  %441 = vst.msk [vmem:[#allocation2 + $0x40] sm:$0xff] %vm432_vm0, %v315_v14  ;;  %v756_v22 = vadd.f32 %v732_v9, %v679_v8 }
  0xc3   : > { %v580_v20 = vmul.f32 %v7438_v39, %v551_v11  ;;  %v628_v21 = vld [vmem:[#allocation2 + $0x12] sm:$0xff]  ;;  %v581_v24 = vmul.f32 %v7438_v39, %v552_v12  ;;  %v629_v25 = vld [vmem:[#allocation2 + $0x1a] sm:$0xf]  ;;  %v964_v55 = vmul.f32 %v7488_v28, %v551_v11  ;;  %v477_v63 = vld [vmem:[#allocation2 + $0x28] sm:$0xf]  ;;  %v582_v11 = vmul.f32 %v7438_v39, %v7507_v57 }
  0xc4   : > { %v705_v26 = vld [vmem:[#allocation2 + $0x13] sm:$0xff]  ;;  %v834_v27 = vadd.f32 %v810_v7, %v757_v15  ;;  %v528_v29 = vadd.f32 %v7433_v38, %v504_v19  ;;  %v657_v31 = vmul.f32 %v7446_v46, %v628_v21  ;;  %v833_v34 = vadd.f32 %v809_v23, %v756_v22  ;;  %v706_v52 = vld [vmem:[#allocation2 + $0x1b] sm:$0xf]  ;;  %v7521_v8 = vld [vmem:[%s9494_s1 + $0x9] ss:$0 sm:$0xff] }
  0xc5   : > { %v604_v30 = vadd.f32 %v580_v20, %v527_v18  ;;  %v859_v32 = vld [vmem:[#allocation2 + $0x18] sm:$0xf]  ;;  %v330_v43 = vpop.permute.xlu1 %329  ;;  %v325_v44 = vpop.permute.xlu0 %324  ;;  %v658_v47 = vmul.f32 %v7446_v46, %v629_v25  ;;  %v734_v49 = vmul.f32 %v7454_v53, %v705_v26  ;;  %v1041_v62 = vmul.f32 %v7498_v40, %v628_v21  ;;  %v7531_v12 = vld [vmem:[%s9494_s1 + $0xa] ss:$0 sm:$0xff]  ;;  %v783_v20 = vld [vmem:[#allocation2 + $0x1c] sm:$0xf] }
  0xc6   : > { %v936_v33 = vld [vmem:[#allocation2 + $0x19] sm:$0xf]  ;;  %v888_v42 = vmul.f32 %v7474_v16, %v859_v32  ;;  %v605_v45 = vadd.f32 %v581_v24, %v528_v29  ;;  %444 = vst.msk [vmem:[#allocation2 + $0x58] sm:$0xff] %vm432_vm0, %v330_v43  ;;  %443 = vst.msk [vmem:[#allocation2 + $0x50] sm:$0xff] %vm432_vm0, %v325_v44  ;;  %v911_v51 = vadd.f32 %v887_v36, %v833_v34  ;;  %v630_v22 = vld [vmem:[#allocation2 + $0x22] sm:$0xff] }
  0xc7   : > { %v782_v41 = vld [vmem:[#allocation2 + $0x14] sm:$0xff]  ;;  %v681_v48 = vadd.f32 %v657_v31, %v604_v30  ;;  %v965_v56 = vmul.f32 %v7488_v28, %v936_v33  ;;  %v529_v7 = vadd.f32 %v7433_v38, %v505_v35  ;;  %v735_v9 = vmul.f32 %v7454_v53, %v706_v52  ;;  %v1167_v25 = vld [vmem:[#allocation2 + $0x1c] sm:$0xf]  ;;  %v554_v34 = vld [vmem:[#allocation2 + $0x29] sm:$0xf] }
  0xc8   : > { %v1013_v50 = vld [vmem:[#allocation2 + $0x1a] sm:$0xf]  ;;  %v912_v54 = vadd.f32 %v888_v42, %v834_v27  ;;  %v811_v61 = vmul.f32 %v7461_v60, %v782_v41  ;;  %v682_v0 = vadd.f32 %v658_v47, %v605_v45  ;;  %v988_v1 = vadd.f32 %v964_v55, %v911_v51  ;;  %v707_v44 = vld [vmem:[#allocation2 + $0x23] sm:$0xff] }
  0xc9   : > { %v758_v59 = vadd.f32 %v734_v49, %v681_v48  ;;  %v1042_v3 = vmul.f32 %v7498_v40, %v1013_v50  ;;  %v1090_v4 = vld [vmem:[#allocation2 + $0x1b] sm:$0xf]  ;;  %v345_v5 = vpop.permute.xlu1 %344  ;;  %v335_v6 = vpop.permute.xlu0 %334  ;;  %v1118_v15 = vmul.f32 %v7512_v58, %v705_v26  ;;  %v506_v18 = vmul.f32 %v7428_v37, %v477_v63  ;;  %v861_v45 = vld [vmem:[#allocation2 + $0x28] sm:$0xf]  ;;  %v7561_v63 = vld [vmem:[%s9494_s1 + $0xc] ss:$0 sm:$0xff] }
  0xca   : > { %v989_v2 = vadd.f32 %v965_v56, %v912_v54  ;;  %447 = vst.msk [vmem:[#allocation2 + $0x70] sm:$0xff] %vm432_vm0, %v345_v5  ;;  %445 = vst.msk [vmem:[#allocation2 + $0x60] sm:$0xff] %vm432_vm0, %v335_v6  ;;  %v1065_v13 = vadd.f32 %v1041_v62, %v988_v1  ;;  %v889_v19 = vmul.f32 %v7474_v16, %v7476_v17  ;;  %v7552_v49 = vld [vmem:[%s9494_s1 + $0xb] ss:$0 sm:$0xff] }
  0xcb   : > { %v835_v10 = vadd.f32 %v811_v61, %v758_v59  ;;  %v1119_v21 = vmul.f32 %v7512_v58, %v1090_v4  ;;  %v759_v23 = vadd.f32 %v735_v9, %v682_v0  ;;  %v1195_v27 = vmul.f32 %v7521_v8, %v782_v41  ;;  %v1245_v52 = vld [vmem:[#allocation2 + $0x28] sm:$0xf] }
  0xcc   : > { %v1066_v14 = vadd.f32 %v1042_v3, %v989_v2  ;;  %v1142_v24 = vadd.f32 %v1118_v15, %v1065_v13  ;;  %v606_v29 = vadd.f32 %v582_v11, %v529_v7  ;;  %v1273_v26 = vmul.f32 %v7531_v12, %v7476_v17  ;;  %v631_v59 = vld [vmem:[#allocation2 + $0x2a] sm:$0xf] }
  0xcd   : > { %v350_v30 = vpop.permute.xlu1 %349  ;;  %v340_v31 = vpop.permute.xlu0 %339  ;;  %v913_v33 = vadd.f32 %v889_v19, %v835_v10  ;;  %v812_v35 = vmul.f32 %v7461_v60, %v783_v20  ;;  %v530_v42 = vadd.f32 %v7433_v38, %v506_v18  ;;  %v659_v41 = vmul.f32 %v7446_v46, %v630_v22  ;;  %v708_v1 = vld [vmem:[#allocation2 + $0x2b] sm:$0xf]  ;;  %v7575_v19 = vld [vmem:[#allocation2 + $0x30] sm:$0xff] }
  0xce   : > { %v1143_v32 = vadd.f32 %v1119_v21, %v1066_v14  ;;  %448 = vst.msk [vmem:[#allocation2 + $0x78] sm:$0xff] %vm432_vm0, %v350_v30  ;;  %446 = vst.msk [vmem:[#allocation2 + $0x68] sm:$0xff] %vm432_vm0, %v340_v31  ;;  %v1219_v36 = vadd.f32 %v1195_v27, %v1142_v24  ;;  %v1196_v43 = vmul.f32 %v7521_v8, %v1167_v25  ;;  %v784_v4 = vld [vmem:[#allocation2 + $0x24] sm:$0xff]  ;;  %v7571_v10 = vld [vmem:[%s9494_s1 + $0xd] ss:$0 sm:$0xff] }
  0xcf   : > { %v966_v17 = vmul.f32 %v7488_v28, %v7507_v57  ;;  %v836_v47 = vadd.f32 %v812_v35, %v759_v23  ;;  %v583_v50 = vmul.f32 %v7438_v39, %v554_v34  ;;  %v683_v51 = vadd.f32 %v659_v41, %v606_v29  ;;  %v938_v5 = vld [vmem:[#allocation2 + $0x29] sm:$0xf] }
  0xd0   : > { %v1297_v48 = vadd.f32 %v1273_v26, %v1219_v36  ;;  %v1220_v56 = vadd.f32 %v1196_v43, %v1143_v32  ;;  %v1043_v62 = vmul.f32 %v7498_v40, %v630_v22  ;;  %v736_v2 = vmul.f32 %v7454_v53, %v707_v44  ;;  %v1322_v18 = vld [vmem:[#allocation2 + $0x29] sm:$0xf]  ;;  %v555_v32 = vld [vmem:[#allocation2 + $0x31] sm:$0xff] }
  0xd1   : > { %v360_v54 = vpop.permute.xlu1 %359  ;;  %v355_v55 = vpop.permute.xlu0 %354  ;;  %v990_v61 = vadd.f32 %v966_v17, %v913_v33  ;;  %v607_v0 = vadd.f32 %v583_v50, %v530_v42  ;;  %v890_v3 = vmul.f32 %v7474_v16, %v861_v45  ;;  %v1274_v7 = vmul.f32 %v7531_v12, %v1245_v52  ;;  %v1015_v33 = vld [vmem:[#allocation2 + $0x2a] sm:$0xf] }
  0xd2   : > { %450 = vst.msk [vmem:[#allocation2 + $0x88] sm:$0xff] %vm432_vm0, %v360_v54  ;;  %449 = vst.msk [vmem:[#allocation2 + $0x80] sm:$0xff] %vm432_vm0, %v355_v55  ;;  %v1350_v9 = vmul.f32 %v7552_v49, %v7507_v57  ;;  %v660_v11 = vmul.f32 %v7446_v46, %v631_v59  ;;  %v760_v13 = vadd.f32 %v736_v2, %v683_v51  ;;  %v7580_v57 = vld [vmem:[%s9494_s1 + $0xe] ss:$0 sm:$0xff]  ;;  %v1399_v17 = vld [vmem:[#allocation2 + $0x2a] sm:$0xf] }
  0xd3   : > { %v1067_v6 = vadd.f32 %v1043_v62, %v990_v61  ;;  %v914_v14 = vadd.f32 %v890_v3, %v836_v47  ;;  %v1120_v15 = vmul.f32 %v7512_v58, %v707_v44  ;;  %v7583_v23 = vmul.f32 %v7454_v53, %v708_v1  ;;  %v1092_v34 = vld [vmem:[#allocation2 + $0x2b] sm:$0xf]  ;;  %v709_v62 = vld [vmem:[#allocation2 + $0x33] sm:$0xff]  ;;  %v7609_v1 = vld [vmem:[%s9494_s1 + $0xf] ss:$0 sm:$0xff] }
  0xd4   : > { %v1298_v24 = vadd.f32 %v1274_v7, %v1220_v56  ;;  %v1374_v25 = vadd.f32 %v1350_v9, %v1297_v48  ;;  %v1427_v27 = vmul.f32 %v7561_v63, %v630_v22  ;;  %v7588_v29 = vadd.f32 %v660_v11, %v607_v0  ;;  %v632_v48 = vld [vmem:[#allocation2 + $0x32] sm:$0xff]  ;;  %v1476_v7 = vld [vmem:[#allocation2 + $0x2b] sm:$0xf] }
  0xd5   : > { %v370_v20 = vpop.permute.xlu1 %369  ;;  %v365_v21 = vpop.permute.xlu0 %364  ;;  %v813_v30 = vmul.f32 %v7461_v60, %v784_v4  ;;  %v967_v31 = vmul.f32 %v7488_v28, %v938_v5  ;;  %v1144_v26 = vadd.f32 %v1120_v15, %v1067_v6  ;;  %v1351_v35 = vmul.f32 %v7552_v49, %v1322_v18  ;;  %v7613_v9 = vld [vmem:[#allocation2 + $0x34] sm:$0xff] }
  0xd6   : > { %452 = vst.msk [vmem:[#allocation2 + $0x98] sm:$0xff] %vm432_vm0, %v370_v20  ;;  %451 = vst.msk [vmem:[#allocation2 + $0x90] sm:$0xff] %vm432_vm0, %v365_v21  ;;  %v1451_v36 = vadd.f32 %v1427_v27, %v1374_v25  ;;  %v1504_v42 = vmul.f32 %v7571_v10, %v707_v44  ;;  %v507_v22 = vmul.f32 %v7428_v37, %v7575_v19  ;;  %v7621_v20 = vld [vmem:[%s9494_s1 + $0x10] ss:$0 sm:$0xff] }
  0xd7   : > { %v837_v41 = vadd.f32 %v813_v30, %v760_v13  ;;  %v991_v43 = vadd.f32 %v967_v31, %v914_v14  ;;  %v1197_v45 = vmul.f32 %v7521_v8, %v784_v4  ;;  %v1581_v47 = vmul.f32 %v7580_v57, %v784_v4 }
  0xd8   : > { %v1375_v52 = vadd.f32 %v1351_v35, %v1298_v24  ;;  %v1528_v54 = vadd.f32 %v1504_v42, %v1451_v36  ;;  %v531_v55 = vadd.f32 %v7433_v38, %v507_v22  ;;  %v584_v56 = vmul.f32 %v7438_v39, %v555_v32 }
  0xd9   : > { %v380_v50 = vpop.permute.xlu1 %379  ;;  %v375_v51 = vpop.permute.xlu0 %374  ;;  %v1044_v44 = vmul.f32 %v7498_v40, %v1015_v33  ;;  %v1121_v59 = vmul.f32 %v7512_v58, %v1092_v34  ;;  %v1221_v61 = vadd.f32 %v1197_v45, %v1144_v26  ;;  %v891_v0 = vmul.f32 %v7474_v16, %v7575_v19  ;;  %v7633_v34 = vld [vmem:[%s9494_s1 + $0x11] ss:$0 sm:$0xff]  ;;  %v1553_v45 = vld [vmem:[#allocation2 + $0x2c] sm:$0xf] }
  0xda   : > { %454 = vst.msk [vmem:[#allocation2 + $0xa8] sm:$0xff] %vm432_vm0, %v380_v50  ;;  %453 = vst.msk [vmem:[#allocation2 + $0xa0] sm:$0xff] %vm432_vm0, %v375_v51  ;;  %v1428_v2 = vmul.f32 %v7561_v63, %v1399_v17  ;;  %v1605_v3 = vadd.f32 %v1581_v47, %v1528_v54  ;;  %v608_v4 = vadd.f32 %v584_v56, %v531_v55  ;;  %v7643_v54 = vld [vmem:[%s9494_s1 + $0x12] ss:$0 sm:$0xff] }
  0xdb   : > { %v661_v5 = vmul.f32 %v7446_v46, %v632_v48  ;;  %v1068_v6 = vadd.f32 %v1044_v44, %v991_v43  ;;  %v915_v11 = vadd.f32 %v891_v0, %v837_v41  ;;  %v968_v13 = vmul.f32 %v7488_v28, %v555_v32  ;;  %v785_v41 = vld [vmem:[#allocation2 + $0x2c] sm:$0xf]  ;;  %9529 = vst [vmem:[#allocation7_spill] sm:$0xff] %v7643_v54 }
  0xdc   : > { %v1275_v14 = vmul.f32 %v7531_v12, %v7575_v19  ;;  %v1452_v21 = vadd.f32 %v1428_v2, %v1375_v52  ;;  %v738_v25 = vmul.f32 %v7454_v53, %v709_v62  ;;  %v1045_v27 = vmul.f32 %v7498_v40, %v632_v48  ;;  %v1169_v43 = vld [vmem:[#allocation2 + $0x2c] sm:$0xf] }
  0xdd   : > { %v390_v15 = vpop.permute.xlu1 %389  ;;  %v385_v18 = vpop.permute.xlu0 %384  ;;  %v685_v24 = vadd.f32 %v661_v5, %v608_v4  ;;  %v992_v30 = vadd.f32 %v968_v13, %v915_v11  ;;  %v1352_v26 = vmul.f32 %v7552_v49, %v555_v32  ;;  %v1659_v33 = vmul.f32 %v7609_v1, %v7575_v19  ;;  %v7654_v4 = vld [vmem:[%s9494_s1 + $0x13] ss:$0 sm:$0xff]  ;;  %v863_v5 = vld [vmem:[#allocation2 + $0x38] sm:$0xf] }
  0xde   : > { %456 = vst.msk [vmem:[#allocation2 + $0xb8] sm:$0xff] %vm432_vm0, %v390_v15  ;;  %455 = vst.msk [vmem:[#allocation2 + $0xb0] sm:$0xff] %vm432_vm0, %v385_v18  ;;  %v1299_v31 = vadd.f32 %v1275_v14, %v1221_v61  ;;  %v1505_v35 = vmul.f32 %v7571_v10, %v1476_v7  ;;  %v815_v42 = vmul.f32 %v7461_v60, %v7613_v9  ;;  %v1017_v7 = vld [vmem:[#allocation2 + $0x3a] sm:$0xf]  ;;  %v480_v15 = vld [vmem:[#allocation2 + $0x40] sm:$0xff] }
  0xdf   : > { %v762_v36 = vadd.f32 %v738_v25, %v685_v24  ;;  %v1429_v22 = vmul.f32 %v7561_v63, %v632_v48  ;;  %v1069_v17 = vadd.f32 %v1045_v27, %v992_v30  ;;  %v1683_v50 = vadd.f32 %v1659_v33, %v1605_v3  ;;  %v1094_v25 = vld [vmem:[#allocation2 + $0x3b] sm:$0xf] }
  0xe0   : > { %v1376_v47 = vadd.f32 %v1352_v26, %v1299_v31  ;;  %v1736_v19 = vmul.f32 %v7621_v20, %v555_v32  ;;  %v761_v55 = vadd.f32 %v7583_v23, %v7588_v29  ;;  %v1145_v56 = vadd.f32 %v1121_v59, %v1068_v6  ;;  %v940_v6 = vld [vmem:[#allocation2 + $0x39] sm:$0xf] }
  0xe1   : > { %v400_v51 = vpop.permute.xlu1 %399  ;;  %v395_v52 = vpop.permute.xlu0 %394  ;;  %v1529_v44 = vadd.f32 %v1505_v35, %v1452_v21  ;;  %v839_v61 = vadd.f32 %v815_v42, %v762_v36  ;;  %v1122_v0 = vmul.f32 %v7512_v58, %v709_v62  ;;  %v1813_v3 = vmul.f32 %v7633_v34, %v632_v48  ;;  %v1171_v27 = vld [vmem:[#allocation2 + $0x3c] sm:$0xf]  ;;  %v1247_v31 = vld [vmem:[#allocation2 + $0x38] sm:$0xf]  ;;  %v557_v36 = vld [vmem:[#allocation2 + $0x41] sm:$0xff] }
  0xe2   : > { %458 = vst.msk [vmem:[#allocation2 + $0xc8] sm:$0xff] %vm432_vm0, %v400_v51  ;;  %457 = vst.msk [vmem:[#allocation2 + $0xc0] sm:$0xff] %vm432_vm0, %v395_v52  ;;  %v1453_v32 = vadd.f32 %v1429_v22, %v1376_v47  ;;  %v1760_v2 = vadd.f32 %v1736_v19, %v1683_v50  ;;  %v814_v23 = vmul.f32 %v7461_v60, %v785_v41  ;;  %v1324_v42 = vld [vmem:[#allocation2 + $0x39] sm:$0xf] }
  0xe3   : > { %v1198_v29 = vmul.f32 %v7521_v8, %v1169_v43  ;;  %v1582_v59 = vmul.f32 %v7580_v57, %v1553_v45  ;;  %v1146_v11 = vadd.f32 %v1122_v0, %v1069_v17  ;;  %v1506_v13 = vmul.f32 %v7571_v10, %v709_v62  ;;  %v1401_v22 = vld [vmem:[#allocation2 + $0x3a] sm:$0xf] }
  0xe4   : > { %v1837_v14 = vadd.f32 %v1813_v3, %v1760_v2  ;;  %v1890_v48 = vmul.f32 %v7643_v54, %v709_v62  ;;  %v7661_v18 = vadd.f32 %v814_v23, %v761_v55  ;;  %v1199_v30 = vmul.f32 %v7521_v8, %v7613_v9  ;;  %v1478_v47 = vld [vmem:[#allocation2 + $0x3b] sm:$0xf] }
  0xe5   : > { %v7663_v21 = vadd.f32 %v1198_v29, %v1145_v56  ;;  %v7665_v24 = vadd.f32 %v1582_v59, %v1529_v44  ;;  %v1530_v26 = vadd.f32 %v1506_v13, %v1453_v32  ;;  %v1583_v33 = vmul.f32 %v7580_v57, %v7613_v9  ;;  %v1555_v52 = vld [vmem:[#allocation2 + $0x3c] sm:$0xf]  ;;  %v1631_v32 = vld [vmem:[#allocation2 + $0x38] sm:$0xf]  ;;  %v634_v29 = vld [vmem:[#allocation2 + $0x42] sm:$0xff] }
  0xe6   : > { %v1914_v35 = vadd.f32 %v1890_v48, %v1837_v14  ;;  %v1967_v62 = vmul.f32 %v7654_v4, %v7613_v9  ;;  %v7674_v41 = vmul.f32 %v7474_v16, %v863_v5  ;;  %v7677_v43 = vmul.f32 %v7488_v28, %v940_v6  ;;  %v7706_v6 = vld [vmem:[%s9494_s1 + $0x14] ss:$0 sm:$0xff]  ;;  %v711_v48 = vld [vmem:[#allocation2 + $0x43] sm:$0xff] }
  0xe7   : > { %v7680_v45 = vmul.f32 %v7498_v40, %v1017_v7  ;;  %v509_v17 = vmul.f32 %v7428_v37, %v480_v15  ;;  %v1223_v50 = vadd.f32 %v1199_v30, %v1146_v11  ;;  %v7684_v51 = vmul.f32 %v7512_v58, %v1094_v25 }
  0xe8   : > { %v1991_v19 = vadd.f32 %v1967_v62, %v1914_v35  ;;  %v7687_v9 = vmul.f32 %v7521_v8, %v1171_v27  ;;  %v1276_v55 = vmul.f32 %v7531_v12, %v1247_v31  ;;  %v586_v44 = vmul.f32 %v7438_v39, %v557_v36  ;;  %v410_v62 = vpop.permute.xlu1 %409 }
  0xe9   : > { %v533_v56 = vadd.f32 %v7433_v38, %v509_v17  ;;  %v893_v0 = vmul.f32 %v7474_v16, %v480_v15  ;;  %v1607_v2 = vadd.f32 %v1583_v33, %v1530_v26  ;;  %v7694_v3 = vmul.f32 %v7552_v49, %v1324_v42  ;;  %v7718_v26 = vld [vmem:[%s9494_s1 + $0x15] ss:$0 sm:$0xff]  ;;  %v405_v42 = vpop.permute.xlu0 %404  ;;  %v788_v17 = vld [vmem:[#allocation2 + $0x44] sm:$0xff]  ;;  %460 = vst.msk [vmem:[#allocation2 + $0xd8] sm:$0xff] %vm432_vm0, %v410_v62 }
  0xea   : > { %v7697_v23 = vmul.f32 %v7561_v63, %v1401_v22  ;;  %v1277_v59 = vmul.f32 %v7531_v12, %v480_v15  ;;  %v7701_v5 = vmul.f32 %v7571_v10, %v1478_v47  ;;  %v970_v13 = vmul.f32 %v7488_v28, %v557_v36  ;;  %v1708_v22 = vld [vmem:[#allocation2 + $0x39] sm:$0xf]  ;;  %459 = vst.msk [vmem:[#allocation2 + $0xd0] sm:$0xff] %vm432_vm0, %v405_v42 }
  0xeb   : > { %v610_v7 = vadd.f32 %v586_v44, %v533_v56  ;;  %v917_v11 = vadd.f32 %v893_v0, %v839_v61  ;;  %v7710_v14 = vmul.f32 %v7580_v57, %v1555_v52  ;;  %v1354_v27 = vmul.f32 %v7552_v49, %v557_v36  ;;  %v7729_v44 = vld [vmem:[%s9494_s1 + $0x16] ss:$0 sm:$0xff] }
  0xec   : > { %v1301_v25 = vadd.f32 %v1277_v59, %v1223_v50  ;;  %v1661_v30 = vmul.f32 %v7609_v1, %v480_v15  ;;  %v1660_v31 = vmul.f32 %v7609_v1, %v1631_v32  ;;  %v663_v61 = vmul.f32 %v7446_v46, %v634_v29 }
  0xed   : > { %v994_v33 = vadd.f32 %v970_v13, %v917_v11  ;;  %v1047_v35 = vmul.f32 %v7498_v40, %v634_v29  ;;  %v1738_v52 = vmul.f32 %v7621_v20, %v557_v36  ;;  %v2045_v56 = vmul.f32 %v7706_v6, %v480_v15 }
  0xee   : > { %v1378_v47 = vadd.f32 %v1354_v27, %v1301_v25  ;;  %v1685_v50 = vadd.f32 %v1661_v30, %v1607_v2  ;;  %v687_v0 = vadd.f32 %v663_v61, %v610_v7  ;;  %v1124_v59 = vmul.f32 %v7512_v58, %v711_v48  ;;  %v7741_v30 = vld [vmem:[%s9494_s1 + $0x17] ss:$0 sm:$0xff] }
  0xef   : > { %v1071_v32 = vadd.f32 %v1047_v35, %v994_v33  ;;  %v1431_v11 = vmul.f32 %v7561_v63, %v634_v29  ;;  %v1815_v13 = vmul.f32 %v7633_v34, %v634_v29  ;;  %v2069_v25 = vadd.f32 %v2045_v56, %v1991_v19  ;;  %v1785_v35 = vld [vmem:[#allocation2 + $0x3a] sm:$0xf] }
  0xf0   : > { %v1762_v2 = vadd.f32 %v1738_v52, %v1685_v50  ;;  %v2122_v15 = vmul.f32 %v7718_v26, %v557_v36  ;;  %v7736_v27 = vmul.f32 %v7621_v20, %v1708_v22  ;;  %v740_v7 = vmul.f32 %v7454_v53, %v711_v48  ;;  %v7752_v52 = vld [vmem:[%s9494_s1 + $0x18] ss:$0 sm:$0xff] }
  0xf1   : > { %v1148_v61 = vadd.f32 %v1124_v59, %v1071_v32  ;;  %v1201_v33 = vmul.f32 %v7521_v8, %v788_v17  ;;  %v1455_v62 = vadd.f32 %v1431_v11, %v1378_v47  ;;  %v2199_v19 = vmul.f32 %v7729_v44, %v634_v29  ;;  %v482_v29 = vld [vmem:[#allocation2 + $0x50] sm:$0xff] }
  0xf2   : > { %9530 = vst [vmem:[#allocation8_spill] sm:$0xff] %v7736_v27  ;;  %v1839_v42 = vadd.f32 %v1815_v13, %v1762_v2  ;;  %v2146_v50 = vadd.f32 %v2122_v15, %v2069_v25  ;;  %v916_v36 = vadd.f32 %v7674_v41, %v7661_v18  ;;  %v1300_v22 = vadd.f32 %v1276_v55, %v7663_v21  ;;  %v1249_v18 = vld [vmem:[#allocation2 + $0x48] sm:$0xf] }
  0xf3   : > { %v764_v56 = vadd.f32 %v740_v7, %v687_v0  ;;  %v1225_v32 = vadd.f32 %v1201_v33, %v1148_v61  ;;  %v1508_v59 = vmul.f32 %v7571_v10, %v711_v48  ;;  %v1892_v47 = vmul.f32 %v7643_v54, %v711_v48  ;;  %v1326_v21 = vld [vmem:[#allocation2 + $0x49] sm:$0xf] }
  0xf4   : > { %v2223_v11 = vadd.f32 %v2199_v19, %v2146_v50  ;;  %v2276_v2 = vmul.f32 %v7741_v30, %v711_v48  ;;  %v7758_v13 = vmul.f32 %v7633_v34, %v1785_v35  ;;  %v7761_v41 = vadd.f32 %v1660_v31, %v7665_v24  ;;  %v1403_v25 = vld [vmem:[#allocation2 + $0x4a] sm:$0xf]  ;;  %v559_v48 = vld [vmem:[#allocation2 + $0x51] sm:$0xff] }
  0xf5   : > { %v817_v55 = vmul.f32 %v7461_v60, %v788_v17  ;;  %v1585_v0 = vmul.f32 %v7580_v57, %v788_v17  ;;  %v1532_v15 = vadd.f32 %v1508_v59, %v1455_v62  ;;  %v1916_v7 = vadd.f32 %v1892_v47, %v1839_v42  ;;  %v1480_v50 = vld [vmem:[#allocation2 + $0x4b] sm:$0xf]  ;;  %v420_v47 = vpop.permute.xlu1 %419 }
  0xf6   : > { %9531 = vst [vmem:[#allocation9_spill] sm:$0xff] %v7758_v13  ;;  %9532 = vst [vmem:[#allocation10_spill] sm:$0xff] %v7761_v41  ;;  %v2300_v61 = vadd.f32 %v2276_v2, %v2223_v11  ;;  %v2353_v33 = vmul.f32 %v7752_v52, %v788_v17  ;;  %v1969_v35 = vmul.f32 %v7654_v4, %v788_v17 }
  0xf7   : > { %v841_v19 = vadd.f32 %v817_v55, %v764_v56  ;;  %v993_v13 = vadd.f32 %v7677_v43, %v916_v36  ;;  %v511_v24 = vmul.f32 %v7428_v37, %v482_v29  ;;  %v7772_v27 = vmul.f32 %v7531_v12, %v1249_v18  ;;  %v636_v43 = vld [vmem:[#allocation2 + $0x52] sm:$0xff]  ;;  %462 = vst.msk [vmem:[#allocation2 + $0xe8] sm:$0xff] %vm432_vm0, %v420_v47 }
  0xf8   : > { %v7769_v31 = vadd.f32 %v2353_v33, %v2300_v61  ;;  %v7775_v62 = vmul.f32 %v7552_v49, %v1326_v21  ;;  %v1377_v42 = vadd.f32 %v7694_v3, %v1300_v22  ;;  %v7779_v59 = vmul.f32 %v7561_v63, %v1403_v25  ;;  %v713_v33 = vld [vmem:[#allocation2 + $0x53] sm:$0xff] }
  0xf9   : > { %v535_v56 = vadd.f32 %v7433_v38, %v511_v24  ;;  %v588_v17 = vmul.f32 %v7438_v39, %v559_v48  ;;  %v895_v36 = vmul.f32 %v7474_v16, %v482_v29  ;;  %v1609_v11 = vadd.f32 %v1585_v0, %v1532_v15 }
  0xfa   : > { %9533 = vst [vmem:[#allocation11_spill] sm:$0xff] %v7769_v31  ;;  %v1993_v2 = vadd.f32 %v1969_v35, %v1916_v7  ;;  %v7785_v18 = vmul.f32 %v7571_v10, %v1480_v50  ;;  %v1279_v21 = vmul.f32 %v7531_v12, %v482_v29  ;;  %v1070_v3 = vadd.f32 %v7680_v45, %v993_v13  ;;  %v415_v7 = vpop.permute.xlu0 %414 }
  0xfb   : > { %v612_v22 = vadd.f32 %v588_v17, %v535_v56  ;;  %v919_v55 = vadd.f32 %v895_v36, %v841_v19  ;;  %v972_v25 = vmul.f32 %v7488_v28, %v559_v48  ;;  %v665_v61 = vmul.f32 %v7446_v46, %v636_v43  ;;  %461 = vst.msk [vmem:[#allocation2 + $0xe0] sm:$0xff] %vm432_vm0, %v415_v7  ;;  %v790_v19 = vld [vmem:[#allocation2 + $0x54] sm:$0xff] }
  0xfc   : > { %9534 = vst [vmem:[#allocation12_spill] sm:$0xff] %v7785_v18  ;;  %v1303_v24 = vadd.f32 %v1279_v21, %v1225_v32  ;;  %v1356_v0 = vmul.f32 %v7552_v49, %v559_v48  ;;  %v1663_v15 = vmul.f32 %v7609_v1, %v482_v29  ;;  %v1454_v50 = vadd.f32 %v7697_v23, %v1377_v42  ;;  %v1557_v42 = vld [vmem:[#allocation2 + $0x4c] sm:$0xf] }
  0xfd   : > { %v996_v35 = vadd.f32 %v972_v25, %v919_v55  ;;  %v1049_v47 = vmul.f32 %v7498_v40, %v636_v43  ;;  %v1433_v45 = vmul.f32 %v7561_v63, %v636_v43  ;;  %v689_v13 = vadd.f32 %v665_v61, %v612_v22 }
  0xfe   : > { %v1380_v56 = vadd.f32 %v1356_v0, %v1303_v24  ;;  %v1687_v17 = vadd.f32 %v1663_v15, %v1609_v11  ;;  %v1740_v32 = vmul.f32 %v7621_v20, %v559_v48  ;;  %v742_v36 = vmul.f32 %v7454_v53, %v713_v33 }
  0xff   : > { %v1073_v21 = vadd.f32 %v1049_v47, %v996_v35  ;;  %v1126_v41 = vmul.f32 %v7512_v58, %v713_v33  ;;  %v2047_v23 = vmul.f32 %v7706_v6, %v482_v29  ;;  %v1510_v25 = vmul.f32 %v7571_v10, %v713_v33  ;;  %v486_v29 = vld [vmem:[#allocation2 + $0x70] sm:$0xff] }
 0x100   : > { %v1457_v55 = vadd.f32 %v1433_v45, %v1380_v56  ;;  %v1764_v31 = vadd.f32 %v1740_v32, %v1687_v17  ;;  %v1817_v7 = vmul.f32 %v7633_v34, %v636_v43  ;;  %v1587_v22 = vmul.f32 %v7580_v57, %v790_v19 }
 0x101   : > { %v1894_v11 = vmul.f32 %v7643_v54, %v713_v33  ;;  %v2071_v61 = vadd.f32 %v2047_v23, %v1993_v2  ;;  %v2124_v24 = vmul.f32 %v7718_v26, %v559_v48  ;;  %v766_v0 = vadd.f32 %v742_v36, %v689_v13  ;;  %v484_v48 = vld [vmem:[#allocation2 + $0x60] sm:$0xff] }
 0x102   : > { %v1534_v15 = vadd.f32 %v1510_v25, %v1457_v55  ;;  %v1841_v35 = vadd.f32 %v1817_v7, %v1764_v31  ;;  %v1147_v47 = vadd.f32 %v7684_v51, %v1070_v3  ;;  %v7809_v45 = vmul.f32 %v7580_v57, %v1557_v42  ;;  %v430_v42 = vpop.permute.xlu1 %429  ;;  %v425_v55 = vpop.permute.xlu0 %424 }
 0x103   : > { %v1150_v56 = vadd.f32 %v1126_v41, %v1073_v21  ;;  %v2148_v17 = vadd.f32 %v2124_v24, %v2071_v61  ;;  %v2201_v32 = vmul.f32 %v7729_v44, %v636_v43  ;;  %v819_v18 = vmul.f32 %v7461_v60, %v790_v19  ;;  %464 = vst.msk [vmem:[#allocation2 + $0xf8] sm:$0xff] %vm432_vm0, %v430_v42  ;;  %v563_v61 = vld [vmem:[#allocation2 + $0x71] sm:$0xff]  ;;  %v638_v42 = vld [vmem:[#allocation2 + $0x62] sm:$0xff] }
 0x104   : > { %9535 = vst [vmem:[#allocation13_spill] sm:$0xff] %v7809_v45  ;;  %v1203_v54 = vmul.f32 %v7521_v8, %v790_v19  ;;  %v1611_v2 = vadd.f32 %v1587_v22, %v1534_v15  ;;  %v1918_v23 = vadd.f32 %v1894_v11, %v1841_v35  ;;  %v1971_v13 = vmul.f32 %v7654_v4, %v790_v19 }
 0x105   : > { %v2225_v31 = vadd.f32 %v2201_v32, %v2148_v17  ;;  %v2278_v51 = vmul.f32 %v7741_v30, %v713_v33  ;;  %v515_v3 = vmul.f32 %v7428_v37, %v486_v29  ;;  %v843_v36 = vadd.f32 %v819_v18, %v766_v0  ;;  %463 = vst.msk [vmem:[#allocation2 + $0xf0] sm:$0xff] %vm432_vm0, %v425_v55  ;;  %v715_v55 = vld [vmem:[#allocation2 + $0x63] sm:$0xff] }
 0x106   : > { %v2355_v41 = vmul.f32 %v7752_v52, %v790_v19  ;;  %v1531_v21 = vadd.f32 %v7701_v5, %v1454_v50  ;;  %v1224_v43 = vadd.f32 %v7687_v9, %v1147_v47  ;;  %v1227_v25 = vadd.f32 %v1203_v54, %v1150_v56  ;;  %v640_v47 = vld [vmem:[#allocation2 + $0x72] sm:$0xff] }
 0x107   : > { %v2302_v7 = vadd.f32 %v2278_v51, %v2225_v31  ;;  %v7821_v22 = vmul.f32 %v7474_v16, %v486_v29  ;;  %v513_v11 = vmul.f32 %v7428_v37, %v484_v48  ;;  %v1995_v18 = vadd.f32 %v1971_v13, %v1918_v23  ;;  %v794_v56 = vld [vmem:[#allocation2 + $0x74] sm:$0xff] }
 0x108   : > { %v7827_v33 = vmul.f32 %v7531_v12, %v486_v29  ;;  %v1665_v5 = vmul.f32 %v7609_v1, %v484_v48  ;;  %v1302_v9 = vadd.f32 %v7772_v27, %v1224_v43  ;;  %v539_v54 = vadd.f32 %v7433_v38, %v515_v3  ;;  %v717_v27 = vld [vmem:[#allocation2 + $0x73] sm:$0xff] }
 0x109   : > { %v2379_v50 = vadd.f32 %v2355_v41, %v2302_v7  ;;  %v7833_v19 = vmul.f32 %v7609_v1, %v486_v29  ;;  %v7836_v37 = vmul.f32 %v7706_v6, %v486_v29  ;;  %v897_v24 = vmul.f32 %v7474_v16, %v484_v48 }
 0x10a   : > { %v1281_v0 = vmul.f32 %v7531_v12, %v484_v48  ;;  %v7840_v15 = vadd.f32 %v1665_v5, %v1611_v2  ;;  %v2049_v35 = vmul.f32 %v7706_v6, %v484_v48  ;;  %v7844_v32 = vadd.f32 %v7710_v14, %v1531_v21 }
 0x10b   : > { %9536 = vst [vmem:[#allocation14_spill] sm:$0xff] %v7836_v37  ;;  %v2403_v17 = vmax.f32 %v2379_v50, 0.0  ;;  %v537_v23 = vadd.f32 %v7433_v38, %v513_v11  ;;  %v1379_v29 = vadd.f32 %v7775_v62, %v1302_v9  ;;  %v921_v13 = vadd.f32 %v897_v24, %v843_v36  ;;  %v561_v38 = vld [vmem:[#allocation2 + $0x61] sm:$0xff] }
 0x10c   : > { %9537 = vst [vmem:[#allocation15_spill] sm:$0xff] %v7840_v15  ;;  %9538 = vst [vmem:[#allocation16_spill] sm:$0xff] %v7844_v32  ;;  %v1305_v31 = vadd.f32 %v1281_v0, %v1227_v25  ;;  %v7848_v51 = vadd.f32 %v2049_v35, %v1995_v18  ;;  %v592_v2 = vmul.f32 %v7438_v39, %v563_v61  ;;  %v792_v25 = vld [vmem:[#allocation2 + $0x64] sm:$0xff] }
 0x10d   : > { %2428 = vst.msk [vmem:[#allocation3 + $0x10] sm:$0xff] %vm432_vm0, %v2403_v17  ;;  %v669_v48 = vmul.f32 %v7446_v46, %v640_v47  ;;  %v746_v3 = vmul.f32 %v7454_v53, %v717_v27  ;;  %v7855_v41 = vmul.f32 %v7461_v60, %v794_v56  ;;  %v7858_v14 = vmul.f32 %v7488_v28, %v563_v61  ;;  %v9543_v24 = vld [vmem:[#allocation7_spill] sm:$0xff] }
 0x10e   : > { %9539 = vst [vmem:[#allocation17_spill] sm:$0xff] %v7848_v51  ;;  %v7861_v62 = vmul.f32 %v7498_v40, %v640_v47  ;;  %v7864_v36 = vmul.f32 %v7512_v58, %v717_v27  ;;  %v7867_v21 = vmul.f32 %v7521_v8, %v794_v56  ;;  %v7870_v43 = vmul.f32 %v7552_v49, %v563_v61 }
 0x10f   : > { %v7873_v7 = vmul.f32 %v7561_v63, %v640_v47  ;;  %v1456_v11 = vadd.f32 %v7779_v59, %v1379_v29  ;;  %v7877_v18 = vmul.f32 %v7571_v10, %v717_v27  ;;  %v7880_v5 = vmul.f32 %v7580_v57, %v794_v56 }
 0x110   : > { %9540 = vst [vmem:[#allocation18_spill] sm:$0xff] %v7867_v21  ;;  %v7883_v9 = vmul.f32 %v7621_v20, %v563_v61  ;;  %v7886_v50 = vmul.f32 %v7633_v34, %v640_v47  ;;  %v7889_v0 = vmul.f32 %v9543_v24, %v717_v27  ;;  %v7892_v35 = vmul.f32 %v7654_v4, %v794_v56  ;;  %v7929_v21 = vld [vmem:[#allocation2 + $0x81] sm:$0xff] }
 0x111   : > { %9541 = vst [vmem:[#allocation19_spill] sm:$0xff] %v7877_v18  ;;  %9542 = vst [vmem:[#allocation20_spill] sm:$0xff] %v7880_v5  ;;  %v7895_v59 = vmul.f32 %v7718_v26, %v563_v61  ;;  %v7898_v17 = vmul.f32 %v7729_v44, %v640_v47  ;;  %v590_v29 = vmul.f32 %v7438_v39, %v561_v38 }
 0x112   : > { %9544 = vst [vmem:[#allocation7_spill] sm:$0xff] %v7889_v0  ;;  %9545 = vst [vmem:[#allocation21_spill] sm:$0xff] %v7892_v35  ;;  %v616_v32 = vadd.f32 %v592_v2, %v539_v54  ;;  %v667_v37 = vmul.f32 %v7446_v46, %v638_v42  ;;  %v744_v45 = vmul.f32 %v7454_v53, %v715_v55  ;;  %v9548_v54 = vld [vmem:[#allocation12_spill] sm:$0xff] }
 0x113   : > { %9546 = vst [vmem:[#allocation22_spill] sm:$0xff] %v7895_v59  ;;  %9547 = vst [vmem:[#allocation23_spill] sm:$0xff] %v7898_v17  ;;  %v821_v5 = vmul.f32 %v7461_v60, %v792_v25  ;;  %v974_v27 = vmul.f32 %v7488_v28, %v561_v38  ;;  %v1051_v56 = vmul.f32 %v7498_v40, %v638_v42  ;;  %v7915_v60 = vld [vmem:[#allocation2 + $0x80] sm:$0xff] }
 0x114   : > { %v1128_v35 = vmul.f32 %v7512_v58, %v715_v55  ;;  %v1205_v61 = vmul.f32 %v7521_v8, %v792_v25  ;;  %v1358_v47 = vmul.f32 %v7552_v49, %v561_v38  ;;  %v1435_v17 = vmul.f32 %v7561_v63, %v638_v42 }
 0x115   : > { %v1512_v39 = vmul.f32 %v7571_v10, %v715_v55  ;;  %v7912_v46 = vadd.f32 %v9548_v54, %v1456_v11  ;;  %v1589_v53 = vmul.f32 %v7580_v57, %v792_v25  ;;  %v7918_v2 = vmul.f32 %v7621_v20, %v561_v38 }
 0x116   : > { %v7921_v59 = vmul.f32 %v7633_v34, %v638_v42  ;;  %v7924_v51 = vmul.f32 %v9543_v24, %v715_v55  ;;  %v7927_v15 = vmul.f32 %v7654_v4, %v792_v25  ;;  %v7932_v11 = vmul.f32 %v7718_v26, %v561_v38 }
 0x117   : > { %9549 = vst [vmem:[#allocation12_spill] sm:$0xff] %v7912_v46  ;;  %9550 = vst [vmem:[#allocation24_spill] sm:$0xff] %v7918_v2  ;;  %v7935_v54 = vmul.f32 %v7729_v44, %v638_v42  ;;  %v614_v46 = vadd.f32 %v590_v29, %v537_v23  ;;  %v693_v0 = vadd.f32 %v669_v48, %v616_v32  ;;  %v7937_v2 = vld [vmem:[#allocation2 + $0x82] sm:$0xff] }
 0x118   : > { %9551 = vst [vmem:[#allocation25_spill] sm:$0xff] %v7921_v59  ;;  %9552 = vst [vmem:[#allocation26_spill] sm:$0xff] %v7924_v51  ;;  %v7940_v59 = vmul.f32 %v7741_v30, %v715_v55  ;;  %v998_v18 = vadd.f32 %v974_v27, %v921_v13  ;;  %v1382_v51 = vadd.f32 %v1358_v47, %v1305_v31  ;;  %v7957_v13 = vld [vmem:[%s9494_s1 + $0x1] ss:$0 sm:$0xff]  ;;  %v7961_v42 = vld [vmem:[#allocation2 + $0x84] sm:$0xff] }
 0x119   : > { %9553 = vst [vmem:[#allocation27_spill] sm:$0xff] %v7927_v15  ;;  %9554 = vst [vmem:[#allocation28_spill] sm:$0xff] %v7932_v11  ;;  %v7945_v15 = vld [vmem:[%s9494_s1] ss:$0 sm:$0xff]  ;;  %v7949_v11 = vld [vmem:[#allocation2 + $0x83] sm:$0xff]  ;;  %v7952_v23 = vmul.f32 %v7752_v52, %v792_v25  ;;  %v691_v32 = vadd.f32 %v667_v37, %v614_v46  ;;  %v770_v48 = vadd.f32 %v746_v3, %v693_v0 }
 0x11a   : > { %9555 = vst [vmem:[#allocation29_spill] sm:$0xff] %v7940_v59  ;;  %v517_v38 = vmul.f32 %v7945_v15, %v7915_v60  ;;  %v594_v31 = vmul.f32 %v7957_v13, %v7929_v21  ;;  %v1075_v55 = vadd.f32 %v1051_v56, %v998_v18  ;;  %v1459_v29 = vadd.f32 %v1435_v17, %v1382_v51  ;;  %v7966_v27 = vld [vmem:[%s9495_s2] ss:$0 sm:$0xff]  ;;  %v7972_v3 = vld [vmem:[%s9494_s1 + $0x2] ss:$0 sm:$0xff] }
 0x11b   : > { %9556 = vst [vmem:[#allocation30_spill] sm:$0xff] %v7952_v23  ;;  %v671_v25 = vmul.f32 %v7972_v3, %v7937_v2  ;;  %v768_v0 = vadd.f32 %v744_v45, %v691_v32  ;;  %v847_v47 = vadd.f32 %v7855_v41, %v770_v48  ;;  %v7980_v51 = vld [vmem:[%s9494_s1 + $0x3] ss:$0 sm:$0xff]  ;;  %v901_v17 = vmul.f32 %v7474_v16, %v7915_v60  ;;  %v7989_v45 = vld [vmem:[%s9494_s1 + $0x4] ss:$0 sm:$0xff] }
 0x11c   : > { %v541_v37 = vadd.f32 %v7966_v27, %v517_v38  ;;  %v748_v18 = vmul.f32 %v7980_v51, %v7949_v11  ;;  %v1152_v56 = vadd.f32 %v1128_v35, %v1075_v55  ;;  %v1536_v46 = vadd.f32 %v1512_v39, %v1459_v29 }
 0x11d   : > { %v825_v41 = vmul.f32 %v7989_v45, %v7961_v42  ;;  %v845_v32 = vadd.f32 %v821_v5, %v768_v0  ;;  %v925_v48 = vadd.f32 %v901_v17, %v847_v47  ;;  %v978_v23 = vmul.f32 %v7488_v28, %v7929_v21 }
 0x11e   : > { %v618_v38 = vadd.f32 %v594_v31, %v541_v37  ;;  %v1055_v59 = vmul.f32 %v7498_v40, %v7937_v2  ;;  %v1229_v16 = vadd.f32 %v1205_v61, %v1152_v56  ;;  %v1613_v35 = vadd.f32 %v1589_v53, %v1536_v46 }
 0x11f   : > { %v1132_v31 = vmul.f32 %v7512_v58, %v7949_v11  ;;  %v923_v55 = vadd.f32 %v7821_v22, %v845_v32  ;;  %v1002_v29 = vadd.f32 %v978_v23, %v925_v48  ;;  %v1209_v37 = vmul.f32 %v7521_v8, %v7961_v42  ;;  %v9558_v32 = vld [vmem:[#allocation7_spill] sm:$0xff] }
 0x120   : > { %v695_v39 = vadd.f32 %v671_v25, %v618_v38  ;;  %v1285_v5 = vmul.f32 %v7531_v12, %v7915_v60  ;;  %v1307_v28 = vadd.f32 %v7827_v33, %v1229_v16  ;;  %v1691_v0 = vadd.f32 %v7833_v19, %v1613_v35  ;;  %v8045_v35 = vld [vmem:[#allocation2 + $0x91] sm:$0xff] }
 0x121   : > { %v1362_v61 = vmul.f32 %v7552_v49, %v7929_v21  ;;  %v1000_v53 = vadd.f32 %v7858_v14, %v923_v55  ;;  %v1079_v58 = vadd.f32 %v1055_v59, %v1002_v29  ;;  %v1439_v22 = vmul.f32 %v7561_v63, %v7937_v2  ;;  %v9561_v29 = vld [vmem:[#allocation24_spill] sm:$0xff] }
 0x122   : > { %v772_v40 = vadd.f32 %v748_v18, %v695_v39  ;;  %v1516_v8 = vmul.f32 %v7571_v10, %v7949_v11  ;;  %v1384_v23 = vadd.f32 %v7870_v43, %v1307_v28  ;;  %v1768_v12 = vadd.f32 %v7883_v9, %v1691_v0  ;;  %v9559_v39 = vld [vmem:[#allocation18_spill] sm:$0xff]  ;;  %v9562_v28 = vld [vmem:[#allocation17_spill] sm:$0xff]  ;;  %v9563_v0 = vld [vmem:[#allocation28_spill] sm:$0xff] }
 0x123   : > { %v8017_v33 = vmul.f32 %v7580_v57, %v7961_v42  ;;  %v1669_v19 = vmul.f32 %v7609_v1, %v7915_v60  ;;  %v1077_v14 = vadd.f32 %v7861_v62, %v1000_v53  ;;  %v1156_v25 = vadd.f32 %v1132_v31, %v1079_v58  ;;  %v9564_v53 = vld [vmem:[#allocation20_spill] sm:$0xff] }
 0x124   : > { %v849_v59 = vadd.f32 %v825_v41, %v772_v40  ;;  %v1746_v47 = vmul.f32 %v7621_v20, %v7929_v21  ;;  %v1461_v18 = vadd.f32 %v7873_v7, %v1384_v23  ;;  %v1845_v43 = vadd.f32 %v7886_v50, %v1768_v12  ;;  %v8037_v41 = vld [vmem:[#allocation2 + $0x90] sm:$0xff]  ;;  %v9557_v7 = vld [vmem:[#allocation19_spill] sm:$0xff] }
 0x125   : > { %v1823_v9 = vmul.f32 %v7633_v34, %v7937_v2  ;;  %v1900_v17 = vmul.f32 %v9543_v24, %v7949_v11  ;;  %v1154_v56 = vadd.f32 %v7864_v36, %v1077_v14  ;;  %v1233_v46 = vadd.f32 %v1209_v37, %v1156_v25  ;;  %v9565_v23 = vld [vmem:[#allocation21_spill] sm:$0xff] }
 0x126   : > { %v8033_v62 = vmul.f32 %v7654_v4, %v7961_v42  ;;  %v2053_v38 = vmul.f32 %v7706_v6, %v7915_v60  ;;  %v1538_v50 = vadd.f32 %v9557_v7, %v1461_v18  ;;  %v1922_v48 = vadd.f32 %v9558_v32, %v1845_v43  ;;  %v9560_v60 = vld [vmem:[#allocation15_spill] sm:$0xff]  ;;  %v8060_v14 = vld [vmem:[#allocation2 + $0x92] sm:$0xff]  ;;  %v9566_v18 = vld [vmem:[#allocation12_spill] sm:$0xff] }
 0x127   : > { %v2130_v16 = vmul.f32 %v7718_v26, %v7929_v21  ;;  %v2207_v36 = vmul.f32 %v7729_v44, %v7937_v2  ;;  %v1231_v31 = vadd.f32 %v9559_v39, %v1154_v56  ;;  %v2284_v55 = vmul.f32 %v7741_v30, %v7949_v11  ;;  %v8062_v25 = vld [vmem:[#allocation2 + $0x93] sm:$0xff] }
 0x128   : > { %v1766_v37 = vadd.f32 %v9561_v29, %v9560_v60  ;;  %v2150_v40 = vadd.f32 %v9563_v0, %v9562_v28  ;;  %v1615_v58 = vadd.f32 %v9564_v53, %v1538_v50  ;;  %v1999_v21 = vadd.f32 %v9565_v23, %v1922_v48  ;;  %v9567_v43 = vld [vmem:[#allocation13_spill] sm:$0xff] }
 0x129   : > { %v2361_v2 = vmul.f32 %v7752_v52, %v7961_v42  ;;  %v519_v12 = vmul.f32 %v7945_v15, %v8037_v41  ;;  %v1309_v11 = vadd.f32 %v1285_v5, %v1231_v31  ;;  %v8066_v56 = vadd.f32 %v9567_v43, %v9566_v18  ;;  %v9568_v7 = vld [vmem:[#allocation25_spill] sm:$0xff] }
 0x12a   : > { %v8069_v32 = vadd.f32 %v9568_v7, %v1766_v37  ;;  %v596_v50 = vmul.f32 %v7957_v13, %v8045_v35  ;;  %v8073_v48 = vld [vmem:[#allocation2 + $0x94] sm:$0xff]  ;;  %v1693_v42 = vadd.f32 %v1669_v19, %v1615_v58  ;;  %v2077_v39 = vadd.f32 %v2053_v38, %v1999_v21  ;;  %v8084_v37 = vld [vmem:[%s9494_s1 + $0x5] ss:$0 sm:$0xff]  ;;  %v8093_v58 = vld [vmem:[%s9494_s1 + $0x6] ss:$0 sm:$0xff] }
 0x12b   : > { %v2227_v60 = vadd.f32 %v7935_v54, %v2150_v40  ;;  %v543_v29 = vadd.f32 %v7966_v27, %v519_v12  ;;  %v1386_v28 = vadd.f32 %v1362_v61, %v1309_v11  ;;  %v673_v5 = vmul.f32 %v7972_v3, %v8060_v14  ;;  %v8100_v21 = vld [vmem:[%s9494_s1 + $0x7] ss:$0 sm:$0xff]  ;;  %v8114_v7 = vld [vmem:[%s9494_s1 + $0x8] ss:$0 sm:$0xff] }
 0x12c   : > { %v750_v31 = vmul.f32 %v7980_v51, %v8062_v25  ;;  %v903_v19 = vmul.f32 %v8084_v37, %v8037_v41  ;;  %v1770_v38 = vadd.f32 %v1746_v47, %v1693_v42  ;;  %v2154_v0 = vadd.f32 %v2130_v16, %v2077_v39 }
 0x12d   : > { %v620_v54 = vadd.f32 %v596_v50, %v543_v29  ;;  %v827_v61 = vmul.f32 %v7989_v45, %v8073_v48  ;;  %v1463_v40 = vadd.f32 %v1439_v22, %v1386_v28  ;;  %v980_v23 = vmul.f32 %v8093_v58, %v8045_v35 }
 0x12e   : > { %v927_v53 = vadd.f32 %v903_v19, %v849_v59  ;;  %v1057_v47 = vmul.f32 %v8100_v21, %v8060_v14  ;;  %v1847_v16 = vadd.f32 %v1823_v9, %v1770_v38  ;;  %v2231_v12 = vadd.f32 %v2207_v36, %v2154_v0  ;;  %v8107_v59 = vld [vmem:[%s9494_s1 + $0xa] ss:$0 sm:$0xff] }
 0x12f   : > { %v697_v22 = vadd.f32 %v673_v5, %v620_v54  ;;  %v1287_v11 = vmul.f32 %v8107_v59, %v8037_v41  ;;  %v1540_v18 = vadd.f32 %v1516_v8, %v1463_v40  ;;  %v1134_v9 = vmul.f32 %v8114_v7, %v8062_v25  ;;  %v8124_v8 = vld [vmem:[%s9494_s1 + $0x9] ss:$0 sm:$0xff] }
 0x130   : > { %v1004_v43 = vadd.f32 %v980_v23, %v927_v53  ;;  %v1364_v36 = vmul.f32 %v7552_v49, %v8045_v35  ;;  %v1924_v50 = vadd.f32 %v1900_v17, %v1847_v16  ;;  %v2308_v42 = vadd.f32 %v2284_v55, %v2231_v12 }
 0x131   : > { %v774_v39 = vadd.f32 %v750_v31, %v697_v22  ;;  %v1311_v29 = vadd.f32 %v1287_v11, %v1233_v46  ;;  %v1617_v28 = vadd.f32 %v8017_v33, %v1540_v18  ;;  %v1211_v19 = vmul.f32 %v8124_v8, %v8073_v48  ;;  %v8152_v11 = vld [vmem:[#allocation2 + $0xa1] sm:$0xff] }
 0x132   : > { %v1081_v5 = vadd.f32 %v1057_v47, %v1004_v43  ;;  %v1441_v38 = vmul.f32 %v7561_v63, %v8060_v14  ;;  %v2385_v0 = vadd.f32 %v2361_v2, %v2308_v42  ;;  %v1518_v17 = vmul.f32 %v7571_v10, %v8062_v25  ;;  %v646_v42 = vld [vmem:[#allocation2 + $0xa2] sm:$0xff] }
 0x133   : > { %v1388_v49 = vadd.f32 %v1364_v36, %v1311_v29  ;;  %v1595_v33 = vmul.f32 %v7580_v57, %v8073_v48  ;;  %v2001_v46 = vadd.f32 %v8033_v62, %v1924_v50  ;;  %v851_v55 = vadd.f32 %v827_v61, %v774_v39  ;;  %v492_v61 = vld [vmem:[#allocation2 + $0xa0] sm:$0xff]  ;;  %v9570_v50 = vld [vmem:[#allocation29_spill] sm:$0xff] }
 0x134   : > { %v1158_v31 = vadd.f32 %v1134_v9, %v1081_v5  ;;  %v1671_v54 = vmul.f32 %v7609_v1, %v8037_v41  ;;  %v2409_v40 = vmax.f32 %v2385_v0, 0.0  ;;  %v1748_v63 = vmul.f32 %v7621_v20, %v8045_v35  ;;  %v9569_v9 = vld [vmem:[#allocation26_spill] sm:$0xff]  ;;  %v8164_v5 = vld [vmem:[#allocation2 + $0xa4] sm:$0xff] }
 0x135   : > { %v1465_v53 = vadd.f32 %v1441_v38, %v1388_v49  ;;  %v1825_v2 = vmul.f32 %v7633_v34, %v8060_v14  ;;  %v1902_v10 = vmul.f32 %v9543_v24, %v8062_v25  ;;  %v1979_v57 = vmul.f32 %v7654_v4, %v8073_v48  ;;  %v9571_v0 = vld [vmem:[#allocation27_spill] sm:$0xff]  ;;  %v9572_v49 = vld [vmem:[#allocation30_spill] sm:$0xff] }
 0x136   : > { %v1695_v23 = vadd.f32 %v1671_v54, %v1617_v28  ;;  %v2055_v62 = vmul.f32 %v7706_v6, %v8037_v41  ;;  %2434 = vst.msk [vmem:[#allocation3 + $0x40] sm:$0xff] %vm432_vm0, %v2409_v40  ;;  %v1235_v47 = vadd.f32 %v1211_v19, %v1158_v31  ;;  %v2132_v12 = vmul.f32 %v7718_v26, %v8045_v35 }
 0x137   : > { %v1542_v16 = vadd.f32 %v1518_v17, %v1465_v53  ;;  %v2209_v22 = vmul.f32 %v7729_v44, %v8060_v14  ;;  %v1920_v36 = vadd.f32 %v9569_v9, %v8069_v32  ;;  %v2304_v41 = vadd.f32 %v9570_v50, %v2227_v60  ;;  %v8162_v14 = vld [vmem:[#allocation2 + $0xa3] sm:$0xff] }
 0x138   : > { %v1772_v18 = vadd.f32 %v1748_v63, %v1695_v23  ;;  %v2079_v43 = vadd.f32 %v2055_v62, %v2001_v46  ;;  %v2286_v29 = vmul.f32 %v7741_v30, %v8062_v25  ;;  %v2363_v35 = vmul.f32 %v7752_v52, %v8073_v48 }
 0x139   : > { %v1619_v39 = vadd.f32 %v1595_v33, %v1542_v16  ;;  %v521_v28 = vmul.f32 %v7945_v15, %v492_v61  ;;  %v1997_v32 = vadd.f32 %v9571_v0, %v1920_v36  ;;  %v598_v60 = vmul.f32 %v7957_v13, %v8152_v11 }
 0x13a   : > { %v1849_v19 = vadd.f32 %v1825_v2, %v1772_v18  ;;  %v2156_v38 = vadd.f32 %v2132_v12, %v2079_v43  ;;  %v8170_v17 = vadd.f32 %v9572_v49, %v2304_v41  ;;  %v675_v48 = vmul.f32 %v7972_v3, %v646_v42  ;;  %v8197_v41 = vld [vmem:[%s9494_s1 + $0xc] ss:$0 sm:$0xff] }
 0x13b   : > { %v545_v25 = vadd.f32 %v7966_v27, %v521_v28  ;;  %v905_v33 = vmul.f32 %v8084_v37, %v492_v61  ;;  %v752_v54 = vmul.f32 %v7980_v51, %v8162_v14  ;;  %v829_v40 = vmul.f32 %v7989_v45, %v8164_v5 }
 0x13c   : > { %v1926_v46 = vadd.f32 %v1902_v10, %v1849_v19  ;;  %v2233_v31 = vadd.f32 %v2209_v22, %v2156_v38  ;;  %v982_v2 = vmul.f32 %v8093_v58, %v8152_v11  ;;  %v1059_v23 = vmul.f32 %v8100_v21, %v646_v42  ;;  %v8204_v38 = vld [vmem:[%s9494_s1 + $0xd] ss:$0 sm:$0xff] }
 0x13d   : > { %v622_v53 = vadd.f32 %v598_v60, %v545_v25  ;;  %v929_v63 = vadd.f32 %v905_v33, %v851_v55  ;;  %v1136_v16 = vmul.f32 %v8114_v7, %v8162_v14  ;;  %v1213_v10 = vmul.f32 %v8124_v8, %v8164_v5  ;;  %v8190_v55 = vld [vmem:[%s9494_s1 + $0xb] ss:$0 sm:$0xff] }
 0x13e   : > { %v2310_v62 = vadd.f32 %v2286_v29, %v2233_v31  ;;  %v1289_v12 = vmul.f32 %v8107_v59, %v492_v61  ;;  %v2003_v22 = vadd.f32 %v1979_v57, %v1926_v46  ;;  %v1366_v9 = vmul.f32 %v8190_v55, %v8152_v11 }
 0x13f   : > { %v699_v18 = vadd.f32 %v675_v48, %v622_v53  ;;  %v1006_v43 = vadd.f32 %v982_v2, %v929_v63  ;;  %v1443_v29 = vmul.f32 %v8197_v41, %v646_v42  ;;  %v1673_v57 = vmul.f32 %v7609_v1, %v492_v61 }
 0x140   : > { %v2387_v36 = vadd.f32 %v2363_v35, %v2310_v62  ;;  %v1313_v50 = vadd.f32 %v1289_v12, %v1235_v47  ;;  %v1520_v35 = vmul.f32 %v8204_v38, %v8162_v14  ;;  %v8211_v47 = vld [vmem:[%s9494_s1 + $0xe] ss:$0 sm:$0xff]  ;;  %v1750_v25 = vmul.f32 %v7621_v20, %v8152_v11 }
 0x141   : > { %v776_v28 = vadd.f32 %v752_v54, %v699_v18  ;;  %v1083_v19 = vadd.f32 %v1059_v23, %v1006_v43  ;;  %v1597_v0 = vmul.f32 %v8211_v47, %v8164_v5  ;;  %v1697_v49 = vadd.f32 %v1673_v57, %v1619_v39  ;;  %v494_v39 = vld [vmem:[#allocation2 + $0xb0] sm:$0xff] }
 0x142   : > { %v2411_v60 = vmax.f32 %v2387_v36, 0.0  ;;  %v1390_v1 = vadd.f32 %v1366_v9, %v1313_v50  ;;  %v1827_v33 = vmul.f32 %v7633_v34, %v646_v42  ;;  %v1904_v46 = vmul.f32 %v9543_v24, %v8162_v14  ;;  %v8229_v24 = vld [vmem:[#allocation2 + $0xb2] sm:$0xff] }
 0x143   : > { %v1160_v48 = vadd.f32 %v1136_v16, %v1083_v19  ;;  %v2057_v31 = vmul.f32 %v7706_v6, %v492_v61  ;;  %v853_v54 = vadd.f32 %v829_v40, %v776_v28  ;;  %v1774_v63 = vadd.f32 %v1750_v25, %v1697_v49  ;;  %v8227_v16 = vld [vmem:[#allocation2 + $0xb1] sm:$0xff] }
 0x144   : > { %2436 = vst.msk [vmem:[#allocation3 + $0x50] sm:$0xff] %vm432_vm0, %v2411_v60  ;;  %v1467_v53 = vadd.f32 %v1443_v29, %v1390_v1  ;;  %v1981_v2 = vmul.f32 %v7654_v4, %v8164_v5  ;;  %v2134_v20 = vmul.f32 %v7718_v26, %v8152_v11  ;;  %v2211_v34 = vmul.f32 %v7729_v44, %v646_v42  ;;  %v9573_v40 = vld [vmem:[#allocation14_spill] sm:$0xff] }
 0x145   : > { %v1237_v23 = vadd.f32 %v1213_v10, %v1160_v48  ;;  %v2081_v62 = vadd.f32 %v2057_v31, %v2003_v22  ;;  %v1851_v12 = vadd.f32 %v1827_v33, %v1774_v63  ;;  %v2075_v18 = vadd.f32 %v9573_v40, %v1997_v32  ;;  %v725_v42 = vld [vmem:[#allocation2 + $0xb3] sm:$0xff] }
 0x146   : > { %v1544_v61 = vadd.f32 %v1520_v35, %v1467_v53  ;;  %v2405_v43 = vmax.f32 %v8170_v17, 0.0  ;;  %v2288_v4 = vmul.f32 %v7741_v30, %v8162_v14  ;;  %v2365_v10 = vmul.f32 %v7752_v52, %v8164_v5  ;;  %v8238_v22 = vld [vmem:[#allocation2 + $0xb4] sm:$0xff] }
 0x147   : > { %v2158_v9 = vadd.f32 %v2134_v20, %v2081_v62  ;;  %v523_v11 = vmul.f32 %v7945_v15, %v494_v39  ;;  %v1928_v36 = vadd.f32 %v1904_v46, %v1851_v12  ;;  %v9574_v50 = vld [vmem:[#allocation22_spill] sm:$0xff]  ;;  %v600_v32 = vmul.f32 %v7957_v13, %v8227_v16  ;;  %v8269_v12 = vld [vmem:[%s9494_s1 + $0xf] ss:$0 sm:$0xff] }
 0x148   : > { %v2152_v29 = vadd.f32 %v9574_v50, %v2075_v18  ;;  %2430 = vst.msk [vmem:[#allocation3 + $0x20] sm:$0xff] %vm432_vm0, %v2405_v43  ;;  %v677_v17 = vmul.f32 %v7972_v3, %v8229_v24  ;;  %v1621_v14 = vadd.f32 %v1597_v0, %v1544_v61  ;;  %v907_v28 = vmul.f32 %v8084_v37, %v494_v39 }
 0x149   : > { %v2235_v57 = vadd.f32 %v2211_v34, %v2158_v9  ;;  %v547_v5 = vadd.f32 %v7966_v27, %v523_v11  ;;  %v2005_v19 = vadd.f32 %v1981_v2, %v1928_v36  ;;  %v754_v35 = vmul.f32 %v7980_v51, %v725_v42  ;;  %v8282_v36 = vld [vmem:[%s9494_s1 + $0x11] ss:$0 sm:$0xff] }
 0x14a   : > { %v831_v60 = vmul.f32 %v7989_v45, %v8238_v22  ;;  %v984_v1 = vmul.f32 %v8093_v58, %v8227_v16  ;;  %v931_v48 = vadd.f32 %v907_v28, %v853_v54  ;;  %v1061_v0 = vmul.f32 %v8100_v21, %v8229_v24  ;;  %v8291_v28 = vld [vmem:[%s9494_s1 + $0x12] ss:$0 sm:$0xff] }
 0x14b   : > { %v2312_v49 = vadd.f32 %v2288_v4, %v2235_v57  ;;  %v624_v25 = vadd.f32 %v600_v32, %v547_v5  ;;  %v1138_v33 = vmul.f32 %v8114_v7, %v725_v42  ;;  %v1215_v46 = vmul.f32 %v8124_v8, %v8238_v22  ;;  %v8275_v4 = vld [vmem:[%s9494_s1 + $0x10] ss:$0 sm:$0xff] }
 0x14c   : > { %v1291_v31 = vmul.f32 %v8107_v59, %v494_v39  ;;  %v1368_v53 = vmul.f32 %v8190_v55, %v8227_v16  ;;  %v1008_v62 = vadd.f32 %v984_v1, %v931_v48  ;;  %v1445_v20 = vmul.f32 %v8197_v41, %v8229_v24  ;;  %v1034_v48 = vld [vmem:[#allocation2 + $0xc2] sm:$0xff] }
 0x14d   : > { %v2389_v63 = vadd.f32 %v2365_v10, %v2312_v49  ;;  %v701_v2 = vadd.f32 %v677_v17, %v624_v25  ;;  %v1522_v34 = vmul.f32 %v8204_v38, %v725_v42  ;;  %v1599_v61 = vmul.f32 %v8211_v47, %v8238_v22  ;;  %v880_v17 = vld [vmem:[#allocation2 + $0xc0] sm:$0xff] }
 0x14e   : > { %v1315_v54 = vadd.f32 %v1291_v31, %v1237_v23  ;;  %v1675_v40 = vmul.f32 %v8269_v12, %v494_v39  ;;  %v1085_v9 = vadd.f32 %v1061_v0, %v1008_v62  ;;  %v1752_v23 = vmul.f32 %v8275_v4, %v8227_v16  ;;  %v957_v25 = vld [vmem:[#allocation2 + $0xc1] sm:$0xff] }
 0x14f   : > { %v2413_v18 = vmax.f32 %v2389_v63, 0.0  ;;  %v778_v43 = vadd.f32 %v754_v35, %v701_v2  ;;  %v1829_v50 = vmul.f32 %v8282_v36, %v8229_v24  ;;  %v2059_v32 = vmul.f32 %v7706_v6, %v494_v39  ;;  %v8297_v35 = vld [vmem:[%s9494_s1 + $0x13] ss:$0 sm:$0xff]  ;;  %v9575_v31 = vld [vmem:[#allocation23_spill] sm:$0xff] }
 0x150   : > { %v1392_v10 = vadd.f32 %v1368_v53, %v1315_v54  ;;  %v1699_v11 = vadd.f32 %v1675_v40, %v1621_v14  ;;  %v1162_v5 = vadd.f32 %v1138_v33, %v1085_v9  ;;  %v1906_v14 = vmul.f32 %v8291_v28, %v725_v42  ;;  %v1111_v2 = vld [vmem:[#allocation2 + $0xc3] sm:$0xff] }
 0x151   : > { %2438 = vst.msk [vmem:[#allocation3 + $0x60] sm:$0xff] %vm432_vm0, %v2413_v18  ;;  %v855_v57 = vadd.f32 %v831_v60, %v778_v43  ;;  %v1983_v6 = vmul.f32 %v8297_v35, %v8238_v22  ;;  %v2083_v49 = vadd.f32 %v2059_v32, %v2005_v19  ;;  %v2136_v60 = vmul.f32 %v7718_v26, %v8227_v16  ;;  %v1188_v40 = vld [vmem:[#allocation2 + $0xc4] sm:$0xff] }
 0x152   : > { %v1469_v39 = vadd.f32 %v1445_v20, %v1392_v10  ;;  %v1776_v1 = vadd.f32 %v1752_v23, %v1699_v11  ;;  %v2213_v0 = vmul.f32 %v7729_v44, %v8229_v24  ;;  %v2290_v33 = vmul.f32 %v7741_v30, %v725_v42 }
 0x153   : > { %v8307_v53 = vadd.f32 %v9575_v31, %v2152_v29  ;;  %v909_v63 = vmul.f32 %v8084_v37, %v880_v17  ;;  %v1239_v62 = vadd.f32 %v1215_v46, %v1162_v5  ;;  %v2160_v19 = vadd.f32 %v2136_v60, %v2083_v49 }
 0x154   : > { %v1546_v20 = vadd.f32 %v1522_v34, %v1469_v39  ;;  %v1853_v54 = vadd.f32 %v1829_v50, %v1776_v1  ;;  %v2367_v16 = vmul.f32 %v7752_v52, %v8238_v22  ;;  %v986_v43 = vmul.f32 %v8093_v58, %v957_v25 }
 0x155   : > { %v933_v18 = vadd.f32 %v909_v63, %v855_v57  ;;  %v1063_v24 = vmul.f32 %v8100_v21, %v1034_v48  ;;  %v2237_v9 = vadd.f32 %v2213_v0, %v2160_v19  ;;  %v1140_v29 = vmul.f32 %v8114_v7, %v1111_v2  ;;  %v495_v19 = vld [vmem:[#allocation2 + $0xb8] sm:$0xf] }
 0x156   : > { %v1930_v42 = vadd.f32 %v1906_v14, %v1853_v54  ;;  %v1293_v23 = vmul.f32 %v8107_v59, %v880_v17  ;;  %v1623_v10 = vadd.f32 %v1599_v61, %v1546_v20  ;;  %v1217_v34 = vmul.f32 %v8124_v8, %v1188_v40  ;;  %v491_v20 = vld [vmem:[#allocation2 + $0x98] sm:$0xf]  ;;  %v493_v54 = vld [vmem:[#allocation2 + $0xa8] sm:$0xf] }
 0x157   : > { %v1010_v46 = vadd.f32 %v986_v43, %v933_v18  ;;  %v1370_v11 = vmul.f32 %v8190_v55, %v957_v25  ;;  %v2314_v50 = vadd.f32 %v2290_v33, %v2237_v9  ;;  %v1447_v22 = vmul.f32 %v8197_v41, %v1034_v48 }
 0x158   : > { %v1317_v32 = vadd.f32 %v1293_v23, %v1239_v62  ;;  %v1524_v57 = vmul.f32 %v8204_v38, %v1111_v2  ;;  %v2007_v5 = vadd.f32 %v1983_v6, %v1930_v42  ;;  %v1601_v14 = vmul.f32 %v8211_v47, %v1188_v40  ;;  %v8328_v62 = vld [vmem:[%s9494_s1 + $0x14] ss:$0 sm:$0xff]  ;;  %v568_v42 = vld [vmem:[#allocation2 + $0x99] sm:$0xf] }
 0x159   : > { %v1087_v39 = vadd.f32 %v1063_v24, %v1010_v46  ;;  %v1677_v1 = vmul.f32 %v8269_v12, %v880_v17  ;;  %v2391_v49 = vadd.f32 %v2367_v16, %v2314_v50  ;;  %v1754_v61 = vmul.f32 %v8275_v4, %v957_v25  ;;  %v570_v46 = vld [vmem:[#allocation2 + $0xa9] sm:$0xf] }
 0x15a   : > { %v1394_v60 = vadd.f32 %v1370_v11, %v1317_v32  ;;  %v1831_v0 = vmul.f32 %v8282_v36, %v1034_v48  ;;  %v1908_v33 = vmul.f32 %v8291_v28, %v1111_v2  ;;  %v2061_v6 = vmul.f32 %v8328_v62, %v880_v17 }
 0x15b   : > { %v1164_v31 = vadd.f32 %v1140_v29, %v1087_v39  ;;  %v1701_v63 = vadd.f32 %v1677_v1, %v1623_v10  ;;  %v2415_v16 = vmax.f32 %v2391_v49, 0.0  ;;  %v1985_v43 = vmul.f32 %v8297_v35, %v1188_v40  ;;  %v649_v49 = vld [vmem:[#allocation2 + $0xba] sm:$0xf] }
 0x15c   : > { %v1471_v18 = vadd.f32 %v1447_v22, %v1394_v60  ;;  %v2138_v24 = vmul.f32 %v7718_v26, %v957_v25  ;;  %v2085_v29 = vadd.f32 %v2061_v6, %v2007_v5  ;;  %v2215_v23 = vmul.f32 %v7729_v44, %v1034_v48  ;;  %v572_v22 = vld [vmem:[#allocation2 + $0xb9] sm:$0xf]  ;;  %v647_v48 = vld [vmem:[#allocation2 + $0xaa] sm:$0xf] }
 0x15d   : > { %v1778_v9 = vadd.f32 %v1754_v61, %v1701_v63  ;;  %v2292_v10 = vmul.f32 %v7741_v30, %v1111_v2  ;;  %2440 = vst.msk [vmem:[#allocation3 + $0x70] sm:$0xff] %vm432_vm0, %v2415_v16  ;;  %v8336_v17 = vadd.f32 %v1217_v34, %v1164_v31  ;;  %v520_v11 = vmul.f32 %v7945_v15, %v491_v20  ;;  %v645_v44 = vld [vmem:[#allocation2 + $0x9a] sm:$0xf]  ;;  %v724_v31 = vld [vmem:[#allocation2 + $0xab] sm:$0xf] }
 0x15e   : > { %v522_v50 = vmul.f32 %v7945_v15, %v493_v54  ;;  %v524_v32 = vmul.f32 %v7945_v15, %v495_v19  ;;  %v1548_v26 = vadd.f32 %v1524_v57, %v1471_v18  ;;  %v2162_v39 = vadd.f32 %v2138_v24, %v2085_v29  ;;  %v726_v19 = vld [vmem:[#allocation2 + $0xbb] sm:$0xf] }
 0x15f   : > { %v1855_v25 = vadd.f32 %v1831_v0, %v1778_v9  ;;  %v597_v5 = vmul.f32 %v7957_v13, %v568_v42  ;;  %v544_v30 = vadd.f32 %v7966_v27, %v520_v11  ;;  %v599_v1 = vmul.f32 %v7957_v13, %v570_v46  ;;  %v722_v0 = vld [vmem:[#allocation2 + $0x9b] sm:$0xf]  ;;  %v801_v42 = vld [vmem:[#allocation2 + $0xac] sm:$0xf] }
 0x160   : > { %v546_v2 = vadd.f32 %v7966_v27, %v522_v50  ;;  %v548_v34 = vadd.f32 %v7966_v27, %v524_v32  ;;  %v2239_v61 = vadd.f32 %v2215_v23, %v2162_v39  ;;  %v2369_v15 = vmul.f32 %v7752_v52, %v1188_v40  ;;  %v799_v24 = vld [vmem:[#allocation2 + $0x9c] sm:$0xf]  ;;  %v877_v23 = vld [vmem:[#allocation2 + $0xa8] sm:$0xf] }
 0x161   : > { %v1932_v60 = vadd.f32 %v1908_v33, %v1855_v25  ;;  %v601_v57 = vmul.f32 %v7957_v13, %v572_v22  ;;  %v621_v63 = vadd.f32 %v597_v5, %v544_v30  ;;  %v674_v20 = vmul.f32 %v7972_v3, %v645_v44  ;;  %v803_v29 = vld [vmem:[#allocation2 + $0xbc] sm:$0xf]  ;;  %v881_v32 = vld [vmem:[#allocation2 + $0xc8] sm:$0xf] }
 0x162   : > { %v623_v6 = vadd.f32 %v599_v1, %v546_v2  ;;  %v676_v54 = vmul.f32 %v7972_v3, %v647_v48  ;;  %v8350_v16 = vadd.f32 %v1601_v14, %v1548_v26  ;;  %v2316_v27 = vadd.f32 %v2292_v10, %v2239_v61  ;;  %v879_v10 = vld [vmem:[#allocation2 + $0xb8] sm:$0xf]  ;;  %v954_v39 = vld [vmem:[#allocation2 + $0xa9] sm:$0xf] }
 0x163   : > { %v625_v18 = vadd.f32 %v601_v57, %v548_v34  ;;  %v678_v33 = vmul.f32 %v7972_v3, %v649_v49  ;;  %v698_v52 = vadd.f32 %v674_v20, %v621_v63  ;;  %v751_v13 = vmul.f32 %v7980_v51, %v722_v0  ;;  %v956_v5 = vld [vmem:[#allocation2 + $0xb9] sm:$0xf]  ;;  %v958_v44 = vld [vmem:[#allocation2 + $0xc9] sm:$0xf] }
 0x164   : > { %v700_v40 = vadd.f32 %v676_v54, %v623_v6  ;;  %v753_v9 = vmul.f32 %v7980_v51, %v724_v31  ;;  %v8355_v46 = vadd.f32 %v1985_v43, %v1932_v60  ;;  %v2393_v11 = vadd.f32 %v2369_v15, %v2316_v27  ;;  %v1031_v34 = vld [vmem:[#allocation2 + $0xaa] sm:$0xf]  ;;  %v1033_v1 = vld [vmem:[#allocation2 + $0xba] sm:$0xf] }
 0x165   : > { %v702_v50 = vadd.f32 %v678_v33, %v625_v18  ;;  %v755_v14 = vmul.f32 %v7980_v51, %v726_v19  ;;  %v775_v22 = vadd.f32 %v751_v13, %v698_v52  ;;  %v828_v26 = vmul.f32 %v7989_v45, %v799_v24  ;;  %v1035_v15 = vld [vmem:[#allocation2 + $0xca] sm:$0xf]  ;;  %v1110_v0 = vld [vmem:[#allocation2 + $0xbb] sm:$0xf] }
 0x166   : > { %v777_v3 = vadd.f32 %v753_v9, %v700_v40  ;;  %v830_v25 = vmul.f32 %v7989_v45, %v801_v42  ;;  %v2417_v48 = vmax.f32 %v2393_v11, 0.0  ;;  %v832_v43 = vmul.f32 %v7989_v45, %v803_v29  ;;  %v1108_v57 = vld [vmem:[#allocation2 + $0xab] sm:$0xf]  ;;  %v1187_v33 = vld [vmem:[#allocation2 + $0xbc] sm:$0xf] }
 0x167   : > { %v779_v30 = vadd.f32 %v755_v14, %v702_v50  ;;  %v906_v2 = vmul.f32 %v8084_v37, %v877_v23  ;;  %v852_v51 = vadd.f32 %v828_v26, %v775_v22  ;;  %v908_v60 = vmul.f32 %v8084_v37, %v879_v10  ;;  %v1112_v20 = vld [vmem:[#allocation2 + $0xcb] sm:$0xf]  ;;  %v1263_v42 = vld [vmem:[#allocation2 + $0xb8] sm:$0xf] }
 0x168   : > { %v854_v49 = vadd.f32 %v830_v25, %v777_v3  ;;  %v910_v61 = vmul.f32 %v8084_v37, %v881_v32  ;;  %2442 = vst.msk [vmem:[#allocation3 + $0x80] sm:$0xff] %vm432_vm0, %v2417_v48  ;;  %v983_v63 = vmul.f32 %v8093_v58, %v954_v39  ;;  %v985_v45 = vmul.f32 %v8093_v58, %v956_v5  ;;  %v1185_v54 = vld [vmem:[#allocation2 + $0xac] sm:$0xf]  ;;  %v1265_v29 = vld [vmem:[#allocation2 + $0xc8] sm:$0xf] }
 0x169   : > { %v856_v31 = vadd.f32 %v832_v43, %v779_v30  ;;  %v987_v6 = vmul.f32 %v8093_v58, %v958_v44  ;;  %v930_v19 = vadd.f32 %v906_v2, %v852_v51  ;;  %v1060_v18 = vmul.f32 %v8100_v21, %v1031_v34  ;;  %v1189_v24 = vld [vmem:[#allocation2 + $0xcc] sm:$0xf]  ;;  %v1340_v58 = vld [vmem:[#allocation2 + $0xb9] sm:$0xf]  ;;  %v1649_v34 = vld [vmem:[#allocation2 + $0xc8] sm:$0xf] }
 0x16a   : > { %v932_v27 = vadd.f32 %v908_v60, %v854_v49  ;;  %v1062_v37 = vmul.f32 %v8100_v21, %v1033_v1  ;;  %v1064_v40 = vmul.f32 %v8100_v21, %v1035_v15  ;;  %v1137_v13 = vmul.f32 %v8114_v7, %v1108_v57  ;;  %v1342_v10 = vld [vmem:[#allocation2 + $0xc9] sm:$0xf]  ;;  %v1417_v32 = vld [vmem:[#allocation2 + $0xba] sm:$0xf] }
 0x16b   : > { %v934_v52 = vadd.f32 %v910_v61, %v856_v31  ;;  %v1139_v9 = vmul.f32 %v8114_v7, %v1110_v0  ;;  %v1007_v23 = vadd.f32 %v983_v63, %v930_v19  ;;  %v1141_v50 = vmul.f32 %v8114_v7, %v1112_v20  ;;  %v1419_v22 = vld [vmem:[#allocation2 + $0xca] sm:$0xf]  ;;  %v1494_v39 = vld [vmem:[#allocation2 + $0xbb] sm:$0xf] }
 0x16c   : > { %v1009_v11 = vadd.f32 %v985_v45, %v932_v27  ;;  %v1214_v14 = vmul.f32 %v8124_v8, %v1185_v54  ;;  %v1216_v26 = vmul.f32 %v8124_v8, %v1187_v33  ;;  %v1218_v21 = vmul.f32 %v8124_v8, %v1189_v24  ;;  %v1496_v5 = vld [vmem:[#allocation2 + $0xcb] sm:$0xf]  ;;  %v1571_v43 = vld [vmem:[#allocation2 + $0xbc] sm:$0xf] }
 0x16d   : > { %v1011_v3 = vadd.f32 %v987_v6, %v934_v52  ;;  %v1292_v25 = vmul.f32 %v8107_v59, %v1263_v42  ;;  %v1084_v44 = vadd.f32 %v1060_v18, %v1007_v23  ;;  %v1294_v30 = vmul.f32 %v8107_v59, %v1265_v29  ;;  %v1573_v2 = vld [vmem:[#allocation2 + $0xcc] sm:$0xf]  ;;  %v1267_v6 = vld [vmem:[#allocation2 + $0xd8] sm:$0xf] }
 0x16e   : > { %v1086_v48 = vadd.f32 %v1062_v37, %v1009_v11  ;;  %v1369_v7 = vmul.f32 %v8190_v55, %v1340_v58  ;;  %v1371_v51 = vmul.f32 %v8190_v55, %v1342_v10  ;;  %v1446_v49 = vmul.f32 %v8197_v41, %v1417_v32  ;;  %v1726_v60 = vld [vmem:[#allocation2 + $0xc9] sm:$0xf]  ;;  %v1344_v18 = vld [vmem:[#allocation2 + $0xd9] sm:$0xf] }
 0x16f   : > { %v1088_v1 = vadd.f32 %v1064_v40, %v1011_v3  ;;  %v1448_v8 = vmul.f32 %v8197_v41, %v1419_v22  ;;  %v1803_v61 = vld [vmem:[#allocation2 + $0xca] sm:$0xf]  ;;  %v1161_v15 = vadd.f32 %v1137_v13, %v1084_v44  ;;  %v8384_v0 = vmul.f32 %v8204_v38, %v1494_v39  ;;  %v1421_v37 = vld [vmem:[#allocation2 + $0xda] sm:$0xf] }
 0x170   : > { %v1163_v57 = vadd.f32 %v1139_v9, %v1086_v48  ;;  %v8387_v31 = vmul.f32 %v8204_v38, %v1496_v5  ;;  %v1880_v63 = vld [vmem:[#allocation2 + $0xcb] sm:$0xf]  ;;  %v8390_v54 = vmul.f32 %v8211_v47, %v1571_v43  ;;  %v8393_v19 = vmul.f32 %v8211_v47, %v1573_v2  ;;  %v1498_v40 = vld [vmem:[#allocation2 + $0xdb] sm:$0xf] }
 0x171   : > { %v1957_v45 = vld [vmem:[#allocation2 + $0xcc] sm:$0xf]  ;;  %v1165_v20 = vadd.f32 %v1141_v50, %v1088_v1  ;;  %v8396_v27 = vmul.f32 %v8269_v12, %v1649_v34  ;;  %v1238_v33 = vadd.f32 %v1214_v14, %v1161_v15  ;;  %v8399_v42 = vmul.f32 %v8275_v4, %v1726_v60  ;;  %v1575_v13 = vld [vmem:[#allocation2 + $0xdc] sm:$0xf]  ;;  %v1651_v9 = vld [vmem:[#allocation2 + $0xd8] sm:$0xf] }
 0x172   : > { %v1240_v24 = vadd.f32 %v1216_v26, %v1163_v57  ;;  %v8402_v52 = vmul.f32 %v8282_v36, %v1803_v61  ;;  %v8405_v58 = vmul.f32 %v8291_v28, %v1880_v63  ;;  %v8408_v23 = vmul.f32 %v8297_v35, %v1957_v45  ;;  %v1728_v50 = vld [vmem:[#allocation2 + $0xd9] sm:$0xf]  ;;  %v1266_v57 = vld [vmem:[#allocation2 + $0xd0] sm:$0xff] }
 0x173   : > { %v1242_v29 = vadd.f32 %v1218_v21, %v1165_v20  ;;  %v1296_v11 = vmul.f32 %v8107_v59, %v1267_v6  ;;  %v1805_v14 = vld [vmem:[#allocation2 + $0xda] sm:$0xf]  ;;  %v1316_v10 = vadd.f32 %v1292_v25, %v1238_v33  ;;  %v1373_v22 = vmul.f32 %v8190_v55, %v1344_v18  ;;  %v1343_v18 = vld [vmem:[#allocation2 + $0xd1] sm:$0xff] }
 0x174   : > { %v1318_v32 = vadd.f32 %v1294_v30, %v1240_v24  ;;  %v1450_v3 = vmul.f32 %v8197_v41, %v1421_v37  ;;  %v1882_v26 = vld [vmem:[#allocation2 + $0xdb] sm:$0xf]  ;;  %v1527_v44 = vmul.f32 %v8204_v38, %v1498_v40  ;;  %v1604_v48 = vmul.f32 %v8211_v47, %v1575_v13  ;;  %v8430_v33 = vld [vmem:[%s9494_s1 + $0x15] ss:$0 sm:$0xff]  ;;  %v8438_v40 = vld [vmem:[%s9494_s1 + $0x16] ss:$0 sm:$0xff] }
 0x175   : > { %v1959_v39 = vld [vmem:[#allocation2 + $0xdc] sm:$0xf]  ;;  %v2035_v5 = vld [vmem:[#allocation2 + $0xd8] sm:$0xf]  ;;  %v1320_v21 = vadd.f32 %v1296_v11, %v1242_v29  ;;  %v1680_v43 = vmul.f32 %v8269_v12, %v1651_v9  ;;  %v1393_v1 = vadd.f32 %v1369_v7, %v1316_v10  ;;  %v1757_v25 = vmul.f32 %v8275_v4, %v1728_v50 }
 0x176   : > { %v2112_v2 = vld [vmem:[#allocation2 + $0xd9] sm:$0xf]  ;;  %v1395_v60 = vadd.f32 %v1371_v51, %v1318_v32  ;;  %v1834_v30 = vmul.f32 %v8282_v36, %v1805_v14  ;;  %v8419_v45 = vmul.f32 %v8291_v28, %v1882_v26  ;;  %v8422_v6 = vmul.f32 %v8297_v35, %v1959_v39  ;;  %v8454_v11 = vld [vmem:[%s9494_s1 + $0x18] ss:$0 sm:$0xff] }
 0x177   : > { %v2189_v34 = vld [vmem:[#allocation2 + $0xda] sm:$0xf]  ;;  %v1397_v63 = vadd.f32 %v1373_v22, %v1320_v21  ;;  %v8425_v20 = vmul.f32 %v8328_v62, %v2035_v5  ;;  %v1420_v7 = vld [vmem:[#allocation2 + $0xd2] sm:$0xff]  ;;  %v1470_v51 = vadd.f32 %v1446_v49, %v1393_v1  ;;  %v8433_v24 = vmul.f32 %v8430_v33, %v2112_v2 }
 0x178   : > { %v2266_v61 = vld [vmem:[#allocation2 + $0xdb] sm:$0xf]  ;;  %v1472_v37 = vadd.f32 %v1448_v8, %v1395_v60  ;;  %v8441_v13 = vmul.f32 %v8438_v40, %v2189_v34  ;;  %v1497_v9 = vld [vmem:[#allocation2 + $0xd3] sm:$0xff]  ;;  %v1295_v14 = vmul.f32 %v8107_v59, %v1266_v57  ;;  %v1449_v26 = vmul.f32 %v8197_v41, %v1420_v7 }
 0x179   : > { %v2343_v15 = vld [vmem:[#allocation2 + $0xdc] sm:$0xf]  ;;  %v1474_v29 = vadd.f32 %v1450_v3, %v1397_v63  ;;  %v8446_v49 = vld [vmem:[%s9494_s1 + $0x17] ss:$0 sm:$0xff]  ;;  %v1547_v32 = vadd.f32 %v8384_v0, %v1470_v51  ;;  %v1372_v3 = vmul.f32 %v8190_v55, %v1343_v18  ;;  %v1526_v21 = vmul.f32 %v8204_v38, %v1497_v9 }
 0x17a   : > { %v8449_v8 = vmul.f32 %v8446_v49, %v2266_v61  ;;  %v8457_v50 = vmul.f32 %v8454_v11, %v2343_v15  ;;  %v1574_v10 = vld [vmem:[#allocation2 + $0xd4] sm:$0xff]  ;;  %v1549_v22 = vadd.f32 %v8387_v31, %v1472_v37  ;;  %v1319_v5 = vadd.f32 %v1295_v14, %v8336_v17  ;;  %v1730_v14 = vld [vmem:[#allocation2 + $0xe9] sm:$0xf] }
 0x17b   : > { %v1551_v39 = vadd.f32 %v1527_v44, %v1474_v29  ;;  %v1679_v2 = vmul.f32 %v8269_v12, %v1266_v57  ;;  %v1624_v34 = vadd.f32 %v8390_v54, %v1547_v32  ;;  %v1603_v1 = vmul.f32 %v8211_v47, %v1574_v10  ;;  %v1653_v54 = vld [vmem:[#allocation2 + $0xe8] sm:$0xf] }
 0x17c   : > { %v1626_v59 = vadd.f32 %v8393_v19, %v1549_v22  ;;  %v1756_v0 = vmul.f32 %v8275_v4, %v1343_v18  ;;  %v1396_v31 = vadd.f32 %v1372_v3, %v1319_v5  ;;  %v1833_v41 = vmul.f32 %v8282_v36, %v1420_v7 }
 0x17d   : > { %v1703_v55 = vadd.f32 %v1679_v2, %v8350_v16  ;;  %v1910_v44 = vmul.f32 %v8291_v28, %v1497_v9  ;;  %v1702_v17 = vadd.f32 %v8396_v27, %v1624_v34  ;;  %v1628_v38 = vadd.f32 %v1604_v48, %v1551_v39  ;;  %v1807_v27 = vld [vmem:[#allocation2 + $0xea] sm:$0xf] }
 0x17e   : > { %v1704_v60 = vadd.f32 %v1680_v43, %v1626_v59  ;;  %v2063_v61 = vmul.f32 %v8328_v62, %v1266_v57  ;;  %v1473_v15 = vadd.f32 %v1449_v26, %v1396_v31  ;;  %v1987_v47 = vmul.f32 %v8297_v35, %v1574_v10 }
 0x17f   : > { %v1780_v19 = vadd.f32 %v1756_v0, %v1703_v55  ;;  %v2140_v63 = vmul.f32 %v8430_v33, %v1343_v18  ;;  %v1779_v51 = vadd.f32 %v8399_v42, %v1702_v17  ;;  %v2217_v29 = vmul.f32 %v8438_v40, %v1420_v7  ;;  %v1884_v42 = vld [vmem:[#allocation2 + $0xeb] sm:$0xf]  ;;  %v1652_v0 = vld [vmem:[#allocation2 + $0xe0] sm:$0xff] }
 0x180   : > { %v1781_v16 = vadd.f32 %v1757_v25, %v1704_v60  ;;  %v2087_v37 = vadd.f32 %v2063_v61, %v8355_v46  ;;  %v1550_v48 = vadd.f32 %v1526_v21, %v1473_v15  ;;  %v2294_v57 = vmul.f32 %v8446_v49, %v1497_v9  ;;  %v1961_v25 = vld [vmem:[#allocation2 + $0xec] sm:$0xf]  ;;  %v2037_v21 = vld [vmem:[#allocation2 + $0xe8] sm:$0xf] }
 0x181   : > { %v1857_v43 = vadd.f32 %v1833_v41, %v1780_v19  ;;  %v1682_v32 = vmul.f32 %v8269_v12, %v1653_v54  ;;  %v1856_v22 = vadd.f32 %v8402_v52, %v1779_v51  ;;  %v2371_v18 = vmul.f32 %v8454_v11, %v1574_v10  ;;  %v2114_v52 = vld [vmem:[#allocation2 + $0xe9] sm:$0xf] }
 0x182   : > { %v1858_v3 = vadd.f32 %v1834_v30, %v1781_v16  ;;  %v2164_v26 = vadd.f32 %v2140_v63, %v2087_v37  ;;  %v1759_v7 = vmul.f32 %v8275_v4, %v1730_v14  ;;  %v1836_v5 = vmul.f32 %v8282_v36, %v1807_v27  ;;  %v2191_v30 = vld [vmem:[#allocation2 + $0xea] sm:$0xf] }
 0x183   : > { %v1934_v39 = vadd.f32 %v1910_v44, %v1857_v43  ;;  %v1706_v46 = vadd.f32 %v1682_v32, %v1628_v38  ;;  %v1933_v2 = vadd.f32 %v8405_v58, %v1856_v22  ;;  %v1627_v34 = vadd.f32 %v1603_v1, %v1550_v48  ;;  %v2268_v44 = vld [vmem:[#allocation2 + $0xeb] sm:$0xf]  ;;  %v1729_v1 = vld [vmem:[#allocation2 + $0xe1] sm:$0xff] }
 0x184   : > { %v1935_v9 = vadd.f32 %v8419_v45, %v1858_v3  ;;  %v2241_v59 = vadd.f32 %v2217_v29, %v2164_v26  ;;  %v1913_v55 = vmul.f32 %v8291_v28, %v1884_v42  ;;  %v1990_v41 = vmul.f32 %v8297_v35, %v1961_v25  ;;  %v2345_v45 = vld [vmem:[#allocation2 + $0xec] sm:$0xf]  ;;  %v1960_v48 = vld [vmem:[#allocation2 + $0xe4] sm:$0xff]  ;;  %v2039_v3 = vld [vmem:[#allocation2 + $0xf8] sm:$0xf] }
 0x185   : > { %v2011_v31 = vadd.f32 %v1987_v47, %v1934_v39  ;;  %v1783_v10 = vadd.f32 %v1759_v7, %v1706_v46  ;;  %v2010_v17 = vadd.f32 %v8408_v23, %v1933_v2  ;;  %v2066_v58 = vmul.f32 %v8328_v62, %v2037_v21  ;;  %v1806_v47 = vld [vmem:[#allocation2 + $0xe2] sm:$0xff]  ;;  %v2116_v7 = vld [vmem:[#allocation2 + $0xf9] sm:$0xf] }
 0x186   : > { %v2012_v38 = vadd.f32 %v8422_v6, %v1935_v9  ;;  %v2318_v60 = vadd.f32 %v2294_v57, %v2241_v59  ;;  %v2143_v54 = vmul.f32 %v8430_v33, %v2114_v52  ;;  %v2220_v15 = vmul.f32 %v8438_v40, %v2191_v30  ;;  %v1883_v6 = vld [vmem:[#allocation2 + $0xe3] sm:$0xff]  ;;  %v2270_v59 = vld [vmem:[#allocation2 + $0xfb] sm:$0xf] }
 0x187   : > { %v1860_v61 = vadd.f32 %v1836_v5, %v1783_v10  ;;  %v1681_v19 = vmul.f32 %v8269_v12, %v1652_v0  ;;  %v2088_v63 = vadd.f32 %v8425_v20, %v2010_v17  ;;  %v2297_v23 = vmul.f32 %v8446_v49, %v2268_v44  ;;  %v2038_v10 = vld [vmem:[#allocation2 + $0xf0] sm:$0xff] }
 0x188   : > { %v2395_v51 = vadd.f32 %v2371_v18, %v2318_v60  ;;  %v2090_v16 = vadd.f32 %v2066_v58, %v2012_v38  ;;  %v2374_v29 = vmul.f32 %v8454_v11, %v2345_v45  ;;  %v1758_v27 = vmul.f32 %v8275_v4, %v1729_v1  ;;  %v2115_v38 = vld [vmem:[#allocation2 + $0xf1] sm:$0xff] }
 0x189   : > { %v1937_v37 = vadd.f32 %v1913_v55, %v1860_v61  ;;  %v1705_v14 = vadd.f32 %v1681_v19, %v1627_v34  ;;  %v2165_v43 = vadd.f32 %v8433_v24, %v2088_v63  ;;  %v1835_v22 = vmul.f32 %v8282_v36, %v1806_v47  ;;  %v2193_v34 = vld [vmem:[#allocation2 + $0xfa] sm:$0xf]  ;;  %v2192_v60 = vld [vmem:[#allocation2 + $0xf2] sm:$0xff]  ;;  %v2469_v61 = vld [vmem:[#allocation4] sm:$0xff] }
 0x18a   : > { %v2419_v57 = vmax.f32 %v2395_v51, 0.0  ;;  %v2167_v32 = vadd.f32 %v2143_v54, %v2090_v16  ;;  %v1912_v18 = vmul.f32 %v8291_v28, %v1883_v6  ;;  %v2065_v42 = vmul.f32 %v8328_v62, %v1652_v0  ;;  %v2470_v54 = vld [vmem:[#allocation4 + $0x8] sm:$0xff]  ;;  %v2472_v16 = vld [vmem:[#allocation4 + $0x18] sm:$0xff] }
 0x18b   : > { %v2014_v20 = vadd.f32 %v1990_v41, %v1937_v37  ;;  %v1782_v26 = vadd.f32 %v1758_v27, %v1705_v14  ;;  %v2242_v25 = vadd.f32 %v8441_v13, %v2165_v43  ;;  %v1989_v46 = vmul.f32 %v8297_v35, %v1960_v48  ;;  %v4010_v27 = vld [vmem:[#allocation4 + $0x190] sm:$0xff]  ;;  %v1633_v43 = vld [vmem:[#allocation2 + $0x48] sm:$0xf] }
 0x18c   : > { %2444 = vst.msk [vmem:[#allocation3 + $0x90] sm:$0xff] %vm432_vm0, %v2419_v57  ;;  %v2244_v39 = vadd.f32 %v2220_v15, %v2167_v32  ;;  %v2142_v24 = vmul.f32 %v8430_v33, %v1729_v1  ;;  %v2089_v21 = vadd.f32 %v2065_v42, %v2011_v31  ;;  %v2219_v2 = vmul.f32 %v8438_v40, %v1806_v47  ;;  %v2347_v31 = vld [vmem:[#allocation2 + $0xfc] sm:$0xf]  ;;  %v2471_v15 = vld [vmem:[#allocation4 + $0x10] sm:$0xff]  ;;  %v9576_v42 = vld [vmem:[#allocation11_spill] sm:$0xff] }
 0x18d   : > { %v1859_v5 = vadd.f32 %v1835_v22, %v1782_v26  ;;  %v2068_v9 = vmul.f32 %v8328_v62, %v2039_v3  ;;  %v2319_v52 = vadd.f32 %v8449_v8, %v2242_v25  ;;  %v2296_v13 = vmul.f32 %v8446_v49, %v1883_v6  ;;  %v4009_v6 = vld [vmem:[#allocation4 + $0x188] sm:$0xff]  ;;  %v2269_v26 = vld [vmem:[#allocation2 + $0xf3] sm:$0xff] }
 0x18e   : > { %v2321_v30 = vadd.f32 %v2297_v23, %v2244_v39  ;;  %v2373_v0 = vmul.f32 %v8454_v11, %v1960_v48  ;;  %v2166_v41 = vadd.f32 %v2142_v24, %v2089_v21  ;;  %v2145_v17 = vmul.f32 %v8430_v33, %v2116_v7  ;;  %v4008_v23 = vld [vmem:[#allocation4 + $0x180] sm:$0xff]  ;;  %v4011_v48 = vld [vmem:[#allocation4 + $0x198] sm:$0xff] }
 0x18f   : > { %v1936_v55 = vadd.f32 %v1912_v18, %v1859_v5  ;;  %v2092_v44 = vadd.f32 %v2068_v9, %v2014_v20  ;;  %v2396_v58 = vadd.f32 %v8457_v50, %v2319_v52  ;;  %v2222_v1 = vmul.f32 %v8438_v40, %v2193_v34  ;;  %v1635_v20 = vld [vmem:[#allocation2 + $0x58] sm:$0xf] }
 0x190   : > { %v2398_v45 = vadd.f32 %v2374_v29, %v2321_v30  ;;  %v2299_v8 = vmul.f32 %v8446_v49, %v2270_v59  ;;  %v2243_v47 = vadd.f32 %v2219_v2, %v2166_v41  ;;  %v2067_v51 = vmul.f32 %v8328_v62, %v2038_v10  ;;  %v1712_v2 = vld [vmem:[#allocation2 + $0x59] sm:$0xf]  ;;  %v9580_v59 = vld [vmem:[#allocation8_spill] sm:$0xff] }
 0x191   : > { %v2013_v19 = vadd.f32 %v1989_v46, %v1936_v55  ;;  %v2169_v63 = vadd.f32 %v2145_v17, %v2092_v44  ;;  %v2420_v37 = vmax.f32 %v2396_v58, 0.0  ;;  %v2376_v50 = vmul.f32 %v8454_v11, %v2347_v31  ;;  %v9579_v34 = vld [vmem:[#allocation10_spill] sm:$0xff]  ;;  %v1710_v17 = vld [vmem:[#allocation2 + $0x49] sm:$0xf] }
 0x192   : > { %v2422_v14 = vmax.f32 %v2398_v45, 0.0  ;;  %v2144_v29 = vmul.f32 %v8430_v33, %v2115_v38  ;;  %v2320_v57 = vadd.f32 %v2296_v13, %v2243_v47  ;;  %v2221_v3 = vmul.f32 %v8438_v40, %v2192_v60  ;;  %v2346_v30 = vld [vmem:[#allocation2 + $0xf4] sm:$0xff]  ;;  %v9581_v45 = vld [vmem:[#allocation16_spill] sm:$0xff] }
 0x193   : > { %v2246_v32 = vadd.f32 %v2222_v1, %v2169_v63  ;;  %v2091_v22 = vadd.f32 %v2067_v51, %v2013_v19  ;;  %v6771_v18 = vpack.c.bf16 %v2470_v54, %v2469_v61  ;;  %v2401_v25 = vmax.f32 %v9576_v42, 0.0  ;;  %v1789_v44 = vld [vmem:[#allocation2 + $0x5a] sm:$0xf]  ;;  %2445 = vst.msk [vmem:[#allocation3 + $0x98] sm:$0xf] %vm2426_vm1, %v2420_v37 }
 0x194   : > { %v6775_v39 = vpack.c.bf16 %v2472_v16, %v2471_v15  ;;  %v8523_v46 = vpack.c.bf16 %v4009_v6, %v4008_v23  ;;  %v2397_v24 = vadd.f32 %v2373_v0, %v2320_v57  ;;  %v8525_v21 = vpack.c.bf16 %v4011_v48, %v4010_v27  ;;  %2447 = vst.msk [vmem:[#allocation3 + $0xa8] sm:$0xf] %vm2426_vm1, %v2422_v14  ;;  %v7225_v31 = vld [vmem:[#allocation2 + $0x73] sm:$0xff]  ;;  %v1866_v15 = vld [vmem:[#allocation2 + $0x5b] sm:$0xf] }
 0x195   : > { %v2323_v7 = vadd.f32 %v2299_v8, %v2246_v32  ;;  %v2168_v5 = vadd.f32 %v2144_v29, %v2091_v22  ;;  %v1662_v9 = vmul.f32 %v8269_v12, %v1633_v43  ;;  %v1761_v52 = vadd.f32 %v9580_v59, %v9579_v34  ;;  %6772 = vmatprep.subr.bf16.mxu1 %v6771_v18  ;;  %v479_v58 = vld [vmem:[#allocation2 + $0x38] sm:$0xf]  ;;  %v1943_v14 = vld [vmem:[#allocation2 + $0x5c] sm:$0xf]  ;;  %v1787_v27 = vld [vmem:[#allocation2 + $0x4a] sm:$0xf] }
 0x196   : > { %9577 = vst [vmem:[#allocation19_spill] sm:$0xff] %v8523_v46  ;;  %9578 = vst [vmem:[#allocation7_spill] sm:$0xff] %v8525_v21  ;;  %6868 = vmatprep.subr.bf16.mxu0 %v8523_v46  ;;  %v1664_v13 = vmul.f32 %v8269_v12, %v1635_v20  ;;  %v2421_v0 = vmax.f32 %v2397_v24, 0.0  ;;  %v2298_v41 = vmul.f32 %v8446_v49, %v2269_v26  ;;  %6774 = vmatpush3.bf16.msra.mxu1 %v6771_v18  ;;  %v7226_v19 = vld [vmem:[#allocation2 + $0x74] sm:$0xff]  ;;  %v8560_v18 = vld [vmem:[#allocation3 + $0x20] sm:$0xff] }
 0x197   : > { %2425 = vst.msk [vmem:[#allocation3] sm:$0xff] %vm432_vm0, %v2401_v25  ;;  %v2400_v10 = vadd.f32 %v2376_v50, %v2323_v7  ;;  %v2245_v55 = vadd.f32 %v2221_v3, %v2168_v5  ;;  %6870 = vmatpush3.bf16.msra.mxu0 %v8523_v46  ;;  %v2282_v38 = vmul.f32 %v7225_v31, %v8446_v49  ;;  %v556_v16 = vld [vmem:[#allocation2 + $0x39] sm:$0xf]  ;;  %v8553_v50 = vld [vmem:[%s9494_s1] ss:$0 sm:$0xff]  ;;  %v8557_v43 = vld [vmem:[#allocation3 + $0x10] sm:$0xff] }
 0x198   : > { %6776 = vmatprep.subr.bf16.mxu1 %v6775_v39  ;;  %6872 = vmatprep.subr.bf16.mxu0 %v8525_v21  ;;  %v1688_v12 = vadd.f32 %v1664_v13, %v8066_v56  ;;  %v1741_v60 = vmul.f32 %v8275_v4, %v1712_v2  ;;  %v1686_v1 = vadd.f32 %v1662_v9, %v9581_v45  ;;  %v1862_v23 = vld [vmem:[#allocation2 + $0x3b] sm:$0xf]  ;;  %v2021_v42 = vld [vmem:[#allocation2 + $0x68] sm:$0xf]  ;;  %v8565_v25 = vld [vmem:[%s9495_s2] ss:$0 sm:$0xff] }
 0x199   : > { %2446 = vst.msk [vmem:[#allocation3 + $0xa0] sm:$0xff] %vm432_vm0, %v2421_v0  ;;  %v2424_v8 = vmax.f32 %v2400_v10, 0.0  ;;  %v2322_v61 = vadd.f32 %v2298_v41, %v2245_v55  ;;  %v2375_v54 = vmul.f32 %v8454_v11, %v2346_v30  ;;  %v2359_v47 = vmul.f32 %v7226_v19, %v8454_v11  ;;  %v633_v22 = vld [vmem:[#allocation2 + $0x3a] sm:$0xf]  ;;  %v8571_v24 = vld [vmem:[%s9494_s1 + $0x1] ss:$0 sm:$0xff] }
 0x19a   : > { %v1765_v63 = vadd.f32 %v1741_v60, %v1688_v12  ;;  %v1818_v51 = vmul.f32 %v8282_v36, %v1789_v44  ;;  %v2306_v56 = vadd.f32 %v2282_v38, %v8307_v53  ;;  %v1739_v6 = vmul.f32 %v8275_v4, %v1710_v17  ;;  %6778 = vmatpush3.bf16.msra.mxu1 %v6775_v39  ;;  %v9582_v53 = vld [vmem:[#allocation9_spill] sm:$0xff]  ;;  %v710_v34 = vld [vmem:[#allocation2 + $0x3b] sm:$0xf]  ;;  %v2098_v30 = vld [vmem:[#allocation2 + $0x69] sm:$0xf] }
 0x19b   : > { %v2399_v37 = vadd.f32 %v2375_v54, %v2322_v61  ;;  %2449 = vst.msk [vmem:[#allocation3 + $0xb8] sm:$0xf] %vm2426_vm1, %v2424_v8  ;;  %6874 = vmatpush3.bf16.msra.mxu0 %v8525_v21  ;;  %v508_v29 = vmul.f32 %v8553_v50, %v479_v58  ;;  %v1838_v48 = vadd.f32 %v9582_v53, %v1761_v52  ;;  %v8584_v0 = vld [vmem:[%s9494_s1 + $0x2] ss:$0 sm:$0xff]  ;;  %v1939_v55 = vld [vmem:[#allocation2 + $0x3c] sm:$0xf] }
 0x19c   : > { %v1842_v4 = vadd.f32 %v1818_v51, %v1765_v63  ;;  %v1895_v57 = vmul.f32 %v8291_v28, %v1866_v15  ;;  %v2383_v32 = vadd.f32 %v2359_v47, %v2306_v56  ;;  %v1763_v3 = vadd.f32 %v1739_v6, %v1686_v1  ;;  %v1864_v41 = vld [vmem:[#allocation2 + $0x4b] sm:$0xf]  ;;  %v787_v17 = vld [vmem:[#allocation2 + $0x3c] sm:$0xf]  ;;  %v8594_v58 = vld [vmem:[%s9494_s1 + $0x3] ss:$0 sm:$0xff] }
 0x19d   : > { %v2423_v20 = vmax.f32 %v2399_v37, 0.0  ;;  %v532_v39 = vadd.f32 %v8565_v25, %v508_v29  ;;  %v585_v7 = vmul.f32 %v8571_v24, %v556_v16  ;;  %v1972_v2 = vmul.f32 %v8297_v35, %v1943_v14  ;;  %v2175_v12 = vld [vmem:[#allocation2 + $0x6a] sm:$0xf]  ;;  %v8603_v56 = vld [vmem:[%s9494_s1 + $0x4] ss:$0 sm:$0xff] }
 0x19e   : > { %v2457_v26 = vld [vmem:[#allocation3] sm:$0xff]  ;;  %v1919_v5 = vadd.f32 %v1895_v57, %v1842_v4  ;;  %v2407_v9 = vmax.f32 %v2383_v32, 0.0  ;;  %v1891_v59 = vmul.f32 %v8291_v28, %v1862_v23  ;;  %v1816_v52 = vmul.f32 %v8282_v36, %v1787_v27  ;;  %v481_v1 = vld [vmem:[#allocation2 + $0x48] sm:$0xf]  ;;  %v2329_v63 = vld [vmem:[#allocation2 + $0x6c] sm:$0xf] }
 0x19f   : > { %6279 = vmatprep.mubr.msk.f32.mxu1 %vm432_vm0, %v2457_v26  ;;  %2448 = vst.msk [vmem:[#allocation3 + $0xb0] sm:$0xff] %vm432_vm0, %v2423_v20  ;;  %v609_v13 = vadd.f32 %v585_v7, %v532_v39  ;;  %v662_v10 = vmul.f32 %v8584_v0, %v633_v22  ;;  %v2050_v44 = vmul.f32 %v8328_v62, %v2021_v42  ;;  %v2252_v54 = vld [vmem:[#allocation2 + $0x6b] sm:$0xf]  ;;  %v8615_v57 = vld [vmem:[%s9494_s1 + $0x5] ss:$0 sm:$0xff] }
 0x1a0   : > { %6280 = vmatmul.mubr.msk.f32.vlgmr.msra.gmra.mrb[0].mxu1 %vm432_vm0, %v8557_v43  ;;  %v1996_v36 = vadd.f32 %v1972_v2, %v1919_v5  ;;  %2432 = vst.msk [vmem:[#allocation3 + $0x30] sm:$0xff] %vm432_vm0, %v2407_v9  ;;  %v1915_v31 = vadd.f32 %v1891_v59, %v1838_v48  ;;  %v1840_v38 = vadd.f32 %v1816_v52, %v1763_v3  ;;  %v865_v15 = vld [vmem:[#allocation2 + $0x48] sm:$0xf]  ;;  %v1173_v53 = vld [vmem:[#allocation2 + $0x4c] sm:$0xf]  ;;  %v8619_v5 = vld [vmem:[#allocation3 + $0x40] sm:$0xff] }
 0x1a1   : > { %6282 = vmatprep.mubr.msk.f32.mxu1 %vm432_vm0, %v8560_v18  ;;  %v686_v60 = vadd.f32 %v662_v10, %v609_v13  ;;  %v739_v45 = vmul.f32 %v8594_v58, %v710_v34  ;;  %v2127_v61 = vmul.f32 %v8430_v33, %v2098_v30  ;;  %v1968_v19 = vmul.f32 %v8297_v35, %v1939_v55  ;;  %v942_v23 = vld [vmem:[#allocation2 + $0x49] sm:$0xf]  ;;  %v1251_v22 = vld [vmem:[#allocation2 + $0x58] sm:$0xf]  ;;  %v8629_v30 = vld [vmem:[%s9494_s1 + $0x6] ss:$0 sm:$0xff] }
 0x1a2   : > { %v2074_v8 = vadd.f32 %v2050_v44, %v1996_v36  ;;  %v1893_v47 = vmul.f32 %v8291_v28, %v1864_v41  ;;  %v816_v16 = vmul.f32 %v8603_v56, %v787_v17  ;;  %v558_v6 = vld [vmem:[#allocation2 + $0x49] sm:$0xf]  ;;  %v2204_v14 = vmul.f32 %v8438_v40, %v2175_v12  ;;  %v1328_v3 = vld [vmem:[#allocation2 + $0x59] sm:$0xf]  ;;  %9585 = vst [vmem:[#allocation24_spill] sm:$0xff] %v8619_v5 }
 0x1a3   : > { %v763_v51 = vadd.f32 %v739_v45, %v686_v60  ;;  %v1019_v29 = vld [vmem:[#allocation2 + $0x4a] sm:$0xf]  ;;  %v510_v35 = vmul.f32 %v8553_v50, %v481_v1  ;;  %v8608_v28 = vadd.f32 %v1968_v19, %v1915_v31  ;;  %v894_v32 = vmul.f32 %v8615_v57, %v865_v15  ;;  %v1405_v39 = vld [vmem:[#allocation2 + $0x5a] sm:$0xf]  ;;  %v8635_v10 = vld [vmem:[%s9494_s1 + $0x7] ss:$0 sm:$0xff] }
 0x1a4   : > { %v2151_v37 = vadd.f32 %v2127_v61, %v2074_v8  ;;  %v1096_v27 = vld [vmem:[#allocation2 + $0x4b] sm:$0xf]  ;;  %v8610_v48 = vadd.f32 %v1893_v47, %v1840_v38  ;;  %v2281_v42 = vmul.f32 %v8446_v49, %v2252_v54  ;;  %v1482_v7 = vld [vmem:[#allocation2 + $0x5b] sm:$0xf]  ;;  %v587_v9 = vmul.f32 %v8571_v24, %v558_v6  ;;  %v8643_v17 = vld [vmem:[%s9494_s1 + $0x8] ss:$0 sm:$0xff] }
 0x1a5   : > { %9583 = vst [vmem:[#allocation18_spill] sm:$0xff] %v8608_v28  ;;  %v840_v4 = vadd.f32 %v816_v16, %v763_v51  ;;  %v635_v20 = vld [vmem:[#allocation2 + $0x4a] sm:$0xf]  ;;  %v534_v2 = vadd.f32 %v8565_v25, %v510_v35  ;;  %v2358_v34 = vmul.f32 %v8454_v11, %v2329_v63  ;;  %v971_v13 = vmul.f32 %v8629_v30, %v942_v23  ;;  %v1559_v41 = vld [vmem:[#allocation2 + $0x5c] sm:$0xf]  ;;  %v8671_v6 = vld [vmem:[#allocation3 + $0x50] sm:$0xff] }
 0x1a6   : > { %9584 = vst [vmem:[#allocation15_spill] sm:$0xff] %v8610_v48  ;;  %v2228_v26 = vadd.f32 %v2204_v14, %v2151_v37  ;;  %v1048_v55 = vmul.f32 %v8635_v10, %v1019_v29  ;;  %v712_v36 = vld [vmem:[#allocation2 + $0x4b] sm:$0xf]  ;;  %v1125_v31 = vmul.f32 %v8643_v17, %v1096_v27  ;;  %v664_v45 = vmul.f32 %v8584_v0, %v635_v20  ;;  %v8650_v61 = vld [vmem:[%s9494_s1 + $0x9] ss:$0 sm:$0xff] }
 0x1a7   : > { %v8624_v59 = vld [vmem:[#allocation3 + $0x30] sm:$0xff]  ;;  %v918_v52 = vadd.f32 %v894_v32, %v840_v4  ;;  %v1637_v38 = vld [vmem:[#allocation2 + $0x68] sm:$0xf]  ;;  %v611_v60 = vadd.f32 %v587_v9, %v534_v2  ;;  %v789_v1 = vld [vmem:[#allocation2 + $0x4c] sm:$0xf]  ;;  %v1202_v54 = vmul.f32 %v8650_v61, %v1173_v53  ;;  %9587 = vst [vmem:[#allocation28_spill] sm:$0xff] %v8671_v6  ;;  %v741_v35 = vmul.f32 %v8594_v58, %v712_v36 }
 0x1a8   : > { %9586 = vst [vmem:[#allocation17_spill] sm:$0xff] %v8624_v59  ;;  %v2305_v44 = vadd.f32 %v2281_v42, %v2228_v26  ;;  %6283 = vmatmul.mubr.msk.f32.gmra.mrb[2].mxu1 %vm432_vm0, %v8624_v59  ;;  %v1714_v12 = vld [vmem:[#allocation2 + $0x69] sm:$0xf]  ;;  %v867_v23 = vld [vmem:[#allocation2 + $0x58] sm:$0xf]  ;;  %v4129_v4 = vld [vmem:[#allocation4 + $0x220] sm:$0xff] }
 0x1a9   : > { %v995_v8 = vadd.f32 %v971_v13, %v918_v52  ;;  %v8656_v15 = vld [vmem:[%s9494_s1 + $0xa] ss:$0 sm:$0xff]  ;;  %v8664_v47 = vld [vmem:[%s9494_s1 + $0xb] ss:$0 sm:$0xff]  ;;  %6285 = vmatprep.mubr.msk.f32.mxu1 %vm432_vm0, %v8619_v5  ;;  %v8676_v14 = vld [vmem:[%s9494_s1 + $0xc] ss:$0 sm:$0xff]  ;;  %v688_v53 = vadd.f32 %v664_v45, %v611_v60  ;;  %v818_v45 = vmul.f32 %v8603_v56, %v789_v1 }
 0x1aa   : > { %v8659_v19 = vmul.f32 %v8656_v15, %v1251_v22  ;;  %v8667_v63 = vmul.f32 %v8664_v47, %v1328_v3  ;;  %v1791_v51 = vld [vmem:[#allocation2 + $0x6a] sm:$0xf]  ;;  %v2382_v37 = vadd.f32 %v2358_v34, %v2305_v44  ;;  %v8679_v29 = vmul.f32 %v8676_v14, %v1405_v39  ;;  %v483_v32 = vld [vmem:[#allocation2 + $0x58] sm:$0xf]  ;;  %v8682_v22 = vld [vmem:[#allocation3 + $0x60] sm:$0xff] }
 0x1ab   : > { %v1868_v16 = vld [vmem:[#allocation2 + $0x6b] sm:$0xf]  ;;  %9588 = vst [vmem:[#allocation20_spill] sm:$0xff] %v8682_v22  ;;  %v1072_v3 = vadd.f32 %v1048_v55, %v995_v8  ;;  %v8703_v2 = vld [vmem:[%s9494_s1 + $0xf] ss:$0 sm:$0xff]  ;;  %v2611_v52 = vld [vmem:[#allocation4 + $0xa0] sm:$0xff]  ;;  %v765_v60 = vadd.f32 %v741_v35, %v688_v53 }
 0x1ac   : > { %v1945_v27 = vld [vmem:[#allocation2 + $0x6c] sm:$0xf]  ;;  %v8706_v9 = vmul.f32 %v8703_v2, %v1637_v38  ;;  %v2406_v13 = vmax.f32 %v2382_v37, 0.0  ;;  %v8711_v55 = vld [vmem:[%s9494_s1 + $0x10] ss:$0 sm:$0xff]  ;;  %6286 = vmatmul.mubr.msk.f32.gmra.mrb[4].mxu1 %vm432_vm0, %v8671_v6 }
 0x1ad   : > { %v8687_v20 = vld [vmem:[%s9494_s1 + $0xd] ss:$0 sm:$0xff]  ;;  %v8695_v42 = vld [vmem:[%s9494_s1 + $0xe] ss:$0 sm:$0xff]  ;;  %v2023_v36 = vld [vmem:[#allocation2 + $0x78] sm:$0xf]  ;;  %v1149_v38 = vadd.f32 %v1125_v31, %v1072_v3  ;;  %6288 = vmatprep.mubr.msk.f32.mxu1 %vm432_vm0, %v8682_v22  ;;  %v842_v21 = vadd.f32 %v818_v45, %v765_v60 }
 0x1ae   : > { %v8690_v26 = vmul.f32 %v8687_v20, %v1482_v7  ;;  %v8698_v39 = vmul.f32 %v8695_v42, %v1559_v41  ;;  %v4130_v34 = vld [vmem:[#allocation4 + $0x228] sm:$0xff]  ;;  %v8714_v41 = vmul.f32 %v8711_v55, %v1714_v12  ;;  %v2100_v44 = vld [vmem:[#allocation2 + $0x79] sm:$0xf]  ;;  %v8722_v8 = vld [vmem:[%s9494_s1 + $0x11] ss:$0 sm:$0xff] }
 0x1af   : > { %v2612_v7 = vld [vmem:[#allocation4 + $0xa8] sm:$0xff]  ;;  %v8725_v37 = vmul.f32 %v8722_v8, %v1791_v51  ;;  %v8730_v12 = vld [vmem:[%s9494_s1 + $0x12] ss:$0 sm:$0xff]  ;;  %v8738_v31 = vld [vmem:[%s9494_s1 + $0x13] ss:$0 sm:$0xff]  ;;  %v8747_v48 = vpack.c.bf16 %v4130_v34, %v4129_v4  ;;  %v1226_v5 = vadd.f32 %v1202_v54, %v1149_v38 }
 0x1b0   : > { %v8733_v53 = vmul.f32 %v8730_v12, %v1868_v16  ;;  %v8741_v1 = vmul.f32 %v8738_v31, %v1945_v27  ;;  %v2177_v35 = vld [vmem:[#allocation2 + $0x7a] sm:$0xf]  ;;  %2431 = vst.msk [vmem:[#allocation3 + $0x28] sm:$0xf] %vm2426_vm1, %v2406_v13  ;;  %v896_v16 = vmul.f32 %v8615_v57, %v867_v23  ;;  %v6779_v28 = vpack.c.bf16 %v2612_v7, %v2611_v52  ;;  %v8756_v59 = vld [vmem:[#allocation3 + $0x70] sm:$0xff] }
 0x1b1   : > { %v944_v3 = vld [vmem:[#allocation2 + $0x59] sm:$0xf]  ;;  %9591 = vst [vmem:[#allocation13_spill] sm:$0xff] %v8747_v48  ;;  %v8750_v27 = vmul.f32 %v8328_v62, %v2023_v36  ;;  %v512_v13 = vmul.f32 %v8553_v50, %v483_v32  ;;  %9593 = vst [vmem:[#allocation26_spill] sm:$0xff] %v8756_v59  ;;  %v8759_v23 = vmul.f32 %v8438_v40, %v2177_v35  ;;  %6876 = vmatprep.subr.bf16.mxu0 %v8747_v48  ;;  %v1253_v36 = vld [vmem:[#allocation2 + $0x68] sm:$0xf] }
 0x1b2   : > { %9589 = vst [vmem:[#allocation21_spill] sm:$0xff] %v8733_v53  ;;  %9590 = vst [vmem:[#allocation12_spill] sm:$0xff] %v8741_v1  ;;  %v2254_v51 = vld [vmem:[#allocation2 + $0x7b] sm:$0xf]  ;;  %v8753_v1 = vmul.f32 %v8430_v33, %v2100_v44  ;;  %v920_v4 = vadd.f32 %v896_v16, %v842_v21  ;;  %v973_v34 = vmul.f32 %v8629_v30, %v944_v3  ;;  %6780 = vmatprep.subr.bf16.mxu1 %v6779_v28  ;;  %v1330_v32 = vld [vmem:[#allocation2 + $0x69] sm:$0xf] }
 0x1b3   : > { %v1021_v46 = vld [vmem:[#allocation2 + $0x5a] sm:$0xf]  ;;  %9594 = vst [vmem:[#allocation29_spill] sm:$0xff] %v8759_v23  ;;  %v1304_v54 = vadd.f32 %v8659_v19, %v1226_v5  ;;  %v8765_v7 = vmul.f32 %v8446_v49, %v2254_v51  ;;  %v1407_v44 = vld [vmem:[#allocation2 + $0x6a] sm:$0xf]  ;;  %6782 = vmatpush3.bf16.msra.mxu1 %v6779_v28  ;;  %v536_v60 = vadd.f32 %v8565_v25, %v512_v13 }
 0x1b4   : > { %v560_v6 = vld [vmem:[#allocation2 + $0x59] sm:$0xf]  ;;  %9592 = vst [vmem:[#allocation25_spill] sm:$0xff] %v8753_v1  ;;  %v997_v38 = vadd.f32 %v973_v34, %v920_v4  ;;  %v1050_v35 = vmul.f32 %v8635_v10, %v1021_v46  ;;  %v1484_v5 = vld [vmem:[#allocation2 + $0x6b] sm:$0xf]  ;;  %6289 = vmatmul.mubr.msk.f32.gmra.mrb[6].mxu1 %vm432_vm0, %v8756_v59  ;;  %v1359_v4 = vmul.f32 %v8664_v47, %v1330_v32 }
 0x1b5   : > { %v2331_v53 = vld [vmem:[#allocation2 + $0x7c] sm:$0xf]  ;;  %9595 = vst [vmem:[#allocation27_spill] sm:$0xff] %v8765_v7  ;;  %v589_v21 = vmul.f32 %v8571_v24, %v560_v6  ;;  %v1381_v51 = vadd.f32 %v8667_v63, %v1304_v54  ;;  %v1561_v16 = vld [vmem:[#allocation2 + $0x6c] sm:$0xf]  ;;  %6299 = vmatprep.mubr.msk.f32.mxu1 %vm432_vm0, %v8557_v43  ;;  %v8784_v34 = vmul.f32 %v8676_v14, %v1407_v44 }
 0x1b6   : > { %v1098_v22 = vld [vmem:[#allocation2 + $0x5b] sm:$0xf]  ;;  %v8770_v45 = vmul.f32 %v8454_v11, %v2331_v53  ;;  %v1074_v46 = vadd.f32 %v1050_v35, %v997_v38  ;;  %v8793_v32 = vmul.f32 %v8695_v42, %v1561_v16 }
 0x1b7   : > { %v1175_v52 = vld [vmem:[#allocation2 + $0x5c] sm:$0xf]  ;;  %v1127_v3 = vmul.f32 %v8643_v17, %v1098_v22  ;;  %v1639_v13 = vld [vmem:[#allocation2 + $0x78] sm:$0xf]  ;;  %v613_v48 = vadd.f32 %v589_v21, %v536_v60  ;;  %v1282_v22 = vmul.f32 %v8656_v15, %v1253_v36  ;;  %v1458_v7 = vadd.f32 %v8679_v29, %v1381_v51  ;;  %v2025_v21 = vld [vmem:[#allocation2 + $0x88] sm:$0xf] }
 0x1b8   : > { %v637_v62 = vld [vmem:[#allocation2 + $0x5a] sm:$0xf]  ;;  %9596 = vst [vmem:[#allocation30_spill] sm:$0xff] %v8770_v45  ;;  %v1204_v28 = vmul.f32 %v8650_v61, %v1175_v52  ;;  %v3734_v45 = vld [vmem:[#allocation3 + $0x22] sm:$0xff]  ;;  %v8788_v60 = vmul.f32 %v8687_v20, %v1484_v5  ;;  %v8796_v44 = vmul.f32 %v8703_v2, %v1639_v13  ;;  %v2613_v5 = vld [vmem:[#allocation4 + $0xb0] sm:$0xff] }
 0x1b9   : > { %v714_v19 = vld [vmem:[#allocation2 + $0x5b] sm:$0xf]  ;;  %v666_v53 = vmul.f32 %v8584_v0, %v637_v62  ;;  %6519 = vmatprep.mubr.msk.f32.mxu0 %vm432_vm0, %v3734_v45  ;;  %v1151_v36 = vadd.f32 %v1127_v3, %v1074_v46  ;;  %v869_v29 = vld [vmem:[#allocation2 + $0x68] sm:$0xf]  ;;  %v1535_v23 = vadd.f32 %v8690_v26, %v1458_v7  ;;  %v8815_v26 = vld [vmem:[%s9494_s1 + $0x14] ss:$0 sm:$0xff] }
 0x1ba   : > { %v1716_v6 = vld [vmem:[#allocation2 + $0x79] sm:$0xf]  ;;  %v743_v38 = vmul.f32 %v8594_v58, %v714_v19  ;;  %v2102_v19 = vld [vmem:[#allocation2 + $0x89] sm:$0xf]  ;;  %9600 = vst [vmem:[#allocation11_spill] sm:$0xff] %v8815_v26  ;;  %v8818_v7 = vmul.f32 %v8815_v26, %v2025_v21 }
 0x1bb   : > { %v1793_v63 = vld [vmem:[#allocation2 + $0x7a] sm:$0xf]  ;;  %v690_v43 = vadd.f32 %v666_v53, %v613_v48  ;;  %v8799_v35 = vmul.f32 %v8711_v55, %v1716_v6  ;;  %v2179_v45 = vld [vmem:[#allocation2 + $0x8a] sm:$0xf]  ;;  %v1228_v46 = vadd.f32 %v1204_v28, %v1151_v36 }
 0x1bc   : > { %v1870_v54 = vld [vmem:[#allocation2 + $0x7b] sm:$0xf]  ;;  %v8803_v48 = vmul.f32 %v8722_v8, %v1793_v63  ;;  %v485_v53 = vld [vmem:[#allocation2 + $0x68] sm:$0xf]  ;;  %9601 = vst [vmem:[#allocation10_spill] sm:$0xff] %v8818_v7  ;;  %v8826_v59 = vmul.f32 %v8438_v40, %v2179_v45 }
 0x1bd   : > { %v791_v52 = vld [vmem:[#allocation2 + $0x5c] sm:$0xf]  ;;  %v767_v3 = vadd.f32 %v743_v38, %v690_v43  ;;  %v8807_v13 = vmul.f32 %v8730_v12, %v1870_v54  ;;  %v2256_v63 = vld [vmem:[#allocation2 + $0x8b] sm:$0xf]  ;;  %v898_v54 = vmul.f32 %v8615_v57, %v869_v29  ;;  %v514_v7 = vmul.f32 %v8553_v50, %v485_v53  ;;  %v1255_v45 = vld [vmem:[#allocation2 + $0x78] sm:$0xf] }
 0x1be   : > { %v1947_v62 = vld [vmem:[#allocation2 + $0x7c] sm:$0xf]  ;;  %9597 = vst [vmem:[#allocation14_spill] sm:$0xff] %v8803_v48  ;;  %v820_v16 = vmul.f32 %v8603_v56, %v791_v52  ;;  %v946_v43 = vld [vmem:[#allocation2 + $0x69] sm:$0xf]  ;;  %v1612_v52 = vadd.f32 %v8698_v39, %v1535_v23  ;;  %v8831_v39 = vmul.f32 %v8446_v49, %v2256_v63 }
 0x1bf   : > { %v2614_v51 = vld [vmem:[#allocation4 + $0xb8] sm:$0xff]  ;;  %9598 = vst [vmem:[#allocation22_spill] sm:$0xff] %v8807_v13  ;;  %v8810_v6 = vmul.f32 %v8738_v31, %v1947_v62  ;;  %v2333_v38 = vld [vmem:[#allocation2 + $0x8c] sm:$0xf]  ;;  %v1306_v62 = vadd.f32 %v1282_v22, %v1228_v46  ;;  %v975_v29 = vmul.f32 %v8629_v30, %v946_v43 }
 0x1c0   : > { %v844_v28 = vadd.f32 %v820_v16, %v767_v3  ;;  %v6783_v36 = vpack.c.bf16 %v2614_v51, %v2613_v5  ;;  %v562_v13 = vld [vmem:[#allocation2 + $0x69] sm:$0xf]  ;;  %v1690_v1 = vadd.f32 %v8706_v9, %v1612_v52  ;;  %v1332_v3 = vld [vmem:[#allocation2 + $0x79] sm:$0xf]  ;;  %v538_v16 = vadd.f32 %v8565_v25, %v514_v7 }
 0x1c1   : > { %9599 = vst [vmem:[#allocation23_spill] sm:$0xff] %v8810_v6  ;;  %v8823_v6 = vmul.f32 %v8430_v33, %v2102_v19  ;;  %v1023_v48 = vld [vmem:[#allocation2 + $0x6a] sm:$0xf]  ;;  %v1383_v51 = vadd.f32 %v1359_v4, %v1306_v62  ;;  %v8835_v19 = vmul.f32 %v8454_v11, %v2333_v38  ;;  %v591_v9 = vmul.f32 %v8571_v24, %v562_v13  ;;  %v1409_v43 = vld [vmem:[#allocation2 + $0x7a] sm:$0xf] }
 0x1c2   : > { %v1100_v21 = vld [vmem:[#allocation2 + $0x6b] sm:$0xf]  ;;  %v922_v23 = vadd.f32 %v898_v54, %v844_v28  ;;  %6784 = vmatprep.subr.bf16.mxu1 %v6783_v36  ;;  %v1767_v49 = vadd.f32 %v8714_v41, %v1690_v1  ;;  %v1052_v46 = vmul.f32 %v8635_v10, %v1023_v48  ;;  %v1486_v38 = vld [vmem:[#allocation2 + $0x7b] sm:$0xf]  ;;  %v1284_v41 = vmul.f32 %v8656_v15, %v1255_v45 }
 0x1c3   : > { %v1177_v5 = vld [vmem:[#allocation2 + $0x6c] sm:$0xf]  ;;  %6786 = vmatpush3.bf16.msra.mxu1 %v6783_v36  ;;  %v1129_v63 = vmul.f32 %v8643_v17, %v1100_v21  ;;  %v1460_v4 = vadd.f32 %v8784_v34, %v1383_v51  ;;  %v1563_v28 = vld [vmem:[#allocation2 + $0x7c] sm:$0xf]  ;;  %v615_v54 = vadd.f32 %v591_v9, %v538_v16  ;;  %v1361_v1 = vmul.f32 %v8664_v47, %v1332_v3  ;;  %v1641_v48 = vld [vmem:[#allocation2 + $0x88] sm:$0xf] }
 0x1c4   : > { %v639_v22 = vld [vmem:[#allocation2 + $0x6a] sm:$0xf]  ;;  %v999_v53 = vadd.f32 %v975_v29, %v922_v23  ;;  %v1206_v11 = vmul.f32 %v8650_v61, %v1177_v5  ;;  %v1844_v13 = vadd.f32 %v8725_v37, %v1767_v49  ;;  %v1438_v21 = vmul.f32 %v8676_v14, %v1409_v43  ;;  %v9602_v37 = vld [vmem:[#allocation17_spill] sm:$0xff] }
 0x1c5   : > { %v716_v52 = vld [vmem:[#allocation2 + $0x6b] sm:$0xf]  ;;  %v668_v7 = vmul.f32 %v8584_v0, %v639_v22  ;;  %v1537_v34 = vadd.f32 %v8788_v60, %v1460_v4  ;;  %v9603_v51 = vld [vmem:[#allocation21_spill] sm:$0xff]  ;;  %v1515_v16 = vmul.f32 %v8687_v20, %v1486_v38  ;;  %v8858_v9 = vmul.f32 %v8695_v42, %v1563_v28  ;;  %v871_v60 = vld [vmem:[#allocation2 + $0x78] sm:$0xf] }
 0x1c6   : > { %v1076_v36 = vadd.f32 %v1052_v46, %v999_v53  ;;  %v793_v62 = vld [vmem:[#allocation2 + $0x6c] sm:$0xf]  ;;  %6300 = vmatmul.mubr.msk.f32.vlgmr.msra.gmra.mrb[0].mxu1 %vm432_vm0, %v8560_v18  ;;  %v745_v22 = vmul.f32 %v8594_v58, %v716_v52  ;;  %v1921_v45 = vadd.f32 %v9603_v51, %v1844_v13  ;;  %v8862_v46 = vmul.f32 %v8703_v2, %v1641_v48  ;;  %v2027_v52 = vld [vmem:[#allocation2 + $0x98] sm:$0xf] }
 0x1c7   : > { %v1718_v23 = vld [vmem:[#allocation2 + $0x89] sm:$0xf]  ;;  %v692_v5 = vadd.f32 %v668_v7, %v615_v54  ;;  %6302 = vmatprep.mubr.msk.f32.mxu1 %vm432_vm0, %v9602_v37  ;;  %v1614_v53 = vadd.f32 %v8793_v32, %v1537_v34  ;;  %v822_v54 = vmul.f32 %v8603_v56, %v793_v62  ;;  %v487_v51 = vld [vmem:[#allocation2 + $0x78] sm:$0xf] }
 0x1c8   : > { %v1795_v29 = vld [vmem:[#allocation2 + $0x8a] sm:$0xf]  ;;  %v1153_v3 = vadd.f32 %v1129_v63, %v1076_v36  ;;  %v8867_v38 = vmul.f32 %v8711_v55, %v1718_v23  ;;  %v948_v36 = vld [vmem:[#allocation2 + $0x79] sm:$0xf] }
 0x1c9   : > { %v1872_v49 = vld [vmem:[#allocation2 + $0x8b] sm:$0xf]  ;;  %v769_v4 = vadd.f32 %v745_v22, %v692_v5  ;;  %v8870_v28 = vmul.f32 %v8722_v8, %v1795_v29  ;;  %v1692_v48 = vadd.f32 %v8796_v44, %v1614_v53  ;;  %v2104_v62 = vld [vmem:[#allocation2 + $0x99] sm:$0xf] }
 0x1ca   : > { %v1949_v43 = vld [vmem:[#allocation2 + $0x8c] sm:$0xf]  ;;  %v1230_v63 = vadd.f32 %v1206_v11, %v1153_v3  ;;  %v8876_v34 = vmul.f32 %v8730_v12, %v1872_v49  ;;  %v900_v11 = vmul.f32 %v8615_v57, %v871_v60  ;;  %v1025_v22 = vld [vmem:[#allocation2 + $0x7a] sm:$0xf]  ;;  %v977_v60 = vmul.f32 %v8629_v30, %v948_v36 }
 0x1cb   : > { %v9604_v7 = vld [vmem:[#allocation12_spill] sm:$0xff]  ;;  %v846_v5 = vadd.f32 %v822_v54, %v769_v4  ;;  %v8883_v3 = vmul.f32 %v8738_v31, %v1949_v43  ;;  %v564_v44 = vld [vmem:[#allocation2 + $0x79] sm:$0xf]  ;;  %v1769_v49 = vadd.f32 %v8799_v35, %v1692_v48  ;;  %v1054_v43 = vmul.f32 %v8635_v10, %v1025_v22 }
 0x1cc   : > { %v1998_v13 = vadd.f32 %v9604_v7, %v1921_v45  ;;  %v9605_v32 = vld [vmem:[#allocation24_spill] sm:$0xff]  ;;  %v1308_v45 = vadd.f32 %v1284_v41, %v1230_v63  ;;  %v8886_v7 = vmul.f32 %v8815_v26, %v2027_v52  ;;  %v2181_v53 = vld [vmem:[#allocation2 + $0x9a] sm:$0xf]  ;;  %v8893_v41 = vmul.f32 %v8430_v33, %v2104_v62  ;;  %v9612_v33 = vld [vmem:[#allocation29_spill] sm:$0xff] }
 0x1cd   : > { %6303 = vmatmul.mubr.msk.f32.gmra.mrb[2].mxu1 %vm432_vm0, %v9605_v32  ;;  %v9606_v23 = vld [vmem:[#allocation28_spill] sm:$0xff]  ;;  %v924_v4 = vadd.f32 %v900_v11, %v846_v5  ;;  %v1102_v54 = vld [vmem:[#allocation2 + $0x7b] sm:$0xf]  ;;  %v516_v32 = vmul.f32 %v8553_v50, %v487_v51  ;;  %v593_v51 = vmul.f32 %v8571_v24, %v564_v44  ;;  %v8905_v22 = vmul.f32 %v8438_v40, %v2181_v53  ;;  %v8916_v40 = vld [vmem:[%s9494_s1 + $0x17] ss:$0 sm:$0xff] }
 0x1ce   : > { %6305 = vmatprep.mubr.msk.f32.mxu1 %vm432_vm0, %v9606_v23  ;;  %v2076_v29 = vadd.f32 %v8750_v27, %v1998_v13  ;;  %v9607_v23 = vld [vmem:[#allocation25_spill] sm:$0xff]  ;;  %v1385_v27 = vadd.f32 %v1361_v1, %v1308_v45  ;;  %9608 = vst [vmem:[#allocation8_spill] sm:$0xff] %v8893_v41  ;;  %v641_v52 = vld [vmem:[#allocation2 + $0x7a] sm:$0xf]  ;;  %v9609_v13 = vld [vmem:[#allocation20_spill] sm:$0xff] }
 0x1cf   : > { %v9610_v35 = vld [vmem:[#allocation14_spill] sm:$0xff]  ;;  %v1001_v5 = vadd.f32 %v977_v60, %v924_v4  ;;  %v540_v11 = vadd.f32 %v8565_v25, %v516_v32  ;;  %v670_v44 = vmul.f32 %v8584_v0, %v641_v52  ;;  %v8910_v41 = vld [vmem:[#allocation3 + $0x80] sm:$0xff]  ;;  %v4131_v52 = vld [vmem:[#allocation4 + $0x230] sm:$0xff] }
 0x1d0   : > { %v2153_v37 = vadd.f32 %v9607_v23, %v2076_v29  ;;  %v1846_v63 = vadd.f32 %v9610_v35, %v1769_v49  ;;  %v2258_v48 = vld [vmem:[#allocation2 + $0x9b] sm:$0xf]  ;;  %v1462_v62 = vadd.f32 %v1438_v21, %v1385_v27  ;;  %v1131_v29 = vmul.f32 %v8643_v17, %v1102_v54  ;;  %9614 = vst [vmem:[#allocation16_spill] sm:$0xff] %v8910_v41  ;;  %v9617_v27 = vld [vmem:[#allocation23_spill] sm:$0xff] }
 0x1d1   : > { %6306 = vmatmul.mubr.msk.f32.gmra.mrb[4].mxu1 %vm432_vm0, %v9609_v13  ;;  %v1179_v36 = vld [vmem:[#allocation2 + $0x7c] sm:$0xf]  ;;  %v1078_v60 = vadd.f32 %v1054_v43, %v1001_v5  ;;  %v1257_v13 = vld [vmem:[#allocation2 + $0x88] sm:$0xf]  ;;  %v617_v32 = vadd.f32 %v593_v51, %v540_v11  ;;  %v8919_v21 = vmul.f32 %v8916_v40, %v2258_v48 }
 0x1d2   : > { %v9611_v23 = vld [vmem:[#allocation26_spill] sm:$0xff]  ;;  %v2230_v1 = vadd.f32 %v9612_v33, %v2153_v37  ;;  %v1539_v37 = vadd.f32 %v1515_v16, %v1462_v62  ;;  %v1208_v53 = vmul.f32 %v8650_v61, %v1179_v36  ;;  %v1334_v16 = vld [vmem:[#allocation2 + $0x89] sm:$0xf]  ;;  %v1286_v62 = vmul.f32 %v8656_v15, %v1257_v13 }
 0x1d3   : > { %6308 = vmatprep.mubr.msk.f32.mxu1 %vm432_vm0, %v9611_v23  ;;  %v718_v45 = vld [vmem:[#allocation2 + $0x7b] sm:$0xf]  ;;  %v9615_v23 = vld [vmem:[#allocation27_spill] sm:$0xff]  ;;  %9616 = vst [vmem:[#allocation9_spill] sm:$0xff] %v8919_v21  ;;  %v1155_v5 = vadd.f32 %v1131_v29, %v1078_v60  ;;  %v694_v11 = vadd.f32 %v670_v44, %v617_v32  ;;  %v8933_v33 = vld [vmem:[%s9494_s1 + $0x18] ss:$0 sm:$0xff] }
 0x1d4   : > { %v9613_v49 = vld [vmem:[#allocation22_spill] sm:$0xff]  ;;  %v2307_v26 = vadd.f32 %v9615_v23, %v2230_v1  ;;  %v747_v51 = vmul.f32 %v8594_v58, %v718_v45  ;;  %v1616_v36 = vadd.f32 %v8858_v9, %v1539_v37  ;;  %9619 = vst [vmem:[#allocation21_spill] sm:$0xff] %v8933_v33  ;;  %v1411_v29 = vld [vmem:[#allocation2 + $0x8a] sm:$0xf]  ;;  %v4250_v60 = vld [vmem:[#allocation4 + $0x2c0] sm:$0xff] }
 0x1d5   : > { %v1923_v35 = vadd.f32 %v9613_v49, %v1846_v63  ;;  %v2335_v4 = vld [vmem:[#allocation2 + $0x9c] sm:$0xf]  ;;  %6309 = vmatmul.mubr.msk.f32.gmra.mrb[6].mxu1 %vm432_vm0, %v8910_v41  ;;  %v873_v49 = vld [vmem:[#allocation2 + $0x88] sm:$0xf]  ;;  %v1232_v32 = vadd.f32 %v1208_v53, %v1155_v5  ;;  %v1565_v21 = vld [vmem:[#allocation2 + $0x8c] sm:$0xf] }
 0x1d6   : > { %v795_v54 = vld [vmem:[#allocation2 + $0x7c] sm:$0xf]  ;;  %6319 = vmatprep.mubr.msk.f32.mxu1 %vm432_vm0, %v8560_v18  ;;  %v8936_v1 = vmul.f32 %v8933_v33, %v2335_v4  ;;  %v4251_v18 = vld [vmem:[#allocation4 + $0x2c8] sm:$0xff]  ;;  %v771_v44 = vadd.f32 %v747_v51, %v694_v11  ;;  %v1363_v4 = vmul.f32 %v8664_v47, %v1334_v16  ;;  %v902_v53 = vmul.f32 %v8615_v57, %v873_v49 }
 0x1d7   : > { %v2000_v43 = vadd.f32 %v9617_v27, %v1923_v35  ;;  %v4132_v63 = vld [vmem:[#allocation4 + $0x238] sm:$0xff]  ;;  %v824_v9 = vmul.f32 %v8603_v56, %v795_v54  ;;  %v1694_v27 = vadd.f32 %v8862_v46, %v1616_v36  ;;  %v950_v41 = vld [vmem:[#allocation2 + $0x89] sm:$0xf]  ;;  %v8949_v5 = vpack.c.bf16 %v4251_v18, %v4250_v60 }
 0x1d8   : > { %v9618_v48 = vld [vmem:[#allocation30_spill] sm:$0xff]  ;;  %9620 = vst [vmem:[#allocation12_spill] sm:$0xff] %v8936_v1  ;;  %v1310_v1 = vadd.f32 %v1286_v62, %v1232_v32  ;;  %v1440_v46 = vmul.f32 %v8676_v14, %v1411_v29  ;;  %v979_v36 = vmul.f32 %v8629_v30, %v950_v41  ;;  %v489_v62 = vld [vmem:[#allocation2 + $0x88] sm:$0xf] }
 0x1d9   : > { %v2384_v23 = vadd.f32 %v9618_v48, %v2307_v26  ;;  %v9621_v45 = vld [vmem:[#allocation10_spill] sm:$0xff]  ;;  %v1488_v26 = vld [vmem:[#allocation2 + $0x8b] sm:$0xf]  ;;  %v8942_v48 = vpack.c.bf16 %v4132_v63, %v4131_v52  ;;  %v848_v33 = vadd.f32 %v824_v9, %v771_v44  ;;  %v1771_v54 = vadd.f32 %v8867_v38, %v1694_v27 }
 0x1da   : > { %v2078_v35 = vadd.f32 %v9621_v45, %v2000_v43  ;;  %v1643_v43 = vld [vmem:[#allocation2 + $0x98] sm:$0xf]  ;;  %v1517_v52 = vmul.f32 %v8687_v20, %v1488_v26  ;;  %v1027_v63 = vld [vmem:[#allocation2 + $0x8a] sm:$0xf]  ;;  %v1387_v16 = vadd.f32 %v1363_v4, %v1310_v1  ;;  %v1594_v38 = vmul.f32 %v8695_v42, %v1565_v21 }
 0x1db   : > { %v2408_v37 = vmax.f32 %v2384_v23, 0.0  ;;  %v1720_v45 = vld [vmem:[#allocation2 + $0x99] sm:$0xf]  ;;  %v926_v23 = vadd.f32 %v902_v53, %v848_v33  ;;  %v1848_v49 = vadd.f32 %v8870_v28, %v1771_v54  ;;  %v1104_v60 = vld [vmem:[#allocation2 + $0x8b] sm:$0xf]  ;;  %v1056_v26 = vmul.f32 %v8635_v10, %v1027_v63 }
 0x1dc   : > { %v2155_v13 = vadd.f32 %v8823_v6, %v2078_v35  ;;  %v1797_v11 = vld [vmem:[#allocation2 + $0x9a] sm:$0xf]  ;;  %v1672_v35 = vmul.f32 %v8703_v2, %v1643_v43  ;;  %v1749_v29 = vmul.f32 %v8711_v55, %v1720_v45  ;;  %v1464_v32 = vadd.f32 %v1440_v46, %v1387_v16  ;;  %v566_v33 = vld [vmem:[#allocation2 + $0x89] sm:$0xf] }
 0x1dd   : > { %2433 = vst.msk [vmem:[#allocation3 + $0x38] sm:$0xf] %vm2426_vm1, %v2408_v37  ;;  %v1874_v51 = vld [vmem:[#allocation2 + $0x9b] sm:$0xf]  ;;  %v1003_v1 = vadd.f32 %v979_v36, %v926_v23  ;;  %v1925_v41 = vadd.f32 %v8876_v34, %v1848_v49  ;;  %v1826_v44 = vmul.f32 %v8722_v8, %v1797_v11  ;;  %v1181_v21 = vld [vmem:[#allocation2 + $0x8c] sm:$0xf]  ;;  %v518_v9 = vmul.f32 %v8553_v50, %v489_v62 }
 0x1de   : > { %v2232_v6 = vadd.f32 %v8826_v59, %v2155_v13  ;;  %v1951_v59 = vld [vmem:[#allocation2 + $0x9c] sm:$0xf]  ;;  %v8964_v28 = vmul.f32 %v8730_v12, %v1874_v51  ;;  %v1541_v27 = vadd.f32 %v1517_v52, %v1464_v32  ;;  %v1133_v13 = vmul.f32 %v8643_v17, %v1104_v60  ;;  %v643_v43 = vld [vmem:[#allocation2 + $0x8a] sm:$0xf]  ;;  %v1259_v54 = vld [vmem:[#allocation2 + $0x98] sm:$0xf] }
 0x1df   : > { %v1080_v4 = vadd.f32 %v1056_v26, %v1003_v1  ;;  %v2002_v45 = vadd.f32 %v8883_v3, %v1925_v41  ;;  %v8971_v34 = vmul.f32 %v8738_v31, %v1951_v59  ;;  %v2106_v53 = vld [vmem:[#allocation2 + $0xa9] sm:$0xf]  ;;  %v542_v46 = vadd.f32 %v8565_v25, %v518_v9  ;;  %v9622_v23 = vld [vmem:[#allocation11_spill] sm:$0xff]  ;;  %v1336_v62 = vld [vmem:[#allocation2 + $0x99] sm:$0xf] }
 0x1e0   : > { %v2309_v18 = vadd.f32 %v8831_v39, %v2232_v6  ;;  %v2029_v39 = vld [vmem:[#allocation2 + $0xa8] sm:$0xf]  ;;  %v595_v63 = vmul.f32 %v8571_v24, %v566_v33  ;;  %v1618_v52 = vadd.f32 %v1594_v38, %v1541_v27  ;;  %v1210_v11 = vmul.f32 %v8650_v61, %v1181_v21  ;;  %v9623_v38 = vld [vmem:[#allocation13_spill] sm:$0xff]  ;;  %v2337_v32 = vld [vmem:[#allocation2 + $0xac] sm:$0xf] }
 0x1e1   : > { %v2183_v6 = vld [vmem:[#allocation2 + $0xaa] sm:$0xf]  ;;  %v1157_v16 = vadd.f32 %v1133_v13, %v1080_v4  ;;  %v2080_v3 = vadd.f32 %v8886_v7, %v2002_v45  ;;  %v8982_v36 = vmul.f32 %v9622_v23, %v2029_v39  ;;  %v672_v49 = vmul.f32 %v8584_v0, %v643_v43  ;;  %v1413_v21 = vld [vmem:[#allocation2 + $0x9a] sm:$0xf] }
 0x1e2   : > { %v2386_v37 = vadd.f32 %v8835_v19, %v2309_v18  ;;  %v720_v51 = vld [vmem:[#allocation2 + $0x8b] sm:$0xf]  ;;  %v619_v24 = vadd.f32 %v595_v63, %v542_v46  ;;  %v1696_v60 = vadd.f32 %v1672_v35, %v1618_v52  ;;  %v8990_v18 = vld [vmem:[%s9494_s1 + $0x15] ss:$0 sm:$0xff]  ;;  %v1288_v1 = vmul.f32 %v8656_v15, %v1259_v54  ;;  %v9001_v35 = vld [vmem:[%s9494_s1 + $0x16] ss:$0 sm:$0xff] }
 0x1e3   : > { %v2260_v25 = vld [vmem:[#allocation2 + $0xab] sm:$0xf]  ;;  %v8993_v7 = vmul.f32 %v8990_v18, %v2106_v53  ;;  %v1234_v59 = vadd.f32 %v1210_v11, %v1157_v16  ;;  %v9004_v41 = vmul.f32 %v9001_v35, %v2183_v6  ;;  %v1490_v9 = vld [vmem:[#allocation2 + $0x9b] sm:$0xf]  ;;  %v749_v27 = vmul.f32 %v8594_v58, %v720_v51  ;;  %v9625_v46 = vld [vmem:[#allocation21_spill] sm:$0xff] }
 0x1e4   : > { %v8975_v50 = vld [vmem:[#allocation3 + $0x32] sm:$0xff]  ;;  %v2410_v19 = vmax.f32 %v2386_v37, 0.0  ;;  %v797_v26 = vld [vmem:[#allocation2 + $0x8c] sm:$0xf]  ;;  %v696_v37 = vadd.f32 %v672_v49, %v619_v24  ;;  %v1773_v39 = vadd.f32 %v1749_v29, %v1696_v60  ;;  %v9008_v4 = vmul.f32 %v8916_v40, %v2260_v25  ;;  %v1567_v45 = vld [vmem:[#allocation2 + $0x9c] sm:$0xf] }
 0x1e5   : > { %6520 = vmatmul.mubr.msk.f32.vlgmr.msra.gmra.mrb[0].mxu0 %vm432_vm0, %v8975_v50  ;;  %v9624_v33 = vld [vmem:[#allocation8_spill] sm:$0xff]  ;;  %v1312_v13 = vadd.f32 %v1288_v1, %v1234_v59  ;;  %v1365_v43 = vmul.f32 %v8664_v47, %v1336_v62  ;;  %v875_v53 = vld [vmem:[#allocation2 + $0x98] sm:$0xf]  ;;  %v9013_v63 = vmul.f32 %v9625_v46, %v2337_v32  ;;  %v826_v16 = vmul.f32 %v8603_v56, %v797_v26  ;;  %v9626_v62 = vld [vmem:[#allocation9_spill] sm:$0xff] }
 0x1e6   : > { %2435 = vst.msk [vmem:[#allocation3 + $0x48] sm:$0xf] %vm2426_vm1, %v2410_v19  ;;  %6878 = vmatpush3.bf16.msra.mxu0 %v9623_v38  ;;  %v2157_v0 = vadd.f32 %v9624_v33, %v2080_v3  ;;  %v1645_v19 = vld [vmem:[#allocation2 + $0xa8] sm:$0xf]  ;;  %v773_v6 = vadd.f32 %v749_v27, %v696_v37  ;;  %v1850_v58 = vadd.f32 %v1826_v44, %v1773_v39  ;;  %v952_v25 = vld [vmem:[#allocation2 + $0x99] sm:$0xf] }
 0x1e7   : > { %6880 = vmatprep.subr.bf16.mxu0 %v8942_v48  ;;  %v1722_v52 = vld [vmem:[#allocation2 + $0xa9] sm:$0xf]  ;;  %v1389_v29 = vadd.f32 %v1365_v43, %v1312_v13  ;;  %v1442_v11 = vmul.f32 %v8676_v14, %v1413_v21  ;;  %v1519_v51 = vmul.f32 %v8687_v20, %v1490_v9  ;;  %v1596_v24 = vmul.f32 %v8695_v42, %v1567_v45  ;;  %v2732_v60 = vld [vmem:[#allocation4 + $0x140] sm:$0xff]  ;;  %v1029_v26 = vld [vmem:[#allocation2 + $0x9a] sm:$0xf] }
 0x1e8   : > { %v2234_v54 = vadd.f32 %v8905_v22, %v2157_v0  ;;  %v1799_v3 = vld [vmem:[#allocation2 + $0xaa] sm:$0xf]  ;;  %v850_v38 = vadd.f32 %v826_v16, %v773_v6  ;;  %v904_v56 = vmul.f32 %v8615_v57, %v875_v53  ;;  %v1927_v44 = vadd.f32 %v8964_v28, %v1850_v58  ;;  %v2734_v33 = vld [vmem:[#allocation4 + $0x150] sm:$0xff]  ;;  %v2735_v0 = vld [vmem:[#allocation4 + $0x158] sm:$0xff] }
 0x1e9   : > { %v1876_v49 = vld [vmem:[#allocation2 + $0xab] sm:$0xf]  ;;  %v1466_v32 = vadd.f32 %v1442_v11, %v1389_v29  ;;  %v1674_v59 = vmul.f32 %v8703_v2, %v1645_v19  ;;  %v1751_v1 = vmul.f32 %v8711_v55, %v1722_v52  ;;  %v1828_v27 = vmul.f32 %v8722_v8, %v1799_v3  ;;  %v2031_v57 = vld [vmem:[#allocation2 + $0xb8] sm:$0xf]  ;;  %v1183_v11 = vld [vmem:[#allocation2 + $0x9c] sm:$0xf] }
 0x1ea   : > { %6882 = vmatpush3.bf16.msra.mxu0 %v8942_v48  ;;  %v2311_v22 = vadd.f32 %v9626_v62, %v2234_v54  ;;  %v2733_v48 = vld [vmem:[#allocation4 + $0x148] sm:$0xff]  ;;  %v928_v13 = vadd.f32 %v904_v56, %v850_v38  ;;  %v981_v43 = vmul.f32 %v8629_v30, %v952_v25  ;;  %v2004_v28 = vadd.f32 %v8971_v34, %v1927_v44  ;;  %v2108_v54 = vld [vmem:[#allocation2 + $0xb9] sm:$0xf]  ;;  %v2853_v30 = vld [vmem:[#allocation4 + $0x1e0] sm:$0xff] }
 0x1eb   : > { %6884 = vmatprep.subr.bf16.mxu0 %v8949_v5  ;;  %v9627_v9 = vld [vmem:[#allocation12_spill] sm:$0xff]  ;;  %v1543_v45 = vadd.f32 %v1519_v51, %v1466_v32  ;;  %v9035_v53 = vmul.f32 %v8730_v12, %v1876_v49  ;;  %v1106_v19 = vld [vmem:[#allocation2 + $0x9b] sm:$0xf]  ;;  %v6787_v52 = vpack.c.bf16 %v2733_v48, %v2732_v60  ;;  %v1058_v29 = vmul.f32 %v8635_v10, %v1029_v26 }
 0x1ec   : > { %v2388_v37 = vadd.f32 %v9627_v9, %v2311_v22  ;;  %v1953_v39 = vld [vmem:[#allocation2 + $0xac] sm:$0xf]  ;;  %v2017_v6 = vld [vmem:[#allocation2 + $0x48] sm:$0xf]  ;;  %v1005_v58 = vadd.f32 %v981_v43, %v928_v13  ;;  %v6791_v3 = vpack.c.bf16 %v2735_v0, %v2734_v33  ;;  %v2082_v62 = vadd.f32 %v8982_v36, %v2004_v28  ;;  %v2019_v43 = vld [vmem:[#allocation2 + $0x58] sm:$0xf] }
 0x1ed   : > { %v9026_v21 = vld [vmem:[#allocation3 + $0x42] sm:$0xff]  ;;  %v1620_v22 = vadd.f32 %v1596_v24, %v1543_v45  ;;  %v9040_v34 = vmul.f32 %v8738_v31, %v1953_v39  ;;  %v9043_v51 = vmul.f32 %v9622_v23, %v2031_v57  ;;  %6788 = vmatprep.subr.bf16.mxu1 %v6787_v52  ;;  %v9047_v10 = vmul.f32 %v8990_v18, %v2108_v54  ;;  %v1941_v24 = vld [vmem:[#allocation2 + $0x4c] sm:$0xf]  ;;  %v9628_v57 = vld [vmem:[#allocation18_spill] sm:$0xff] }
 0x1ee   : > { %6522 = vmatprep.mubr.msk.f32.mxu0 %vm432_vm0, %v9026_v21  ;;  %v2412_v16 = vmax.f32 %v2388_v37, 0.0  ;;  %v2854_v25 = vld [vmem:[#allocation4 + $0x1e8] sm:$0xff]  ;;  %v1082_v56 = vadd.f32 %v1058_v29, %v1005_v58  ;;  %v1135_v60 = vmul.f32 %v8643_v17, %v1106_v19  ;;  %6790 = vmatpush3.bf16.msra.mxu1 %v6787_v52  ;;  %v2046_v36 = vmul.f32 %v9622_v23, %v2017_v6  ;;  %v2856_v54 = vld [vmem:[#allocation4 + $0x1f8] sm:$0xff] }
 0x1ef   : > { %v1261_v49 = vld [vmem:[#allocation2 + $0xa8] sm:$0xf]  ;;  %v2159_v44 = vadd.f32 %v8993_v7, %v2082_v62  ;;  %v1698_v32 = vadd.f32 %v1674_v59, %v1620_v22  ;;  %v1212_v26 = vmul.f32 %v8650_v61, %v1183_v11  ;;  %6792 = vmatprep.subr.bf16.mxu1 %v6791_v3  ;;  %v6795_v0 = vpack.c.bf16 %v2854_v25, %v2853_v30  ;;  %v2855_v59 = vld [vmem:[#allocation4 + $0x1f0] sm:$0xff]  ;;  %v2096_v58 = vld [vmem:[#allocation2 + $0x59] sm:$0xf] }
 0x1f0   : > { %v2094_v38 = vld [vmem:[#allocation2 + $0x49] sm:$0xf]  ;;  %2437 = vst.msk [vmem:[#allocation3 + $0x58] sm:$0xf] %vm2426_vm1, %v2412_v16  ;;  %v1159_v37 = vadd.f32 %v1135_v60, %v1082_v56  ;;  %v1290_v39 = vmul.f32 %v8656_v15, %v1261_v49  ;;  %v2070_v13 = vadd.f32 %v2046_v36, %v9628_v57  ;;  %v1970_v19 = vmul.f32 %v8738_v31, %v1941_v24  ;;  %v4253_v60 = vld [vmem:[#allocation4 + $0x2d8] sm:$0xff] }
 0x1f1   : > { %v1338_v48 = vld [vmem:[#allocation2 + $0xa9] sm:$0xf]  ;;  %v2123_v17 = vmul.f32 %v8990_v18, %v2094_v38  ;;  %v2236_v28 = vadd.f32 %v9004_v41, %v2159_v44  ;;  %v1775_v45 = vadd.f32 %v1751_v1, %v1698_v32  ;;  %v9629_v1 = vld [vmem:[#allocation15_spill] sm:$0xff]  ;;  %v2048_v30 = vmul.f32 %v9622_v23, %v2019_v43  ;;  %v2185_v57 = vld [vmem:[#allocation2 + $0xba] sm:$0xf] }
 0x1f2   : > { %v1415_v33 = vld [vmem:[#allocation2 + $0xaa] sm:$0xf]  ;;  %v1367_v7 = vmul.f32 %v8664_v47, %v1338_v48  ;;  %v1236_v52 = vadd.f32 %v1212_v26, %v1159_v37  ;;  %6794 = vmatpush3.bf16.msra.mxu1 %v6791_v3  ;;  %v1994_v47 = vadd.f32 %v1970_v19, %v9629_v1  ;;  %v6799_v22 = vpack.c.bf16 %v2856_v54, %v2855_v59  ;;  %v2173_v3 = vld [vmem:[#allocation2 + $0x5a] sm:$0xf]  ;;  %v9630_v48 = vld [vmem:[#allocation17_spill] sm:$0xff] }
 0x1f3   : > { %v2171_v9 = vld [vmem:[#allocation2 + $0x4a] sm:$0xf]  ;;  %v1444_v6 = vmul.f32 %v8676_v14, %v1415_v33  ;;  %v2147_v15 = vadd.f32 %v2123_v17, %v2070_v13  ;;  %v2313_v29 = vadd.f32 %v9008_v4, %v2236_v28  ;;  %v1852_v11 = vadd.f32 %v1828_v27, %v1775_v45  ;;  %6796 = vmatprep.subr.bf16.mxu1 %v6795_v0  ;;  %v4252_v27 = vld [vmem:[#allocation4 + $0x2d0] sm:$0xff]  ;;  %v2250_v33 = vld [vmem:[#allocation2 + $0x5b] sm:$0xf] }
 0x1f4   : > { %v2248_v61 = vld [vmem:[#allocation2 + $0x4b] sm:$0xf]  ;;  %v2200_v16 = vmul.f32 %v9001_v35, %v2171_v9  ;;  %v1314_v25 = vadd.f32 %v1290_v39, %v1236_v52  ;;  %v2072_v36 = vadd.f32 %v2048_v30, %v1994_v47  ;;  %v2125_v24 = vmul.f32 %v8990_v18, %v2096_v58  ;;  %v2327_v54 = vld [vmem:[#allocation2 + $0x5c] sm:$0xf]  ;;  %v4383_v19 = vld [vmem:[#allocation4 + $0x60] sm:$0xff] }
 0x1f5   : > { %v2325_v41 = vld [vmem:[#allocation2 + $0x4c] sm:$0xf]  ;;  %v2277_v14 = vmul.f32 %v8916_v40, %v2248_v61  ;;  %v2390_v56 = vadd.f32 %v9013_v63, %v2313_v29  ;;  %v1929_v4 = vadd.f32 %v9035_v53, %v1852_v11  ;;  %6320 = vmatmul.mubr.msk.f32.vlgmr.msra.gmra.mrb[0].mxu1 %vm432_vm0, %v9630_v48  ;;  %v2974_v53 = vld [vmem:[#allocation4 + $0x280] sm:$0xff]  ;;  %v2202_v43 = vmul.f32 %v9001_v35, %v2173_v3  ;;  %v1647_v61 = vld [vmem:[#allocation2 + $0xb8] sm:$0xf] }
 0x1f6   : > { %v1492_v62 = vld [vmem:[#allocation2 + $0xab] sm:$0xf]  ;;  %v2224_v49 = vadd.f32 %v2200_v16, %v2147_v15  ;;  %v1391_v44 = vadd.f32 %v1367_v7, %v1314_v25  ;;  %v2354_v63 = vmul.f32 %v9625_v46, %v2325_v41  ;;  %6798 = vmatpush3.bf16.msra.mxu1 %v6795_v0  ;;  %v2149_v17 = vadd.f32 %v2125_v24, %v2072_v36  ;;  %v2262_v16 = vld [vmem:[#allocation2 + $0xbb] sm:$0xf]  ;;  %v9112_v36 = vld [vmem:[#allocation3 + $0x90] sm:$0xff] }
 0x1f7   : > { %v9065_v38 = vld [vmem:[#allocation3 + $0x52] sm:$0xff]  ;;  %v9631_v32 = vld [vmem:[#allocation24_spill] sm:$0xff]  ;;  %v2414_v37 = vmax.f32 %v2390_v56, 0.0  ;;  %v2006_v39 = vadd.f32 %v9040_v34, %v1929_v4  ;;  %v1521_v45 = vmul.f32 %v8687_v20, %v1492_v62  ;;  %v6887_v7 = vpack.c.bf16 %v4253_v60, %v4252_v27  ;;  %6800 = vmatprep.subr.bf16.mxu1 %v6799_v22  ;;  %v2339_v25 = vld [vmem:[#allocation2 + $0xbc] sm:$0xf] }
 0x1f8   : > { %6523 = vmatmul.mubr.msk.f32.gmra.mrb[2].mxu0 %vm432_vm0, %v9065_v38  ;;  %6322 = vmatprep.mubr.msk.f32.mxu1 %vm432_vm0, %v9631_v32  ;;  %v2301_v26 = vadd.f32 %v2277_v14, %v2224_v49  ;;  %v2975_v9 = vld [vmem:[#allocation4 + $0x288] sm:$0xff]  ;;  %v1468_v28 = vadd.f32 %v1444_v6, %v1391_v44  ;;  %v2226_v0 = vadd.f32 %v2202_v43, %v2149_v17  ;;  %v1724_v1 = vld [vmem:[#allocation2 + $0xb9] sm:$0xf] }
 0x1f9   : > { %6539 = vmatprep.mubr.msk.f32.mxu0 %vm432_vm0, %v8975_v50  ;;  %v1569_v13 = vld [vmem:[#allocation2 + $0xac] sm:$0xf]  ;;  %2439 = vst.msk [vmem:[#allocation3 + $0x68] sm:$0xf] %vm2426_vm1, %v2414_v37  ;;  %v2084_v50 = vadd.f32 %v9043_v51, %v2006_v39  ;;  %v2279_v15 = vmul.f32 %v8916_v40, %v2250_v33  ;;  %v9087_v6 = vpack.c.bf16 %v2975_v9, %v2974_v53  ;;  %v9634_v56 = vld [vmem:[#allocation26_spill] sm:$0xff]  ;;  %v7253_v39 = vld [vmem:[#allocation3 + $0x30] sm:$0xff] }
 0x1fa   : > { %v2378_v59 = vadd.f32 %v2354_v63, %v2301_v26  ;;  %v4384_v34 = vld [vmem:[#allocation4 + $0x68] sm:$0xff]  ;;  %v2214_v20 = vmul.f32 %v9001_v35, %v2185_v57  ;;  %v1545_v58 = vadd.f32 %v1521_v45, %v1468_v28  ;;  %v1598_v51 = vmul.f32 %v8695_v42, %v1569_v13  ;;  %6802 = vmatpush3.bf16.msra.mxu1 %v6799_v22  ;;  %v1878_v22 = vld [vmem:[#allocation2 + $0xbb] sm:$0xf]  ;;  %v2976_v63 = vld [vmem:[#allocation4 + $0x290] sm:$0xff] }
 0x1fb   : > { %v9632_v52 = vld [vmem:[#allocation28_spill] sm:$0xff]  ;;  %v2161_v41 = vadd.f32 %v9047_v10, %v2084_v50  ;;  %v2303_v47 = vadd.f32 %v2279_v15, %v2226_v0  ;;  %v2356_v30 = vmul.f32 %v9625_v46, %v2327_v54  ;;  %v1676_v49 = vmul.f32 %v8703_v2, %v1647_v61  ;;  %6804 = vmatprep.subr.bf16.mxu1 %v9087_v6  ;;  %v1955_v53 = vld [vmem:[#allocation2 + $0xbc] sm:$0xf]  ;;  %v3107_v28 = vld [vmem:[#allocation4 + $0x20] sm:$0xff] }
 0x1fc   : > { %6323 = vmatmul.mubr.msk.f32.gmra.mrb[2].mxu1 %vm432_vm0, %v9632_v52  ;;  %6540 = vmatmul.mubr.msk.f32.vlgmr.msra.gmra.mrb[0].mxu0 %vm432_vm0, %v9026_v21  ;;  %v9633_v29 = vld [vmem:[#allocation20_spill] sm:$0xff]  ;;  %v2402_v11 = vmax.f32 %v2378_v59, 0.0  ;;  %v1622_v62 = vadd.f32 %v1598_v51, %v1545_v58  ;;  %v9101_v42 = vpack.c.bf16 %v4384_v34, %v4383_v19  ;;  %v2291_v3 = vmul.f32 %v8916_v40, %v2262_v16  ;;  %v7254_v59 = vld [vmem:[#allocation3 + $0x40] sm:$0xff]  ;;  %v7255_v50 = vld [vmem:[#allocation3 + $0x50] sm:$0xff] }
 0x1fd   : > { %6325 = vmatprep.mubr.msk.f32.mxu1 %vm432_vm0, %v9633_v29  ;;  %6542 = vmatprep.mubr.msk.f32.mxu0 %vm432_vm0, %v9065_v38  ;;  %v2238_v14 = vadd.f32 %v2214_v20, %v2161_v41  ;;  %v2380_v10 = vadd.f32 %v2356_v30, %v2303_v47  ;;  %v1753_v27 = vmul.f32 %v8711_v55, %v1724_v1  ;;  %v9635_v2 = vld [vmem:[#allocation16_spill] sm:$0xff]  ;;  %v2977_v55 = vld [vmem:[#allocation4 + $0x298] sm:$0xff]  ;;  %v7256_v0 = vld [vmem:[#allocation3 + $0x60] sm:$0xff] }
 0x1fe   : > { %6886 = vmatpush3.bf16.msra.mxu0 %v8949_v5  ;;  %2427 = vst.msk [vmem:[#allocation3 + $0x8] sm:$0xf] %vm2426_vm1, %v2402_v11  ;;  %v1801_v5 = vld [vmem:[#allocation2 + $0xba] sm:$0xf]  ;;  %v1700_v4 = vadd.f32 %v1676_v49, %v1622_v62  ;;  %v2368_v48 = vmul.f32 %v9625_v46, %v2339_v25  ;;  %v1907_v37 = vmul.f32 %v8730_v12, %v1878_v22  ;;  %v2033_v57 = vld [vmem:[#allocation2 + $0xc8] sm:$0xf] }
 0x1ff   : > { %6888 = vmatprep.subr.bf16.mxu0 %v6887_v7  ;;  %v2315_v60 = vadd.f32 %v2291_v3, %v2238_v14  ;;  %v2404_v24 = vmax.f32 %v2380_v10, 0.0  ;;  %v1830_v26 = vmul.f32 %v8722_v8, %v1801_v5  ;;  %v6807_v13 = vpack.c.bf16 %v2977_v55, %v2976_v63  ;;  %v3108_v45 = vld [vmem:[#allocation4 + $0x28] sm:$0xff]  ;;  %v2467_v29 = vld [vmem:[#allocation3 + $0xa0] sm:$0xff]  ;;  %v3109_v11 = vld [vmem:[#allocation4 + $0x30] sm:$0xff] }
 0x200   : > { %6326 = vmatmul.mubr.msk.f32.gmra.mrb[4].mxu1 %vm432_vm0, %v9634_v56  ;;  %v9114_v44 = vld [vmem:[#allocation3 + $0x62] sm:$0xff]  ;;  %v1777_v32 = vadd.f32 %v1753_v27, %v1700_v4  ;;  %v1984_v43 = vmul.f32 %v8738_v31, %v1955_v53  ;;  %v2062_v12 = vmul.f32 %v9622_v23, %v2033_v57  ;;  %v2187_v61 = vld [vmem:[#allocation2 + $0xca] sm:$0xf]  ;;  %v6811_v19 = vpack.c.bf16 %v3108_v45, %v3107_v28  ;;  %v3110_v41 = vld [vmem:[#allocation4 + $0x38] sm:$0xff] }
 0x201   : > { %6328 = vmatprep.mubr.msk.f32.mxu1 %vm432_vm0, %v9635_v2  ;;  %6543 = vmatmul.mubr.msk.f32.gmra.mrb[2].mxu0 %vm432_vm0, %v9114_v44  ;;  %v2392_v33 = vadd.f32 %v2368_v48, %v2315_v60  ;;  %2429 = vst.msk [vmem:[#allocation3 + $0x18] sm:$0xf] %vm2426_vm1, %v2404_v24  ;;  %v2264_v52 = vld [vmem:[#allocation2 + $0xcb] sm:$0xf]  ;;  %v2216_v20 = vmul.f32 %v9001_v35, %v2187_v61  ;;  %v3249_v47 = vld [vmem:[#allocation4 + $0xc0] sm:$0xff]  ;;  %v7257_v25 = vld [vmem:[#allocation3 + $0x70] sm:$0xff] }
 0x202   : > { %6890 = vmatpush3.bf16.msra.mxu0 %v6887_v7  ;;  %v1854_v9 = vadd.f32 %v1830_v26, %v1777_v32  ;;  %v2110_v7 = vld [vmem:[#allocation2 + $0xc9] sm:$0xf]  ;;  %v2293_v58 = vmul.f32 %v8916_v40, %v2264_v52  ;;  %v6815_v40 = vpack.c.bf16 %v3110_v41, %v3109_v11  ;;  %v9152_v62 = vld [vmem:[#allocation3 + $0x92] sm:$0xff]  ;;  %v4525_v60 = vld [vmem:[#allocation4 + $0x100] sm:$0xff] }
 0x203   : > { %6892 = vmatprep.subr.bf16.mxu0 %v9101_v42  ;;  %v2416_v8 = vmax.f32 %v2392_v33, 0.0  ;;  %v2139_v34 = vmul.f32 %v8990_v18, %v2110_v7  ;;  %v2341_v23 = vld [vmem:[#allocation2 + $0xcc] sm:$0xf]  ;;  %v3742_v14 = vld [vmem:[#allocation3 + $0xa2] sm:$0xff]  ;;  %v4385_v3 = vld [vmem:[#allocation4 + $0x70] sm:$0xff] }
 0x204   : > { %6329 = vmatmul.mubr.msk.f32.gmra.mrb[6].mxu1 %vm432_vm0, %v9112_v36  ;;  %v1931_v17 = vadd.f32 %v1907_v37, %v1854_v9  ;;  %v2370_v35 = vmul.f32 %v9625_v46, %v2341_v23  ;;  %v3250_v30 = vld [vmem:[#allocation4 + $0xc8] sm:$0xff]  ;;  %v4386_v5 = vld [vmem:[#allocation4 + $0x78] sm:$0xff]  ;;  %v3251_v4 = vld [vmem:[#allocation4 + $0xd0] sm:$0xff] }
 0x205   : > { %6339 = vmatprep.mubr.msk.f32.mxu1 %vm432_vm0, %v7253_v39  ;;  %2441 = vst.msk [vmem:[#allocation3 + $0x78] sm:$0xf] %vm2426_vm1, %v2416_v8  ;;  %v6819_v46 = vpack.c.bf16 %v3250_v30, %v3249_v47  ;;  %v3094_v10 = vld [vmem:[#allocation3 + $0x1] sm:$0xff]  ;;  %v3252_v27 = vld [vmem:[#allocation4 + $0xd8] sm:$0xff]  ;;  %v4527_v39 = vld [vmem:[#allocation4 + $0x110] sm:$0xff] }
 0x206   : > { %v2008_v54 = vadd.f32 %v1984_v43, %v1931_v17  ;;  %v4526_v48 = vld [vmem:[#allocation4 + $0x108] sm:$0xff]  ;;  %v6823_v22 = vpack.c.bf16 %v3252_v27, %v3251_v4  ;;  %v3370_v24 = vld [vmem:[#allocation4 + $0x160] sm:$0xff]  ;;  %v9184_v55 = vld [vmem:[#allocation3 + $0x31] sm:$0xff] }
 0x207   : > { %v3371_v32 = vld [vmem:[#allocation4 + $0x168] sm:$0xff]  ;;  %v6899_v26 = vpack.c.bf16 %v4526_v48, %v4525_v60  ;;  %v9195_v53 = vld [vmem:[#allocation3 + $0x51] sm:$0xff]  ;;  %v4646_v7 = vld [vmem:[#allocation4 + $0x1a0] sm:$0xff] }
 0x208   : > { %6340 = vmatmul.mubr.msk.f32.vlgmr.msra.gmra.mrb[0].mxu1 %vm432_vm0, %v7254_v59  ;;  %v2086_v31 = vadd.f32 %v2062_v12, %v2008_v54  ;;  %v9176_v63 = vld [vmem:[#allocation3 + $0x21] sm:$0xff]  ;;  %v3743_v37 = vld [vmem:[#allocation3 + $0xb2] sm:$0xff] }
 0x209   : > { %6342 = vmatprep.mubr.msk.f32.mxu1 %vm432_vm0, %v7255_v50  ;;  %6806 = vmatpush3.bf16.msra.mxu1 %v9087_v6  ;;  %v9188_v33 = vld [vmem:[#allocation3 + $0x41] sm:$0xff]  ;;  %v4528_v8 = vld [vmem:[#allocation4 + $0x118] sm:$0xff]  ;;  %v3372_v17 = vld [vmem:[#allocation4 + $0x170] sm:$0xff] }
 0x20a   : > { %6808 = vmatprep.subr.bf16.mxu1 %v6807_v13  ;;  %v2163_v15 = vadd.f32 %v2139_v34, %v2086_v31  ;;  %v9199_v9 = vld [vmem:[#allocation3 + $0x61] sm:$0xff]  ;;  %v3373_v43 = vld [vmem:[#allocation4 + $0x178] sm:$0xff]  ;;  %v6903_v28 = vpack.c.bf16 %v4528_v8, %v4527_v39  ;;  %v4648_v23 = vld [vmem:[#allocation4 + $0x1b0] sm:$0xff] }
 0x20b   : > { %v4370_v57 = vld [vmem:[#allocation3 + $0x3] sm:$0xff]  ;;  %v4371_v45 = vld [vmem:[#allocation3 + $0x13] sm:$0xff]  ;;  %v6831_v12 = vpack.c.bf16 %v3373_v43, %v3372_v17 }
 0x20c   : > { %6343 = vmatmul.mubr.msk.f32.gmra.mrb[2].mxu1 %vm432_vm0, %v7256_v0  ;;  %v9136_v6 = vld [vmem:[#allocation3 + $0x72] sm:$0xff]  ;;  %v2240_v16 = vadd.f32 %v2216_v20, %v2163_v15  ;;  %v9211_v54 = vld [vmem:[#allocation3 + $0x23] sm:$0xff] }
 0x20d   : > { %6345 = vmatprep.mubr.msk.f32.mxu1 %vm432_vm0, %v9634_v56  ;;  %6810 = vmatpush3.bf16.msra.mxu1 %v6807_v13  ;;  %v2468_v56 = vld [vmem:[#allocation3 + $0xb0] sm:$0xff]  ;;  %v3492_v61 = vld [vmem:[#allocation4 + $0x208] sm:$0xff]  ;;  %v4888_v4 = vld [vmem:[#allocation4 + $0x2e0] sm:$0xff] }
 0x20e   : > { %6812 = vmatprep.subr.bf16.mxu1 %v6811_v19  ;;  %6545 = vmatprep.mubr.msk.f32.mxu0 %vm432_vm0, %v9136_v6  ;;  %v2317_v18 = vadd.f32 %v2293_v58, %v2240_v16  ;;  %v9205_v13 = vld [vmem:[#allocation3 + $0x71] sm:$0xff]  ;;  %v9223_v34 = vld [vmem:[#allocation3 + $0x43] sm:$0xff] }
 0x20f   : > { %v9217_v31 = vld [vmem:[#allocation3 + $0x33] sm:$0xff]  ;;  %v9235_v15 = vld [vmem:[#allocation3 + $0x63] sm:$0xff] }
 0x210   : > { %6346 = vmatmul.mubr.msk.f32.gmra.mrb[4].mxu1 %vm432_vm0, %v9635_v2  ;;  %v2394_v51 = vadd.f32 %v2370_v35, %v2317_v18  ;;  %v9241_v20 = vld [vmem:[#allocation3 + $0x73] sm:$0xff]  ;;  %v4768_v11 = vld [vmem:[#allocation4 + $0x248] sm:$0xff]  ;;  %v3745_v60 = vld [vmem:[#allocation4 + $0x40] sm:$0xff] }
 0x211   : > { %6348 = vmatprep.mubr.msk.f32.mxu1 %vm432_vm0, %v9112_v36  ;;  %v4649_v16 = vld [vmem:[#allocation4 + $0x1b8] sm:$0xff]  ;;  %v3493_v18 = vld [vmem:[#allocation4 + $0x210] sm:$0xff]  ;;  %v4889_v27 = vld [vmem:[#allocation4 + $0x2e8] sm:$0xff] }
 0x212   : > { %v2418_v1 = vmax.f32 %v2394_v51, 0.0  ;;  %v3494_v35 = vld [vmem:[#allocation4 + $0x218] sm:$0xff]  ;;  %v6911_v51 = vpack.c.bf16 %v4649_v16, %v4648_v23  ;;  %v3746_v48 = vld [vmem:[#allocation4 + $0x48] sm:$0xff]  ;;  %v5021_v39 = vld [vmem:[#allocation4 + $0x80] sm:$0xff] }
 0x213   : > { %v6839_v41 = vpack.c.bf16 %v3494_v35, %v3493_v18  ;;  %v5022_v8 = vld [vmem:[#allocation4 + $0x88] sm:$0xff]  ;;  %v3887_v17 = vld [vmem:[#allocation4 + $0xe0] sm:$0xff]  ;;  %v5165_v23 = vld [vmem:[#allocation4 + $0x130] sm:$0xff] }
 0x214   : > { %6349 = vmatmul.mubr.msk.f32.gmra.mrb[6].mxu1 %vm432_vm0, %v2467_v29  ;;  %2443 = vst.msk [vmem:[#allocation3 + $0x88] sm:$0xf] %vm2426_vm1, %v2418_v1  ;;  %v3612_v1 = vld [vmem:[#allocation4 + $0x2a0] sm:$0xff]  ;;  %v3888_v43 = vld [vmem:[#allocation4 + $0xe8] sm:$0xff]  ;;  %v5166_v16 = vld [vmem:[#allocation4 + $0x138] sm:$0xff] }
 0x215   : > { %6359 = vmatprep.mubr.msk.f32.mxu1 %vm432_vm0, %v7254_v59  ;;  %v4647_v59 = vld [vmem:[#allocation4 + $0x1a8] sm:$0xff]  ;;  %v6943_v18 = vpack.c.bf16 %v5166_v16, %v5165_v23  ;;  %v5009_v35 = vld [vmem:[#allocation3 + $0x14] sm:$0xff] }
 0x218   : > { %6360 = vmatmul.mubr.msk.f32.vlgmr.msra.gmra.mrb[0].mxu1 %vm432_vm0, %v7255_v50  ;;  %v3491_v50 = vld [vmem:[#allocation4 + $0x200] sm:$0xff] }
 0x219   : > { %6362 = vmatprep.mubr.msk.f32.mxu1 %vm432_vm0, %v7256_v0  ;;  %6814 = vmatpush3.bf16.msra.mxu1 %v6811_v19  ;;  %v6907_v19 = vpack.c.bf16 %v4647_v59, %v4646_v7  ;;  %v6835_v52 = vpack.c.bf16 %v3492_v61, %v3491_v50  ;;  %v9229_v0 = vld [vmem:[#allocation3 + $0x53] sm:$0xff]  ;;  %v5163_v50 = vld [vmem:[#allocation4 + $0x120] sm:$0xff]  ;;  %v5164_v61 = vld [vmem:[#allocation4 + $0x128] sm:$0xff] }
 0x21a   : > { %6816 = vmatprep.subr.bf16.mxu1 %v6815_v40  ;;  %v3889_v7 = vld [vmem:[#allocation4 + $0xf0] sm:$0xff]  ;;  %v3890_v59 = vld [vmem:[#allocation4 + $0xf8] sm:$0xff] }
 0x21b   : > { %v9156_v49 = vld [vmem:[#allocation3 + $0x82] sm:$0xff] }
 0x21c   : > { %6363 = vmatmul.mubr.msk.f32.gmra.mrb[2].mxu1 %vm432_vm0, %v7257_v25  ;;  %6546 = vmatmul.mubr.msk.f32.gmra.mrb[4].mxu0 %vm432_vm0, %v9156_v49  ;;  %v9248_v58 = vld [vmem:[#allocation3 + $0x81] sm:$0xff]  ;;  %v4769_v25 = vld [vmem:[#allocation4 + $0x250] sm:$0xff] }
 0x21d   : > { %6365 = vmatprep.mubr.msk.f32.mxu1 %vm432_vm0, %v9635_v2  ;;  %6818 = vmatpush3.bf16.msra.mxu1 %v6815_v40  ;;  %v6895_v2 = vpack.c.bf16 %v4386_v5, %v4385_v3  ;;  %v3613_v40 = vld [vmem:[#allocation4 + $0x2a8] sm:$0xff]  ;;  %v9284_v3 = vld [vmem:[#allocation3 + $0x91] sm:$0xff] }
 0x21e   : > { %6820 = vmatprep.subr.bf16.mxu1 %v6819_v46  ;;  %6548 = vmatprep.mubr.msk.f32.mxu0 %vm432_vm0, %v9152_v62  ;;  %v6843_v30 = vpack.c.bf16 %v3613_v40, %v3612_v1  ;;  %v3614_v5 = vld [vmem:[#allocation4 + $0x2b0] sm:$0xff]  ;;  %v9386_v40 = vld [vmem:[#allocation3 + $0x44] sm:$0xff] }
 0x21f   : > { %v9380_v1 = vld [vmem:[#allocation3 + $0x34] sm:$0xff] }
 0x220   : > { %6366 = vmatmul.mubr.msk.f32.gmra.mrb[4].mxu1 %vm432_vm0, %v9112_v36  ;;  %6549 = vmatmul.mubr.msk.f32.gmra.mrb[6].mxu0 %vm432_vm0, %v3742_v14  ;;  %v3095_v36 = vld [vmem:[#allocation3 + $0x11] sm:$0xff] }
 0x221   : > { %6368 = vmatprep.mubr.msk.f32.mxu1 %vm432_vm0, %v2467_v29  ;;  %6559 = vmatprep.mubr.msk.f32.mxu0 %vm432_vm0, %v9026_v21  ;;  %v4767_v29 = vld [vmem:[#allocation4 + $0x240] sm:$0xff] }
 0x222   : > { %v6915_v47 = vpack.c.bf16 %v4768_v11, %v4767_v29  ;;  %v5285_v29 = vld [vmem:[#allocation4 + $0x1c8] sm:$0xff] }
 0x223   : > { %v5010_v11 = vld [vmem:[#allocation3 + $0x24] sm:$0xff] }
 0x224   : > { %6369 = vmatmul.mubr.msk.f32.gmra.mrb[6].mxu1 %vm432_vm0, %v2468_v56  ;;  %6560 = vmatmul.mubr.msk.f32.vlgmr.msra.gmra.mrb[0].mxu0 %vm432_vm0, %v9065_v38  ;;  %v3615_v56 = vld [vmem:[#allocation4 + $0x2b8] sm:$0xff] }
 0x225   : > { %6379 = vmatprep.mubr.msk.f32.mxu1 %vm432_vm0, %v3094_v10  ;;  %6894 = vmatpush3.bf16.msra.mxu0 %v9101_v42  ;;  %v6827_v42 = vpack.c.bf16 %v3371_v32, %v3370_v24  ;;  %v9312_v24 = vld [vmem:[#allocation3 + $0x93] sm:$0xff] }
 0x226   : > { %6562 = vmatprep.mubr.msk.f32.mxu0 %vm432_vm0, %v9114_v44  ;;  %6896 = vmatprep.subr.bf16.mxu0 %v6895_v2  ;;  %v4890_v32 = vld [vmem:[#allocation4 + $0x2f0] sm:$0xff] }
 0x228   : > { %6380 = vmatmul.mubr.msk.f32.vlgmr.msra.gmra.mrb[0].mxu1 %vm432_vm0, %v3095_v36  ;;  %6563 = vmatmul.mubr.msk.f32.gmra.mrb[2].mxu0 %vm432_vm0, %v9136_v6 }
 0x229   : > { %6382 = vmatprep.mubr.msk.f32.mxu1 %vm432_vm0, %v9176_v63  ;;  %6822 = vmatpush3.bf16.msra.mxu1 %v6819_v46  ;;  %v9276_v46 = vld [vmem:[#allocation3 + $0x83] sm:$0xff] }
 0x22a   : > { %6824 = vmatprep.subr.bf16.mxu1 %v6823_v22  ;;  %6565 = vmatprep.mubr.msk.f32.mxu0 %vm432_vm0, %v9156_v49 }
 0x22b   : > { %6898 = vmatpush3.bf16.msra.mxu0 %v6895_v2  ;;  %v6847_v2 = vpack.c.bf16 %v3615_v56, %v3614_v5  ;;  %v5406_v5 = vld [vmem:[#allocation4 + $0x268] sm:$0xff] }
 0x22c   : > { %6900 = vmatprep.subr.bf16.mxu0 %v6899_v26  ;;  %6383 = vmatmul.mubr.msk.f32.gmra.mrb[2].mxu1 %vm432_vm0, %v9184_v55 }
 0x22d   : > { %6385 = vmatprep.mubr.msk.f32.mxu1 %vm432_vm0, %v9188_v33  ;;  %6826 = vmatpush3.bf16.msra.mxu1 %v6823_v22  ;;  %v6923_v22 = vpack.c.bf16 %v4889_v27, %v4888_v4  ;;  %v5526_v4 = vld [vmem:[#allocation4 + $0x300] sm:$0xff]  ;;  %v5527_v27 = vld [vmem:[#allocation4 + $0x308] sm:$0xff] }
 0x22e   : > { %6566 = vmatmul.mubr.msk.f32.gmra.mrb[4].mxu0 %vm432_vm0, %v9152_v62  ;;  %6828 = vmatprep.subr.bf16.mxu1 %v6827_v42 }
 0x22f   : > { %6568 = vmatprep.mubr.msk.f32.mxu0 %vm432_vm0, %v3742_v14  ;;  %v4770_v14 = vld [vmem:[#allocation4 + $0x258] sm:$0xff] }
 0x230   : > { %6386 = vmatmul.mubr.msk.f32.gmra.mrb[4].mxu1 %vm432_vm0, %v9195_v53  ;;  %v6919_v10 = vpack.c.bf16 %v4770_v14, %v4769_v25  ;;  %v9406_v25 = vld [vmem:[#allocation3 + $0x74] sm:$0xff] }
 0x231   : > { %6388 = vmatprep.mubr.msk.f32.mxu1 %vm432_vm0, %v9199_v9  ;;  %v5287_v14 = vld [vmem:[#allocation4 + $0x1d8] sm:$0xff] }
 0x232   : > { %6569 = vmatmul.mubr.msk.f32.gmra.mrb[6].mxu0 %vm432_vm0, %v3743_v37 }
 0x233   : > { %6579 = vmatprep.mubr.msk.f32.mxu0 %vm432_vm0, %v4370_v57 }
 0x234   : > { %6389 = vmatmul.mubr.msk.f32.gmra.mrb[6].mxu1 %vm432_vm0, %v9205_v13 }
 0x235   : > { %6399 = vmatprep.mubr.msk.f32.mxu1 %vm432_vm0, %v3095_v36  ;;  %v6851_v36 = vpack.c.bf16 %v3746_v48, %v3745_v60  ;;  %v5528_v60 = vld [vmem:[#allocation4 + $0x310] sm:$0xff]  ;;  %v5529_v48 = vld [vmem:[#allocation4 + $0x318] sm:$0xff] }
 0x236   : > { %6580 = vmatmul.mubr.msk.f32.vlgmr.msra.gmra.mrb[0].mxu0 %vm432_vm0, %v4371_v45 }
 0x237   : > { %6902 = vmatpush3.bf16.msra.mxu0 %v6899_v26  ;;  %6582 = vmatprep.mubr.msk.f32.mxu0 %vm432_vm0, %v9211_v54  ;;  %v4891_v26 = vld [vmem:[#allocation4 + $0x2f8] sm:$0xff] }
 0x238   : > { %6904 = vmatprep.subr.bf16.mxu0 %v6903_v28  ;;  %6400 = vmatmul.mubr.msk.f32.vlgmr.msra.gmra.mrb[0].mxu1 %vm432_vm0, %v9176_v63  ;;  %v6927_v37 = vpack.c.bf16 %v4891_v26, %v4890_v32 }
 0x239   : > { %6402 = vmatprep.mubr.msk.f32.mxu1 %vm432_vm0, %v9184_v55  ;;  %6830 = vmatpush3.bf16.msra.mxu1 %v6827_v42  ;;  %v3747_v42 = vld [vmem:[#allocation4 + $0x50] sm:$0xff] }
 0x23a   : > { %6583 = vmatmul.mubr.msk.f32.gmra.mrb[2].mxu0 %vm432_vm0, %v9217_v31  ;;  %6832 = vmatprep.subr.bf16.mxu1 %v6831_v12 }
 0x23b   : > { %6585 = vmatprep.mubr.msk.f32.mxu0 %vm432_vm0, %v9223_v34  ;;  %6906 = vmatpush3.bf16.msra.mxu0 %v6903_v28  ;;  %v6931_v28 = vpack.c.bf16 %v5022_v8, %v5021_v39 }
 0x23c   : > { %6908 = vmatprep.subr.bf16.mxu0 %v6907_v19  ;;  %6403 = vmatmul.mubr.msk.f32.gmra.mrb[2].mxu1 %vm432_vm0, %v9188_v33 }
 0x23d   : > { %6405 = vmatprep.mubr.msk.f32.mxu1 %vm432_vm0, %v9195_v53  ;;  %6834 = vmatpush3.bf16.msra.mxu1 %v6831_v12  ;;  %v3732_v12 = vld [vmem:[#allocation3 + $0x2] sm:$0xff] }
 0x23e   : > { %6586 = vmatmul.mubr.msk.f32.gmra.mrb[4].mxu0 %vm432_vm0, %v9229_v0  ;;  %6836 = vmatprep.subr.bf16.mxu1 %v6835_v52 }
 0x23f   : > { %6588 = vmatprep.mubr.msk.f32.mxu0 %vm432_vm0, %v9235_v15 }
 0x240   : > { %6406 = vmatmul.mubr.msk.f32.gmra.mrb[4].mxu1 %vm432_vm0, %v9199_v9 }
 0x241   : > { %6408 = vmatprep.mubr.msk.f32.mxu1 %vm432_vm0, %v9205_v13 }
 0x242   : > { %6589 = vmatmul.mubr.msk.f32.gmra.mrb[6].mxu0 %vm432_vm0, %v9241_v20 }
 0x243   : > { %6599 = vmatprep.mubr.msk.f32.mxu0 %vm432_vm0, %v4371_v45  ;;  %v5024_v45 = vld [vmem:[#allocation4 + $0x98] sm:$0xff] }
 0x244   : > { %6409 = vmatmul.mubr.msk.f32.gmra.mrb[6].mxu1 %vm432_vm0, %v9248_v58 }
 0x245   : > { %6419 = vmatprep.mubr.msk.f32.mxu1 %vm432_vm0, %v9176_v63  ;;  %v3104_v63 = vld [vmem:[#allocation3 + $0xa1] sm:$0xff] }
 0x246   : > { %6600 = vmatmul.mubr.msk.f32.vlgmr.msra.gmra.mrb[0].mxu0 %vm432_vm0, %v9211_v54 }
 0x247   : > { %6910 = vmatpush3.bf16.msra.mxu0 %v6907_v19  ;;  %6602 = vmatprep.mubr.msk.f32.mxu0 %vm432_vm0, %v9217_v31  ;;  %v6863_v19 = vpack.c.bf16 %v3890_v59, %v3889_v7 }
 0x248   : > { %6912 = vmatprep.subr.bf16.mxu0 %v6911_v51  ;;  %6420 = vmatmul.mubr.msk.f32.vlgmr.msra.gmra.mrb[0].mxu1 %vm432_vm0, %v9184_v55 }
 0x249   : > { %6422 = vmatprep.mubr.msk.f32.mxu1 %vm432_vm0, %v9188_v33  ;;  %6838 = vmatpush3.bf16.msra.mxu1 %v6835_v52  ;;  %v7258_v52 = vld [vmem:[#allocation3 + $0x22] sm:$0xff] }
 0x24a   : > { %6603 = vmatmul.mubr.msk.f32.gmra.mrb[2].mxu0 %vm432_vm0, %v9223_v34  ;;  %6840 = vmatprep.subr.bf16.mxu1 %v6839_v41 }
 0x24b   : > { %6605 = vmatprep.mubr.msk.f32.mxu0 %vm432_vm0, %v9229_v0  ;;  %6914 = vmatpush3.bf16.msra.mxu0 %v6911_v51  ;;  %v5284_v51 = vld [vmem:[#allocation4 + $0x1c0] sm:$0xff] }
 0x24c   : > { %6916 = vmatprep.subr.bf16.mxu0 %v6915_v47  ;;  %6423 = vmatmul.mubr.msk.f32.gmra.mrb[2].mxu1 %vm432_vm0, %v9195_v53 }
 0x24d   : > { %6425 = vmatprep.mubr.msk.f32.mxu1 %vm432_vm0, %v9199_v9  ;;  %6842 = vmatpush3.bf16.msra.mxu1 %v6839_v41  ;;  %v6947_v41 = vpack.c.bf16 %v5285_v29, %v5284_v51 }
 0x24e   : > { %6606 = vmatmul.mubr.msk.f32.gmra.mrb[4].mxu0 %vm432_vm0, %v9235_v15  ;;  %6844 = vmatprep.subr.bf16.mxu1 %v6843_v30 }
 0x24f   : > { %6608 = vmatprep.mubr.msk.f32.mxu0 %vm432_vm0, %v9241_v20 }
 0x250   : > { %6426 = vmatmul.mubr.msk.f32.gmra.mrb[4].mxu1 %vm432_vm0, %v9205_v13 }
 0x251   : > { %6428 = vmatprep.mubr.msk.f32.mxu1 %vm432_vm0, %v9248_v58 }
 0x252   : > { %6609 = vmatmul.mubr.msk.f32.gmra.mrb[6].mxu0 %vm432_vm0, %v9276_v46 }
 0x253   : > { %6619 = vmatprep.mubr.msk.f32.mxu0 %vm432_vm0, %v9211_v54 }
 0x254   : > { %6429 = vmatmul.mubr.msk.f32.gmra.mrb[6].mxu1 %vm432_vm0, %v9284_v3 }
 0x255   : > { %6439 = vmatprep.mubr.msk.f32.mxu1 %vm432_vm0, %v9184_v55  ;;  %v3748_v55 = vld [vmem:[#allocation4 + $0x58] sm:$0xff] }
 0x256   : > { %6620 = vmatmul.mubr.msk.f32.vlgmr.msra.gmra.mrb[0].mxu0 %vm432_vm0, %v9217_v31  ;;  %v6855_v57 = vpack.c.bf16 %v3748_v55, %v3747_v42 }
 0x257   : > { %6918 = vmatpush3.bf16.msra.mxu0 %v6915_v47  ;;  %6622 = vmatprep.mubr.msk.f32.mxu0 %vm432_vm0, %v9223_v34  ;;  %v9637_v47 = vld [vmem:[#allocation7_spill] sm:$0xff] }
 0x258   : > { %6920 = vmatprep.subr.bf16.mxu0 %v6919_v10  ;;  %6440 = vmatmul.mubr.msk.f32.vlgmr.msra.gmra.mrb[0].mxu1 %vm432_vm0, %v9188_v33 }
 0x259   : > { %6442 = vmatprep.mubr.msk.f32.mxu1 %vm432_vm0, %v9195_v53  ;;  %6846 = vmatpush3.bf16.msra.mxu1 %v6843_v30  ;;  %v9393_v30 = vld [vmem:[#allocation3 + $0x54] sm:$0xff] }
 0x25a   : > { %6623 = vmatmul.mubr.msk.f32.gmra.mrb[2].mxu0 %vm432_vm0, %v9229_v0  ;;  %6848 = vmatprep.subr.bf16.mxu1 %v6847_v2 }
 0x25b   : > { %6625 = vmatprep.mubr.msk.f32.mxu0 %vm432_vm0, %v9235_v15  ;;  %6922 = vmatpush3.bf16.msra.mxu0 %v6919_v10 }
 0x25c   : > { %6924 = vmatprep.subr.bf16.mxu0 %v6923_v22  ;;  %6443 = vmatmul.mubr.msk.f32.gmra.mrb[2].mxu1 %vm432_vm0, %v9199_v9 }
 0x25d   : > { %6445 = vmatprep.mubr.msk.f32.mxu1 %vm432_vm0, %v9205_v13  ;;  %6850 = vmatpush3.bf16.msra.mxu1 %v6847_v2  ;;  %v5017_v2 = vld [vmem:[#allocation3 + $0x94] sm:$0xff] }
 0x25e   : > { %6626 = vmatmul.mubr.msk.f32.gmra.mrb[4].mxu0 %vm432_vm0, %v9241_v20  ;;  %6852 = vmatprep.subr.bf16.mxu1 %v6851_v36 }
 0x25f   : > { %6628 = vmatprep.mubr.msk.f32.mxu0 %vm432_vm0, %v9276_v46 }
 0x260   : > { %6446 = vmatmul.mubr.msk.f32.gmra.mrb[4].mxu1 %vm432_vm0, %v9248_v58 }
 0x261   : > { %6448 = vmatprep.mubr.msk.f32.mxu1 %vm432_vm0, %v9284_v3 }
 0x262   : > { %6629 = vmatmul.mubr.msk.f32.gmra.mrb[6].mxu0 %vm432_vm0, %v9312_v24 }
 0x263   : > { %6639 = vmatprep.mubr.msk.f32.mxu0 %vm432_vm0, %v9217_v31  ;;  %v3733_v31 = vld [vmem:[#allocation3 + $0x12] sm:$0xff] }
 0x264   : > { %6449 = vmatmul.mubr.msk.f32.gmra.mrb[6].mxu1 %vm432_vm0, %v3104_v63 }
 0x265   : > { %6459 = vmatprep.mubr.msk.f32.mxu1 %vm432_vm0, %v9188_v33  ;;  %v6859_v33 = vpack.c.bf16 %v3888_v43, %v3887_v17 }
 0x266   : > { %6640 = vmatmul.mubr.msk.f32.vlgmr.msra.gmra.mrb[0].mxu0 %vm432_vm0, %v9223_v34 }
 0x267   : > { %6926 = vmatpush3.bf16.msra.mxu0 %v6923_v22  ;;  %6642 = vmatprep.mubr.msk.f32.mxu0 %vm432_vm0, %v9229_v0  ;;  %v6967_v22 = vpack.c.bf16 %v5529_v48, %v5528_v60 }
 0x268   : > { %6928 = vmatprep.subr.bf16.mxu0 %v6927_v37  ;;  %6460 = vmatmul.mubr.msk.f32.vlgmr.msra.gmra.mrb[0].mxu1 %vm432_vm0, %v9195_v53  ;;  %v4380_v53 = vld [vmem:[#allocation3 + $0xa3] sm:$0xff] }
 0x269   : > { %6462 = vmatprep.mubr.msk.f32.mxu1 %vm432_vm0, %v9199_v9  ;;  %6854 = vmatpush3.bf16.msra.mxu1 %v6851_v36  ;;  %v5023_v9 = vld [vmem:[#allocation4 + $0x90] sm:$0xff]  ;;  %v5018_v36 = vld [vmem:[#allocation3 + $0xa4] sm:$0xff] }
 0x26a   : > { %6643 = vmatmul.mubr.msk.f32.gmra.mrb[2].mxu0 %vm432_vm0, %v9235_v15  ;;  %6856 = vmatprep.subr.bf16.mxu1 %v6855_v57  ;;  %v6935_v54 = vpack.c.bf16 %v5024_v45, %v5023_v9 }
 0x26b   : > { %6645 = vmatprep.mubr.msk.f32.mxu0 %vm432_vm0, %v9241_v20  ;;  %6930 = vmatpush3.bf16.msra.mxu0 %v6927_v37 }
 0x26c   : > { %6932 = vmatprep.subr.bf16.mxu0 %v6931_v28  ;;  %6463 = vmatmul.mubr.msk.f32.gmra.mrb[2].mxu1 %vm432_vm0, %v9205_v13  ;;  %v3105_v13 = vld [vmem:[#allocation3 + $0xb1] sm:$0xff] }
 0x26d   : > { %6465 = vmatprep.mubr.msk.f32.mxu1 %vm432_vm0, %v9248_v58  ;;  %6858 = vmatpush3.bf16.msra.mxu1 %v6855_v57  ;;  %v5008_v58 = vld [vmem:[#allocation3 + $0x4] sm:$0xff]  ;;  %v5766_v57 = vld [vmem:[%s9497_s4] ss:$0 sm:$0xff] }
 0x26e   : > { %6646 = vmatmul.mubr.msk.f32.gmra.mrb[4].mxu0 %vm432_vm0, %v9276_v46  ;;  %6860 = vmatprep.subr.bf16.mxu1 %v6859_v33 }
 0x26f   : > { %6648 = vmatprep.mubr.msk.f32.mxu0 %vm432_vm0, %v9312_v24 }
 0x270   : > { %6466 = vmatmul.mubr.msk.f32.gmra.mrb[4].mxu1 %vm432_vm0, %v9284_v3  ;;  %v5405_v3 = vld [vmem:[#allocation4 + $0x260] sm:$0xff] }
 0x271   : > { %6468 = vmatprep.mubr.msk.f32.mxu1 %vm432_vm0, %v3104_v63  ;;  %v6955_v56 = vpack.c.bf16 %v5406_v5, %v5405_v3 }
 0x272   : > { %6649 = vmatmul.mubr.msk.f32.gmra.mrb[6].mxu0 %vm432_vm0, %v4380_v53 }
 0x273   : > { %6659 = vmatprep.mubr.msk.f32.mxu0 %vm432_vm0, %v9223_v34  ;;  %v6939_v34 = vpack.c.bf16 %v5164_v61, %v5163_v50 }
 0x274   : > { %6469 = vmatmul.mubr.msk.f32.gmra.mrb[6].mxu1 %vm432_vm0, %v3105_v13 }
 0x275   : > { %6479 = vmatprep.mubr.msk.f32.mxu1 %vm432_vm0, %v3732_v12 }
 0x276   : > { %6660 = vmatmul.mubr.msk.f32.vlgmr.msra.gmra.mrb[0].mxu0 %vm432_vm0, %v9229_v0  ;;  %v7259_v0 = vld [vmem:[#allocation3 + $0x32] sm:$0xff] }
 0x277   : > { %6934 = vmatpush3.bf16.msra.mxu0 %v6931_v28  ;;  %6662 = vmatprep.mubr.msk.f32.mxu0 %vm432_vm0, %v9235_v15  ;;  %v9636_v15 = vld [vmem:[#allocation19_spill] sm:$0xff] }
 0x278   : > { %6936 = vmatprep.subr.bf16.mxu0 %v6935_v54  ;;  %6480 = vmatmul.mubr.msk.f32.vlgmr.msra.gmra.mrb[0].mxu1 %vm432_vm0, %v3733_v31 }
 0x279   : > { %6482 = vmatprep.mubr.msk.f32.mxu1 %vm432_vm0, %v7258_v52  ;;  %6862 = vmatpush3.bf16.msra.mxu1 %v6859_v33 }
 0x27a   : > { %6663 = vmatmul.mubr.msk.f32.gmra.mrb[2].mxu0 %vm432_vm0, %v9241_v20  ;;  %6864 = vmatprep.subr.bf16.mxu1 %v6863_v19  ;;  %v4381_v20 = vld [vmem:[#allocation3 + $0xb3] sm:$0xff] }
 0x27b   : > { %6665 = vmatprep.mubr.msk.f32.mxu0 %vm432_vm0, %v9276_v46  ;;  %6938 = vmatpush3.bf16.msra.mxu0 %v6935_v54  ;;  %v9400_v46 = vld [vmem:[#allocation3 + $0x64] sm:$0xff] }
 0x27c   : > { %6940 = vmatprep.subr.bf16.mxu0 %v6939_v34  ;;  %6483 = vmatmul.mubr.msk.f32.gmra.mrb[2].mxu1 %vm432_vm0, %v7259_v0 }
 0x27d   : > { %6485 = vmatprep.mubr.msk.f32.mxu1 %vm432_vm0, %v9026_v21  ;;  %6866 = vmatpush3.bf16.msra.mxu1 %v6863_v19 }
 0x27e   : > { %6666 = vmatmul.mubr.msk.f32.gmra.mrb[4].mxu0 %vm432_vm0, %v9312_v24  ;;  %6971 = vmatprep.subr.bf16.mxu1 %v9636_v15  ;;  %v5019_v24 = vld [vmem:[#allocation3 + $0xb4] sm:$0xff] }
 0x27f   : > { %6668 = vmatprep.mubr.msk.f32.mxu0 %vm432_vm0, %v4380_v53 }
 0x280   : > { %6486 = vmatmul.mubr.msk.f32.gmra.mrb[4].mxu1 %vm432_vm0, %v9065_v38 }
 0x281   : > { %6488 = vmatprep.mubr.msk.f32.mxu1 %vm432_vm0, %v9114_v44 }
 0x282   : > { %6669 = vmatmul.mubr.msk.f32.gmra.mrb[6].mxu0 %vm432_vm0, %v4381_v20 }
 0x283   : > { %6679 = vmatprep.mubr.msk.f32.mxu0 %vm432_vm0, %v5008_v58 }
 0x284   : > { %6489 = vmatmul.mubr.msk.f32.gmra.mrb[6].mxu1 %vm432_vm0, %v9136_v6 }
 0x285   : > { %6499 = vmatprep.mubr.msk.f32.mxu1 %vm432_vm0, %v3733_v31 }
 0x286   : > { %6680 = vmatmul.mubr.msk.f32.vlgmr.msra.gmra.mrb[0].mxu0 %vm432_vm0, %v5009_v35 }
 0x287   : > { %6942 = vmatpush3.bf16.msra.mxu0 %v6939_v34  ;;  %6682 = vmatprep.mubr.msk.f32.mxu0 %vm432_vm0, %v5010_v11 }
 0x288   : > { %6944 = vmatprep.subr.bf16.mxu0 %v6943_v18  ;;  %6500 = vmatmul.mubr.msk.f32.vlgmr.msra.gmra.mrb[0].mxu1 %vm432_vm0, %v7258_v52 }
 0x289   : > { %6502 = vmatprep.mubr.msk.f32.mxu1 %vm432_vm0, %v7259_v0  ;;  %6973 = vmatpush3.bf16.msra.mxu1 %v9636_v15 }
 0x28a   : > { %6683 = vmatmul.mubr.msk.f32.gmra.mrb[2].mxu0 %vm432_vm0, %v9380_v1  ;;  %6972 = vmatprep.subr.bf16.mxu1 %v9637_v47 }
 0x28b   : > { %6685 = vmatprep.mubr.msk.f32.mxu0 %vm432_vm0, %v9386_v40  ;;  %6946 = vmatpush3.bf16.msra.mxu0 %v6943_v18 }
 0x28c   : > { %6948 = vmatprep.subr.bf16.mxu0 %v6947_v41  ;;  %6503 = vmatmul.mubr.msk.f32.gmra.mrb[2].mxu1 %vm432_vm0, %v9026_v21  ;;  %v5286_v21 = vld [vmem:[#allocation4 + $0x1d0] sm:$0xff] }
 0x28d   : > { %6505 = vmatprep.mubr.msk.f32.mxu1 %vm432_vm0, %v9065_v38  ;;  %6974 = vmatpush3.bf16.msra.mxu1 %v9637_v47  ;;  %v6951_v38 = vpack.c.bf16 %v5287_v14, %v5286_v21 }
 0x28e   : > { %6686 = vmatmul.mubr.msk.f32.gmra.mrb[4].mxu0 %vm432_vm0, %v9393_v30 }
 0x28f   : > { %6688 = vmatprep.mubr.msk.f32.mxu0 %vm432_vm0, %v9400_v46 }
 0x290   : > { %6506 = vmatmul.mubr.msk.f32.gmra.mrb[4].mxu1 %vm432_vm0, %v9114_v44 }
 0x291   : > { %6508 = vmatprep.mubr.msk.f32.mxu1 %vm432_vm0, %v9136_v6 }
 0x292   : > { %6689 = vmatmul.mubr.msk.f32.gmra.mrb[6].mxu0 %vm432_vm0, %v9406_v25 }
 0x293   : > { %6699 = vmatprep.mubr.msk.f32.mxu0 %vm432_vm0, %v5009_v35 }
 0x294   : > { %6509 = vmatmul.mubr.msk.f32.gmra.mrb[6].mxu1 %vm432_vm0, %v9156_v49 }
 0x295   : > { %6525 = vmatprep.mubr.msk.f32.mxu1 %vm432_vm0, %v9114_v44  ;;  %v5016_v44 = vld [vmem:[#allocation3 + $0x84] sm:$0xff] }
 0x296   : > { %6700 = vmatmul.mubr.msk.f32.vlgmr.msra.gmra.mrb[0].mxu0 %vm432_vm0, %v5010_v11 }
 0x297   : > { %6950 = vmatpush3.bf16.msra.mxu0 %v6947_v41  ;;  %6702 = vmatprep.mubr.msk.f32.mxu0 %vm432_vm0, %v9380_v1 }
 0x298   : > { %6952 = vmatprep.subr.bf16.mxu0 %v6951_v38  ;;  %6526 = vmatmul.mubr.msk.f32.vlgmr.msra.gmra.mrb[4].mxu1 %vm432_vm0, %v9136_v6  ;;  %v5407_v6 = vld [vmem:[#allocation4 + $0x270] sm:$0xff] }
 0x299   : > { %6528 = vmatprep.mubr.msk.f32.mxu1 %vm432_vm0, %v9156_v49  ;;  %v5408_v49 = vld [vmem:[#allocation4 + $0x278] sm:$0xff] }
 0x29a   : > { %6703 = vmatmul.mubr.msk.f32.gmra.mrb[2].mxu0 %vm432_vm0, %v9386_v40  ;;  %v6959_v10 = vpack.c.bf16 %v5408_v49, %v5407_v6 }
 0x29b   : > { %6705 = vmatprep.mubr.msk.f32.mxu0 %vm432_vm0, %v9393_v30  ;;  %6954 = vmatpush3.bf16.msra.mxu0 %v6951_v38 }
 0x29c   : > { %6956 = vmatprep.subr.bf16.mxu0 %v6955_v56  ;;  %6529 = vmatmul.mubr.msk.f32.gmra.mrb[6].mxu1 %vm432_vm0, %v9152_v62  ;;  %v6963_v62 = vpack.c.bf16 %v5527_v27, %v5526_v4 }
 0x29e   : > { %6706 = vmatmul.mubr.msk.f32.gmra.mrb[4].mxu0 %vm432_vm0, %v9400_v46 }
 0x29f   : > { %6708 = vmatprep.mubr.msk.f32.mxu0 %vm432_vm0, %v9406_v25 }
 0x2a2   : > { %6709 = vmatmul.mubr.msk.f32.gmra.mrb[6].mxu0 %vm432_vm0, %v5016_v44 }
 0x2a3   : > { %6719 = vmatprep.mubr.msk.f32.mxu0 %vm432_vm0, %v5010_v11 }
 0x2a6   : > { %6720 = vmatmul.mubr.msk.f32.vlgmr.msra.gmra.mrb[0].mxu0 %vm432_vm0, %v9380_v1 }
 0x2a7   : > { %6958 = vmatpush3.bf16.msra.mxu0 %v6955_v56  ;;  %6722 = vmatprep.mubr.msk.f32.mxu0 %vm432_vm0, %v9386_v40 }
 0x2a8   : > { %6960 = vmatprep.subr.bf16.mxu0 %v6959_v10 }
 0x2aa   : > { %6723 = vmatmul.mubr.msk.f32.gmra.mrb[2].mxu0 %vm432_vm0, %v9393_v30 }
 0x2ab   : > { %6725 = vmatprep.mubr.msk.f32.mxu0 %vm432_vm0, %v9400_v46  ;;  %6962 = vmatpush3.bf16.msra.mxu0 %v6959_v10 }
 0x2ac   : > { %6964 = vmatprep.subr.bf16.mxu0 %v6963_v62 }
 0x2ae   : > { %6726 = vmatmul.mubr.msk.f32.gmra.mrb[4].mxu0 %vm432_vm0, %v9406_v25 }
 0x2af   : > { %6728 = vmatprep.mubr.msk.f32.mxu0 %vm432_vm0, %v5016_v44 }
 0x2b2   : > { %6729 = vmatmul.mubr.msk.f32.gmra.mrb[6].mxu0 %vm432_vm0, %v5017_v2 }
 0x2b3   : > { %6739 = vmatprep.mubr.msk.f32.mxu0 %vm432_vm0, %v9380_v1 }
 0x2b6   : > { %6740 = vmatmul.mubr.msk.f32.vlgmr.msra.gmra.mrb[0].mxu0 %vm432_vm0, %v9386_v40 }
 0x2b7   : > { %6966 = vmatpush3.bf16.msra.mxu0 %v6963_v62  ;;  %6742 = vmatprep.mubr.msk.f32.mxu0 %vm432_vm0, %v9393_v30 }
 0x2b8   : > { %6968 = vmatprep.subr.bf16.mxu0 %v6967_v22 }
 0x2ba   : > { %6743 = vmatmul.mubr.msk.f32.gmra.mrb[2].mxu0 %vm432_vm0, %v9400_v46 }
 0x2bb   : > { %6745 = vmatprep.mubr.msk.f32.mxu0 %vm432_vm0, %v9406_v25  ;;  %6970 = vmatpush3.bf16.msra.mxu0 %v6967_v22 }
 0x2be   : > { %6746 = vmatmul.mubr.msk.f32.gmra.mrb[4].mxu0 %vm432_vm0, %v5016_v44 }
 0x2bf   : > { %6748 = vmatprep.mubr.msk.f32.mxu0 %vm432_vm0, %v5017_v2 }
 0x2c2   : > { %6749 = vmatmul.mubr.msk.f32.gmra.mrb[6].mxu0 %vm432_vm0, %v5018_v36 }
 0x2c3   : > { %6759 = vmatprep.mubr.msk.f32.mxu0 %vm432_vm0, %v9386_v40 }
 0x2c6   : > { %6760 = vmatmul.mubr.msk.f32.vlgmr.msra.gmra.mrb[0].mxu0 %vm432_vm0, %v9393_v30 }
 0x2c7   : > { %6762 = vmatprep.mubr.msk.f32.mxu0 %vm432_vm0, %v9400_v46 }
 0x2ca   : > { %6763 = vmatmul.mubr.msk.f32.gmra.mrb[2].mxu0 %vm432_vm0, %v9406_v25 }
 0x2cb   : > { %6765 = vmatprep.mubr.msk.f32.mxu0 %vm432_vm0, %v5016_v44 }
 0x2ce   : > { %6766 = vmatmul.mubr.msk.f32.gmra.mrb[4].mxu0 %vm432_vm0, %v5017_v2 }
 0x2cf   : > { %6768 = vmatprep.mubr.msk.f32.mxu0 %vm432_vm0, %v5018_v36 }
 0x2d2   : > { %6769 = vmatmul.mubr.msk.f32.gmra.mrb[6].mxu0 %vm432_vm0, %v5019_v24 }
 0x35b   : > { %v6501_v32 = vpop.f32.mrb[0].mxu1 }
 0x35c   : > { %v3960_v26 = vpop.f32.mrb[1].mxu1  ;;  %v6975_v17 = vadd.f32 %v6501_v32, %v5766_v57 }
 0x35d   : > { %v6977_v43 = vadd.f32 %v5766_v57, %v3960_v26 }
 0x35f   : > { %v6504_v63 = vpop.f32.mrb[2].mxu1 }
 0x360   : > { %v3970_v42 = vpop.f32.mrb[3].mxu1  ;;  %v6979_v45 = vadd.f32 %v6504_v63, %v5766_v57 }
 0x361   : > { %v6981_v7 = vadd.f32 %v5766_v57, %v3970_v42 }
 0x36b   : > { %v6527_v55 = vpop.f32.mrb[4].mxu1 }
 0x36c   : > { %v4101_v37 = vpop.f32.mrb[5].mxu1  ;;  %v6983_v19 = vadd.f32 %v6527_v55, %v5766_v57 }
 0x36d   : > { %v6985_v34 = vadd.f32 %v5766_v57, %v4101_v37 }
 0x36f   : > { %v6530_v39 = vpop.f32.mrb[6].mxu1 }
 0x370   : > { %v4111_v8 = vpop.f32.mrb[7].mxu1  ;;  %v6987_v16 = vadd.f32 %v6530_v39, %v5766_v57 }
 0x371   : > { %v6989_v18 = vadd.f32 %v5766_v57, %v4111_v8 }
 0x399   : > { %v6761_v28 = vpop.f32.mrb[0].mxu0 }
 0x39a   : > { %v6976_v33 = vadd.f32 %v6975_v17, %v6761_v28  ;;  %v5599_v53 = vpop.f32.mrb[1].mxu0 }
 0x39b   : > { %v6978_v9 = vadd.f32 %v6977_v43, %v5599_v53 }
 0x39c   : > { %v5647_v13 = vmax.f32 %v6976_v33, 0.0 }
 0x39d   : > { %v5646_v59 = vmax.f32 %v6978_v9, 0.0  ;;  %v6764_v54 = vpop.f32.mrb[2].mxu0 }
 0x39e   : > { %5655 = vst [vmem:[%s9480_s15 + $0x8] sm:$0xff] %v5647_v13  ;;  %v6980_v12 = vadd.f32 %v6979_v45, %v6764_v54  ;;  %v5609_v50 = vpop.f32.mrb[3].mxu0 }
 0x39f   : > { %5654 = vst [vmem:[%s9480_s15] sm:$0xff] %v5646_v59  ;;  %v6982_v61 = vadd.f32 %v6981_v7, %v5609_v50 }
 0x3a0   : > { %v5649_v31 = vmax.f32 %v6980_v12, 0.0 }
 0x3a1   : > { %v5648_v52 = vmax.f32 %v6982_v61, 0.0  ;;  %v6767_v0 = vpop.f32.mrb[4].mxu0 }
 0x3a2   : > { %5657 = vst [vmem:[%s9480_s15 + $0x18] sm:$0xff] %v5649_v31  ;;  %v6984_v15 = vadd.f32 %v6983_v19, %v6767_v0  ;;  %v5619_v20 = vpop.f32.mrb[5].mxu0 }
 0x3a3   : > { %5656 = vst [vmem:[%s9480_s15 + $0x10] sm:$0xff] %v5648_v52  ;;  %v6986_v23 = vadd.f32 %v6985_v34, %v5619_v20 }
 0x3a4   : > { %v5651_v58 = vmax.f32 %v6984_v15, 0.0 }
 0x3a5   : > { %v5650_v35 = vmax.f32 %v6986_v23, 0.0  ;;  %v6770_v51 = vpop.f32.mrb[6].mxu0 }
 0x3a6   : > { %5659 = vst [vmem:[%s9480_s15 + $0x28] sm:$0xff] %v5651_v58  ;;  %v6988_v29 = vadd.f32 %v6987_v16, %v6770_v51  ;;  %v5629_v11 = vpop.f32.mrb[7].mxu0 }
 0x3a7   : > { %5658 = vst [vmem:[%s9480_s15 + $0x20] sm:$0xff] %v5650_v35  ;;  %v6990_v41 = vadd.f32 %v6989_v18, %v5629_v11 }
 0x3a8   : > { %v5653_v1 = vmax.f32 %v6988_v29, 0.0 }
 0x3a9   : > { %v5652_v40 = vmax.f32 %v6990_v41, 0.0 }
 0x3aa   : > { %5661 = vst [vmem:[%s9480_s15 + $0x38] sm:$0xff] %v5653_v1 }
 0x3ab   : > { %5660 = vst [vmem:[%s9480_s15 + $0x30] sm:$0xff] %v5652_v40 }
 0x3ac PF: > { %s16_s18 = sadd.s32 1, %s7298_s18  }
 0x3ad   : > { %p13_p3 = scmp.ge.s32.totalorder %s16_s18, 4  }
 0x3af   :  { %15 = sbr.rel (!%p13_p3) target bundleno = 1 (0x1), region = 103 }
 0x3b6   :  { %5683 = vsyncpa [#allocation5], 1 }
 0x3b7   :  { %5685 = vsyncpa [#allocation5 + $0x1], 1 }

</bundles_post_ra>
